<compile_context>
chip_gen: v7x
topology: tpu7x:2x2x1
jax: 0.10.0
libtpu: 0.0.40
codegen_flags: <defaults>
</compile_context>

<pallas_src>
import functools
import random

import numpy as np
import ml_dtypes
import jax
import jax.numpy as jnp
from jax.experimental import pallas as pl
from jax.experimental.pallas import tpu as pltpu

SOS_token = 0
EOS_token = 1

# padded (lane-aligned) dimensions used by the kernel
E_PAD = 128          # embedding dim, padded
H_PAD = 128          # hidden dim, padded
V_PAD = 128          # output vocab, padded
NEG_INF = -1e30      # bias value for padded logit lanes


# ---------------------------------------------------------------------------
# Fused Seq2Seq decode kernel: ONE grid step, in-kernel unrolled token loop.
# ---------------------------------------------------------------------------
def _make_kernel(T):
    def seq2seq_kernel(
        # scalar prefetch (SMEM)
        tf_ref, tgt_ref,
        # inputs (VMEM, resident for the whole decode)
        h0_ref,            # (1, H_PAD)        f32   encoder hidden (padded)
        dec_table_ref,     # (V_PAD, 3*H_PAD)  bf16  relu(emb) @ W_ih + b_ih
        dec_whh_ref,       # (H_PAD, 3*H_PAD)  bf16
        dec_bhh_ref,       # (1, 3*H_PAD)      f32
        outw_ref,          # (H_PAD, V_PAD)    bf16
        outb_ref,          # (1, V_PAD)        f32   (pads = NEG_INF)
        # output
        out_ref,           # (T, 1, V_PAD)     f32
    ):
        lanes = jax.lax.broadcasted_iota(jnp.int32, (1, V_PAD), 1)

        h = h0_ref[...]                                               # (1, H_PAD) f32
        tok = (lanes == SOS_token).astype(jnp.float32).astype(jnp.bfloat16)
        done = jnp.zeros((1, 1), jnp.float32)

        # T is a small static Python int -> fully unrolled; LLO sees every step.
        for t in range(T):
            # ---- GRU cell (PyTorch gate order r|z|n, stacked along lanes) ----
            # gi: embedding lookup + relu + input projection, all folded into one
            # one-hot @ table matmul (exact).
            gi = jnp.dot(tok, dec_table_ref[...],
                         preferred_element_type=jnp.float32)          # (1, 3H)
            gh = jnp.dot(h.astype(jnp.bfloat16), dec_whh_ref[...],
                         preferred_element_type=jnp.float32) + dec_bhh_ref[...]
            i_r, i_z, i_n = gi[:, 0:H_PAD], gi[:, H_PAD:2 * H_PAD], gi[:, 2 * H_PAD:]
            h_r, h_z, h_n = gh[:, 0:H_PAD], gh[:, H_PAD:2 * H_PAD], gh[:, 2 * H_PAD:]
            r = jax.nn.sigmoid(i_r + h_r)
            z = jax.nn.sigmoid(i_z + h_z)
            n = jnp.tanh(i_n + r * h_n)                                # b_hn inside r*( )
            h = (1.0 - z) * n + z * h

            # ---- output projection + log-softmax (pads biased to -1e30) ----
            logits = jnp.dot(h.astype(jnp.bfloat16), outw_ref[...],
                             preferred_element_type=jnp.float32) + outb_ref[...]
            m = jnp.max(logits, axis=-1, keepdims=True)
            s = logits - m
            log_probs = s - jnp.log(jnp.sum(jnp.exp(s), axis=-1, keepdims=True))

            # rows after an (un-teacher-forced) EOS stay zero, like the reference break
            out_ref[t] = log_probs * (1.0 - done)

            # ---- greedy argmax (lowest index wins ties) as a one-hot vector ----
            is_max = logits == m
            amax = jnp.min(jnp.where(is_max, lanes, V_PAD),
                           axis=-1, keepdims=True)                    # (1, 1) int32
            argmax_oh = (lanes == amax).astype(jnp.float32)
            teacher_oh = (lanes == tgt_ref[t]).astype(jnp.float32)

            # teacher forcing / EOS logic (scalars from SMEM prefetch arrays)
            tf = (tf_ref[t] > 0).astype(jnp.float32)
            next_oh = tf * teacher_oh + (1.0 - tf) * argmax_oh
            eos_hit = (amax == EOS_token).astype(jnp.float32)          # (1, 1)
            done = jnp.maximum(done, (1.0 - tf) * eos_hit)
            tok = next_oh.astype(jnp.bfloat16)

    return seq2seq_kernel


@functools.lru_cache(maxsize=None)
def _build_fused_call(T):
    const = lambda i, tf, tg: (0, 0)   # every operand: one block, VMEM-resident
    grid_spec = pltpu.PrefetchScalarGridSpec(
        num_scalar_prefetch=2,
        grid=(1,),
        in_specs=[
            pl.BlockSpec((1, H_PAD), const),               # h0
            pl.BlockSpec((V_PAD, 3 * H_PAD), const),       # dec_table (bf16)
            pl.BlockSpec((H_PAD, 3 * H_PAD), const),       # dec_w_hh  (bf16)
            pl.BlockSpec((1, 3 * H_PAD), const),           # dec_b_hh
            pl.BlockSpec((H_PAD, V_PAD), const),           # out_w     (bf16)
            pl.BlockSpec((1, V_PAD), const),               # out_b (pads = -1e30)
        ],
        out_specs=pl.BlockSpec((T, 1, V_PAD), lambda i, tf, tg: (0, 0, 0)),
    )
    return pl.pallas_call(
        _make_kernel(T),
        grid_spec=grid_spec,
        out_shape=jax.ShapeDtypeStruct((T, 1, V_PAD), jnp.float32),
        compiler_params=pltpu.CompilerParams(dimension_semantics=("arbitrary",)),
    )


# ---------------------------------------------------------------------------
# Parameter construction (logical, PyTorch-shaped) + padding / restacking
# ---------------------------------------------------------------------------
def init_params(key, input_vocab, output_vocab, embed_size, hidden_size):
    ks = jax.random.split(key, 12)
    s = 1.0 / np.sqrt(hidden_size)

    def u(k, shape, sc):
        return jax.random.uniform(k, shape, jnp.float32, -sc, sc)

    return {
        "enc_emb": jax.random.normal(ks[0], (input_vocab, embed_size), jnp.float32),
        "dec_emb": jax.random.normal(ks[1], (output_vocab, embed_size), jnp.float32),
        "enc_w_ih": u(ks[2], (3, embed_size, hidden_size), s),
        "enc_w_hh": u(ks[3], (3, hidden_size, hidden_size), s),
        "enc_b_ih": u(ks[4], (3, hidden_size), s),
        "enc_b_hh": u(ks[5], (3, hidden_size), s),
        "dec_w_ih": u(ks[6], (3, embed_size, hidden_size), s),
        "dec_w_hh": u(ks[7], (3, hidden_size, hidden_size), s),
        "dec_b_ih": u(ks[8], (3, hidden_size), s),
        "dec_b_hh": u(ks[9], (3, hidden_size), s),
        "out_w": u(ks[10], (hidden_size, output_vocab), s),
        "out_b": u(ks[11], (1, output_vocab), s),
    }


def prepare_kernel_params(p, embed_size, hidden_size, output_vocab):
    """Zero-pad to lane-aligned shapes, restack the 3 GRU gates side-by-side,
    fold relu(emb) @ W_ih + b_ih into one table, and quantize weights to bf16."""
    E, H, V = embed_size, hidden_size, output_vocab

    def stack_w(w, in_dim, in_pad):               # (3, in, H) -> (in_pad, 3*H_PAD)
        w = np.asarray(w, np.float32)
        out = np.zeros((in_pad, 3 * H_PAD), np.float32)
        for g in range(3):
            out[:in_dim, g * H_PAD: g * H_PAD + H] = w[g]
        return out

    def stack_b(b):                               # (3, H) -> (1, 3*H_PAD)
        b = np.asarray(b, np.float32)
        out = np.zeros((1, 3 * H_PAD), np.float32)
        for g in range(3):
            out[0, g * H_PAD: g * H_PAD + H] = b[g]
        return out

    # fused lookup table: row v = relu(emb[v]) @ W_ih + b_ih (exact w.r.t. the
    # reference since relu commutes with the one-hot row select)
    emb_pad = np.zeros((V_PAD, E_PAD), np.float32)
    emb_pad[:V, :E] = np.asarray(p["dec_emb"], np.float32)
    wih = stack_w(p["dec_w_ih"], E, E_PAD)
    bih = stack_b(p["dec_b_ih"])
    dec_table = np.maximum(emb_pad, 0.0) @ wih + bih
    dec_table[V:] = 0.0                           # padded rows are never selected

    whh = stack_w(p["dec_w_hh"], H, H_PAD)
    bhh = stack_b(p["dec_b_hh"])

    out_w = np.zeros((H_PAD, V_PAD), np.float32)
    out_w[:H, :V] = np.asarray(p["out_w"], np.float32)
    out_b = np.full((1, V_PAD), NEG_INF, np.float32)     # padded logits -> -1e30
    out_b[0, :V] = np.asarray(p["out_b"], np.float32)[0]

    return {
        "dec_table": jnp.asarray(dec_table, jnp.bfloat16),
        "dec_w_hh": jnp.asarray(whh, jnp.bfloat16),
        "dec_b_hh": jnp.asarray(bhh, jnp.float32),
        "out_w": jnp.asarray(out_w, jnp.bfloat16),
        "out_b": jnp.asarray(out_b, jnp.float32),
    }


def encoder_h0(p, input_tokens, embed_size, hidden_size):
    """The reference encoder re-creates a FRESH zero hidden state for every
    source token, so only the last token's GRU step survives.  One tiny GRU
    step, done on the host (f32), padded to (1, H_PAD)."""
    f = lambda k: np.asarray(p[k], np.float32)
    x = f("enc_emb")[int(np.asarray(input_tokens)[-1])]
    h = np.zeros(hidden_size, np.float32)
    wih, whh, bih, bhh = f("enc_w_ih"), f("enc_w_hh"), f("enc_b_ih"), f("enc_b_hh")
    sig = lambda v: 1.0 / (1.0 + np.exp(-v))
    i_r, i_z, i_n = [x @ wih[g] + bih[g] for g in range(3)]
    h_r, h_z, h_n = [h @ whh[g] + bhh[g] for g in range(3)]
    r, z = sig(i_r + h_r), sig(i_z + h_z)
    n = np.tanh(i_n + r * h_n)
    h = (1.0 - z) * n + z * h
    h0 = np.zeros((1, H_PAD), np.float32)
    h0[0, :hidden_size] = h
    return jnp.asarray(h0)


# ---------------------------------------------------------------------------
# Seq2Seq forward (mirrors the PyTorch module's forward)
# ---------------------------------------------------------------------------
def seq2seq_forward(kernel_params, h0, target_tokens, output_vocab,
                    teacher_forcing_ratio=0.5):
    T = int(target_tokens.shape[0])

    # teacher-forcing decisions: same RNG stream as the reference.  Decisions
    # past an early EOS break are never consumed by the reference; here they
    # only affect rows that the sticky done-flag masks to zero anyway.
    random.seed(0)
    tf_mask = np.array([1 if random.random() < teacher_forcing_ratio else 0
                        for _ in range(T)], dtype=np.int32)
    tgt = np.asarray(target_tokens[:, 0], dtype=np.int32)

    fn = _build_fused_call(T)
    out_pad = fn(jnp.asarray(tf_mask), jnp.asarray(tgt),      # scalar prefetch
                 h0,
                 kernel_params["dec_table"], kernel_params["dec_w_hh"],
                 kernel_params["dec_b_hh"],
                 kernel_params["out_w"], kernel_params["out_b"])
    return out_pad[:, :, :output_vocab], tf_mask


# ---------------------------------------------------------------------------
# Host-side float64 reference.  It mirrors the kernel's bf16 weight
# quantization / activation casts (so the check is tight) and replays the
# kernel's own greedy tokens (so it is immune to argmax ties).
# ---------------------------------------------------------------------------
def reference_outputs(kernel_params, h0, tgt_tokens, tf_mask, kernel_out,
                      output_vocab):
    to64 = lambda a: np.asarray(jnp.asarray(a, jnp.float32), np.float64)
    tab = to64(kernel_params["dec_table"])
    whh = to64(kernel_params["dec_w_hh"])
    bhh = to64(kernel_params["dec_b_hh"])[0]
    ow = to64(kernel_params["out_w"])
    ob = to64(kernel_params["out_b"])[0]
    cast = lambda v: v.astype(ml_dtypes.bfloat16).astype(np.float64)
    sig = lambda v: 1.0 / (1.0 + np.exp(-v))

    h = np.asarray(h0, np.float64)[0]                         # (H_PAD,)
    T = int(tgt_tokens.shape[0])
    outputs = np.zeros((T, 1, output_vocab), np.float64)
    tok = SOS_token
    for t in range(T):
        gi = tab[tok]                                          # one-hot row select
        gh = cast(h) @ whh + bhh
        i_r, i_z, i_n = gi[:H_PAD], gi[H_PAD:2 * H_PAD], gi[2 * H_PAD:]
        h_r, h_z, h_n = gh[:H_PAD], gh[H_PAD:2 * H_PAD], gh[2 * H_PAD:]
        r, z = sig(i_r + h_r), sig(i_z + h_z)
        n = np.tanh(i_n + r * h_n)
        h = (1.0 - z) * n + z * h
        logits = cast(h) @ ow + ob
        s = logits - logits.max()
        lp = s - np.log(np.exp(s).sum())
        outputs[t, 0] = lp[:output_vocab]
        teacher = bool(tf_mask[t])
        greedy = int(np.argmax(kernel_out[t, 0]))
        tok = int(tgt_tokens[t, 0]) if teacher else greedy
        if (not teacher) and tok == EOS_token:
            break
    return outputs


# ---------------------------------------------------------------------------
if __name__ == "__main__":
    # small, module-consistent shapes (logical; kernel pads to 128 lanes)
    input_vocab = 40
    output_vocab = 48
    embed_size = 32
    hidden_size = 64
    src_len = 8
    tgt_len = 6
    batch = 1  # the reference encoder hard-codes batch 1 via .view(1, 1, -1)
    # TODO(synk): batch>1 / multi-sequence decode (to fill MXU sublanes and the
    # second v7x TensorCore) is not expressible from this batch-1 module forward.

    key = jax.random.PRNGKey(0)
    params = init_params(key, input_vocab, output_vocab, embed_size, hidden_size)
    params_np = {k: np.asarray(v) for k, v in params.items()}

    k_src, k_tgt = jax.random.split(jax.random.PRNGKey(0), 2)
    input_tokens = np.asarray(
        jax.random.randint(k_src, (src_len,), 2, input_vocab, dtype=jnp.int32))
    target_tokens = np.asarray(
        jax.random.randint(k_tgt, (tgt_len, batch), 2, output_vocab, dtype=jnp.int32))

    # one-time prep (padding / gate restack / bf16 quantization / encoder step)
    kp = prepare_kernel_params(params_np, embed_size, hidden_size, output_vocab)
    h0 = encoder_h0(params_np, input_tokens, embed_size, hidden_size)

    out, tf_mask = seq2seq_forward(kp, h0, target_tokens, output_vocab,
                                   teacher_forcing_ratio=0.5)
    out = jax.block_until_ready(out)
    out_np = np.asarray(out)

    assert out_np.shape == (tgt_len, batch, output_vocab)
    assert np.all(np.isfinite(out_np))

    ref = reference_outputs(kp, h0, target_tokens, tf_mask, out_np, output_vocab)
    assert np.allclose(out_np, ref, rtol=0.0, atol=5e-2), float(np.abs(out_np - ref).max())

    print("KERNEL_OK")
</pallas_src>

<mosaic_0001>
module attributes {stable_mosaic.version = 11 : i64} {
  func.func @seq2seq_kernel(%arg0: i32, %arg1: memref<6xi32, #tpu.memory_space<smem>>, %arg2: memref<6xi32, #tpu.memory_space<smem>>, %arg3: memref<1x128xf32, #tpu.memory_space<vmem>>, %arg4: memref<128x384xbf16, #tpu.memory_space<vmem>>, %arg5: memref<128x384xbf16, #tpu.memory_space<vmem>>, %arg6: memref<1x384xf32, #tpu.memory_space<vmem>>, %arg7: memref<128x128xbf16, #tpu.memory_space<vmem>>, %arg8: memref<1x128xf32, #tpu.memory_space<vmem>>, %arg9: memref<6x1x128xf32, #tpu.memory_space<vmem>>) attributes {dimension_semantics = [#tpu.dimension_semantics<arbitrary>], iteration_bounds = array<i64: 1>, scalar_prefetch = 2 : i64, scratch_operands = 0 : i64, tpu.core_type = #tpu.core_type<tc>, window_params = [{pipeline_mode = #tpu.pipeline_mode<synchronous>, transform_indices = @transform_0, window_bounds = array<i64: 1, 128>}, {pipeline_mode = #tpu.pipeline_mode<synchronous>, transform_indices = @transform_1, window_bounds = array<i64: 128, 384>}, {pipeline_mode = #tpu.pipeline_mode<synchronous>, transform_indices = @transform_2, window_bounds = array<i64: 128, 384>}, {pipeline_mode = #tpu.pipeline_mode<synchronous>, transform_indices = @transform_3, window_bounds = array<i64: 1, 384>}, {pipeline_mode = #tpu.pipeline_mode<synchronous>, transform_indices = @transform_4, window_bounds = array<i64: 128, 128>}, {pipeline_mode = #tpu.pipeline_mode<synchronous>, transform_indices = @transform_5, window_bounds = array<i64: 1, 128>}, {pipeline_mode = #tpu.pipeline_mode<synchronous>, transform_indices = @transform_6, window_bounds = array<i64: 6, 1, 128>}]} {
    %0 = tpu.iota {dimensions = array<i32: 1>} : vector<1x128xi32>
    %c0 = arith.constant 0 : index
    %c0_0 = arith.constant 0 : index
    %1 = vector.load %arg3[%c0, %c0_0] : memref<1x128xf32, #tpu.memory_space<vmem>>, vector<1x128xf32>
    %c0_i32 = arith.constant 0 : i32
    %2 = vector.broadcast %c0_i32 : i32 to vector<1x128xi32>
    %3 = arith.cmpi eq, %0, %2 : vector<1x128xi32>
    %4 = arith.extui %3 : vector<1x128xi1> to vector<1x128xi32>
    %5 = arith.sitofp %4 : vector<1x128xi32> to vector<1x128xf32>
    %6 = arith.truncf %5 : vector<1x128xf32> to vector<1x128xbf16>
    %cst = arith.constant 0.000000e+00 : f32
    %7 = vector.broadcast %cst : f32 to vector<1x1xf32>
    %c0_1 = arith.constant 0 : index
    %c0_2 = arith.constant 0 : index
    %8 = vector.load %arg4[%c0_1, %c0_2] : memref<128x384xbf16, #tpu.memory_space<vmem>>, vector<128x384xbf16>
    %cst_3 = arith.constant dense<0.000000e+00> : vector<1x384xf32>
    %9 = tpu.matmul %6, %8, %cst_3 {dimension_numbers = #tpu.dot_dimension_numbers<[1], [0], [0], [1], [0, 0, 1, 1], [], []>} : vector<1x128xbf16>, vector<128x384xbf16>, vector<1x384xf32> -> vector<1x384xf32>
    %10 = arith.truncf %1 : vector<1x128xf32> to vector<1x128xbf16>
    %c0_4 = arith.constant 0 : index
    %c0_5 = arith.constant 0 : index
    %11 = vector.load %arg5[%c0_4, %c0_5] : memref<128x384xbf16, #tpu.memory_space<vmem>>, vector<128x384xbf16>
    %cst_6 = arith.constant dense<0.000000e+00> : vector<1x384xf32>
    %12 = tpu.matmul %10, %11, %cst_6 {dimension_numbers = #tpu.dot_dimension_numbers<[1], [0], [0], [1], [0, 0, 1, 1], [], []>} : vector<1x128xbf16>, vector<128x384xbf16>, vector<1x384xf32> -> vector<1x384xf32>
    %c0_7 = arith.constant 0 : index
    %c0_8 = arith.constant 0 : index
    %13 = vector.load %arg6[%c0_7, %c0_8] : memref<1x384xf32, #tpu.memory_space<vmem>>, vector<1x384xf32>
    %14 = arith.addf %12, %13 : vector<1x384xf32>
    %15 = vector.extract_strided_slice %9 {offsets = [0, 0], sizes = [1, 128], strides = [1, 1]} : vector<1x384xf32> to vector<1x128xf32>
    %16 = vector.extract_strided_slice %9 {offsets = [0, 128], sizes = [1, 128], strides = [1, 1]} : vector<1x384xf32> to vector<1x128xf32>
    %17 = vector.extract_strided_slice %9 {offsets = [0, 256], sizes = [1, 128], strides = [1, 1]} : vector<1x384xf32> to vector<1x128xf32>
    %18 = vector.extract_strided_slice %14 {offsets = [0, 0], sizes = [1, 128], strides = [1, 1]} : vector<1x384xf32> to vector<1x128xf32>
    %19 = vector.extract_strided_slice %14 {offsets = [0, 128], sizes = [1, 128], strides = [1, 1]} : vector<1x384xf32> to vector<1x128xf32>
    %20 = vector.extract_strided_slice %14 {offsets = [0, 256], sizes = [1, 128], strides = [1, 1]} : vector<1x384xf32> to vector<1x128xf32>
    %21 = arith.addf %15, %18 : vector<1x128xf32>
    %22 = arith.negf %21 : vector<1x128xf32>
    %23 = math.exp %22 : vector<1x128xf32>
    %cst_9 = arith.constant 1.000000e+00 : f32
    %24 = vector.broadcast %cst_9 : f32 to vector<1x128xf32>
    %25 = arith.addf %24, %23 : vector<1x128xf32>
    %26 = arith.divf %24, %25 : vector<1x128xf32>
    %27 = arith.addf %16, %19 : vector<1x128xf32>
    %28 = arith.negf %27 : vector<1x128xf32>
    %29 = math.exp %28 : vector<1x128xf32>
    %cst_10 = arith.constant 1.000000e+00 : f32
    %30 = vector.broadcast %cst_10 : f32 to vector<1x128xf32>
    %31 = arith.addf %30, %29 : vector<1x128xf32>
    %32 = arith.divf %30, %31 : vector<1x128xf32>
    %33 = arith.mulf %26, %20 : vector<1x128xf32>
    %34 = arith.addf %17, %33 : vector<1x128xf32>
    %35 = math.tanh %34 : vector<1x128xf32>
    %cst_11 = arith.constant 1.000000e+00 : f32
    %36 = vector.broadcast %cst_11 : f32 to vector<1x128xf32>
    %37 = arith.subf %36, %32 : vector<1x128xf32>
    %38 = arith.mulf %37, %35 : vector<1x128xf32>
    %39 = arith.mulf %32, %1 : vector<1x128xf32>
    %40 = arith.addf %38, %39 : vector<1x128xf32>
    %41 = arith.truncf %40 : vector<1x128xf32> to vector<1x128xbf16>
    %c0_12 = arith.constant 0 : index
    %c0_13 = arith.constant 0 : index
    %42 = vector.load %arg7[%c0_12, %c0_13] : memref<128x128xbf16, #tpu.memory_space<vmem>>, vector<128x128xbf16>
    %cst_14 = arith.constant dense<0.000000e+00> : vector<1x128xf32>
    %43 = tpu.matmul %41, %42, %cst_14 {dimension_numbers = #tpu.dot_dimension_numbers<[1], [0], [0], [1], [0, 0, 1, 1], [], []>} : vector<1x128xbf16>, vector<128x128xbf16>, vector<1x128xf32> -> vector<1x128xf32>
    %c0_15 = arith.constant 0 : index
    %c0_16 = arith.constant 0 : index
    %44 = vector.load %arg8[%c0_15, %c0_16] : memref<1x128xf32, #tpu.memory_space<vmem>>, vector<1x128xf32>
    %45 = arith.addf %43, %44 : vector<1x128xf32>
    %cst_17 = arith.constant dense<0xFF800000> : vector<1xf32>
    %46 = vector.multi_reduction <maximumf>, %45, %cst_17 [1] : vector<1x128xf32> to vector<1xf32>
    %47 = vector.shape_cast %46 : vector<1xf32> to vector<1x1xf32>
    %48 = vector.broadcast %47 : vector<1x1xf32> to vector<1x128xf32>
    %49 = arith.subf %45, %48 : vector<1x128xf32>
    %50 = math.exp %49 : vector<1x128xf32>
    %cst_18 = arith.constant dense<0.000000e+00> : vector<1xf32>
    %51 = vector.multi_reduction <add>, %50, %cst_18 [1] : vector<1x128xf32> to vector<1xf32>
    %52 = vector.shape_cast %51 : vector<1xf32> to vector<1x1xf32>
    %53 = math.log %52 : vector<1x1xf32>
    %54 = vector.broadcast %53 : vector<1x1xf32> to vector<1x128xf32>
    %55 = arith.subf %49, %54 : vector<1x128xf32>
    %cst_19 = arith.constant 1.000000e+00 : f32
    %56 = vector.broadcast %cst_19 : f32 to vector<1x1xf32>
    %57 = arith.subf %56, %7 : vector<1x1xf32>
    %58 = vector.broadcast %57 : vector<1x1xf32> to vector<1x128xf32>
    %59 = arith.mulf %55, %58 : vector<1x128xf32>
    %c0_20 = arith.constant 0 : index
    %c0_21 = arith.constant 0 : index
    %c0_22 = arith.constant 0 : index
    %60 = vector.load %arg9[%c0_20, %c0_21, %c0_22] : memref<6x1x128xf32, #tpu.memory_space<vmem>>, vector<1x1x128xf32>
    %61 = vector.shape_cast %60 : vector<1x1x128xf32> to vector<1x128xf32>
    %62 = vector.shape_cast %59 : vector<1x128xf32> to vector<1x1x128xf32>
    tpu.vector_store %arg9[%c0_20, %c0_21, %c0_22], %62 {strides = array<i32>} : memref<6x1x128xf32, #tpu.memory_space<vmem>>, vector<1x1x128xf32>,
    %63 = vector.broadcast %47 : vector<1x1xf32> to vector<1x128xf32>
    %64 = arith.cmpf oeq, %45, %63 : vector<1x128xf32>
    %c128_i32 = arith.constant 128 : i32
    %65 = vector.broadcast %c128_i32 : i32 to vector<1x128xi32>
    %66 = arith.select %64, %0, %65 : vector<1x128xi1>, vector<1x128xi32>
    %cst_23 = arith.constant dense<2147483647> : vector<1xi32>
    %67 = vector.multi_reduction <minsi>, %66, %cst_23 [1] : vector<1x128xi32> to vector<1xi32>
    %68 = vector.shape_cast %67 : vector<1xi32> to vector<1x1xi32>
    %69 = vector.broadcast %68 : vector<1x1xi32> to vector<1x128xi32>
    %70 = arith.cmpi eq, %0, %69 : vector<1x128xi32>
    %71 = arith.extui %70 : vector<1x128xi1> to vector<1x128xi32>
    %72 = arith.sitofp %71 : vector<1x128xi32> to vector<1x128xf32>
    %c0_24 = arith.constant 0 : index
    %73 = memref.load %arg2[%c0_24] : memref<6xi32, #tpu.memory_space<smem>>
    %74 = vector.broadcast %73 : i32 to vector<1x128xi32>
    %75 = arith.cmpi eq, %0, %74 : vector<1x128xi32>
    %76 = arith.extui %75 : vector<1x128xi1> to vector<1x128xi32>
    %77 = arith.sitofp %76 : vector<1x128xi32> to vector<1x128xf32>
    %c0_25 = arith.constant 0 : index
    %78 = memref.load %arg1[%c0_25] : memref<6xi32, #tpu.memory_space<smem>>
    %c0_i32_26 = arith.constant 0 : i32
    %79 = arith.cmpi sgt, %78, %c0_i32_26 : i32
    %80 = arith.extui %79 : i1 to i32
    %81 = arith.sitofp %80 : i32 to f32
    %82 = vector.broadcast %81 : f32 to vector<1x128xf32>
    %83 = arith.mulf %82, %77 : vector<1x128xf32>
    %cst_27 = arith.constant 1.000000e+00 : f32
    %84 = arith.subf %cst_27, %81 : f32
    %85 = vector.broadcast %84 : f32 to vector<1x128xf32>
    %86 = arith.mulf %85, %72 : vector<1x128xf32>
    %87 = arith.addf %83, %86 : vector<1x128xf32>
    %c1_i32 = arith.constant 1 : i32
    %88 = vector.broadcast %c1_i32 : i32 to vector<1x1xi32>
    %89 = arith.cmpi eq, %68, %88 : vector<1x1xi32>
    %90 = arith.extui %89 : vector<1x1xi1> to vector<1x1xi32>
    %91 = arith.sitofp %90 : vector<1x1xi32> to vector<1x1xf32>
    %cst_28 = arith.constant 1.000000e+00 : f32
    %92 = arith.subf %cst_28, %81 : f32
    %93 = vector.broadcast %92 : f32 to vector<1x1xf32>
    %94 = arith.mulf %93, %91 : vector<1x1xf32>
    %95 = arith.maximumf %7, %94 : vector<1x1xf32>
    %96 = arith.truncf %87 : vector<1x128xf32> to vector<1x128xbf16>
    %c0_29 = arith.constant 0 : index
    %c0_30 = arith.constant 0 : index
    %97 = vector.load %arg4[%c0_29, %c0_30] : memref<128x384xbf16, #tpu.memory_space<vmem>>, vector<128x384xbf16>
    %cst_31 = arith.constant dense<0.000000e+00> : vector<1x384xf32>
    %98 = tpu.matmul %96, %97, %cst_31 {dimension_numbers = #tpu.dot_dimension_numbers<[1], [0], [0], [1], [0, 0, 1, 1], [], []>} : vector<1x128xbf16>, vector<128x384xbf16>, vector<1x384xf32> -> vector<1x384xf32>
    %99 = arith.truncf %40 : vector<1x128xf32> to vector<1x128xbf16>
    %c0_32 = arith.constant 0 : index
    %c0_33 = arith.constant 0 : index
    %100 = vector.load %arg5[%c0_32, %c0_33] : memref<128x384xbf16, #tpu.memory_space<vmem>>, vector<128x384xbf16>
    %cst_34 = arith.constant dense<0.000000e+00> : vector<1x384xf32>
    %101 = tpu.matmul %99, %100, %cst_34 {dimension_numbers = #tpu.dot_dimension_numbers<[1], [0], [0], [1], [0, 0, 1, 1], [], []>} : vector<1x128xbf16>, vector<128x384xbf16>, vector<1x384xf32> -> vector<1x384xf32>
    %c0_35 = arith.constant 0 : index
    %c0_36 = arith.constant 0 : index
    %102 = vector.load %arg6[%c0_35, %c0_36] : memref<1x384xf32, #tpu.memory_space<vmem>>, vector<1x384xf32>
    %103 = arith.addf %101, %102 : vector<1x384xf32>
    %104 = vector.extract_strided_slice %98 {offsets = [0, 0], sizes = [1, 128], strides = [1, 1]} : vector<1x384xf32> to vector<1x128xf32>
    %105 = vector.extract_strided_slice %98 {offsets = [0, 128], sizes = [1, 128], strides = [1, 1]} : vector<1x384xf32> to vector<1x128xf32>
    %106 = vector.extract_strided_slice %98 {offsets = [0, 256], sizes = [1, 128], strides = [1, 1]} : vector<1x384xf32> to vector<1x128xf32>
    %107 = vector.extract_strided_slice %103 {offsets = [0, 0], sizes = [1, 128], strides = [1, 1]} : vector<1x384xf32> to vector<1x128xf32>
    %108 = vector.extract_strided_slice %103 {offsets = [0, 128], sizes = [1, 128], strides = [1, 1]} : vector<1x384xf32> to vector<1x128xf32>
    %109 = vector.extract_strided_slice %103 {offsets = [0, 256], sizes = [1, 128], strides = [1, 1]} : vector<1x384xf32> to vector<1x128xf32>
    %110 = arith.addf %104, %107 : vector<1x128xf32>
    %111 = arith.negf %110 : vector<1x128xf32>
    %112 = math.exp %111 : vector<1x128xf32>
    %cst_37 = arith.constant 1.000000e+00 : f32
    %113 = vector.broadcast %cst_37 : f32 to vector<1x128xf32>
    %114 = arith.addf %113, %112 : vector<1x128xf32>
    %115 = arith.divf %113, %114 : vector<1x128xf32>
    %116 = arith.addf %105, %108 : vector<1x128xf32>
    %117 = arith.negf %116 : vector<1x128xf32>
    %118 = math.exp %117 : vector<1x128xf32>
    %cst_38 = arith.constant 1.000000e+00 : f32
    %119 = vector.broadcast %cst_38 : f32 to vector<1x128xf32>
    %120 = arith.addf %119, %118 : vector<1x128xf32>
    %121 = arith.divf %119, %120 : vector<1x128xf32>
    %122 = arith.mulf %115, %109 : vector<1x128xf32>
    %123 = arith.addf %106, %122 : vector<1x128xf32>
    %124 = math.tanh %123 : vector<1x128xf32>
    %cst_39 = arith.constant 1.000000e+00 : f32
    %125 = vector.broadcast %cst_39 : f32 to vector<1x128xf32>
    %126 = arith.subf %125, %121 : vector<1x128xf32>
    %127 = arith.mulf %126, %124 : vector<1x128xf32>
    %128 = arith.mulf %121, %40 : vector<1x128xf32>
    %129 = arith.addf %127, %128 : vector<1x128xf32>
    %130 = arith.truncf %129 : vector<1x128xf32> to vector<1x128xbf16>
    %c0_40 = arith.constant 0 : index
    %c0_41 = arith.constant 0 : index
    %131 = vector.load %arg7[%c0_40, %c0_41] : memref<128x128xbf16, #tpu.memory_space<vmem>>, vector<128x128xbf16>
    %cst_42 = arith.constant dense<0.000000e+00> : vector<1x128xf32>
    %132 = tpu.matmul %130, %131, %cst_42 {dimension_numbers = #tpu.dot_dimension_numbers<[1], [0], [0], [1], [0, 0, 1, 1], [], []>} : vector<1x128xbf16>, vector<128x128xbf16>, vector<1x128xf32> -> vector<1x128xf32>
    %c0_43 = arith.constant 0 : index
    %c0_44 = arith.constant 0 : index
    %133 = vector.load %arg8[%c0_43, %c0_44] : memref<1x128xf32, #tpu.memory_space<vmem>>, vector<1x128xf32>
    %134 = arith.addf %132, %133 : vector<1x128xf32>
    %cst_45 = arith.constant dense<0xFF800000> : vector<1xf32>
    %135 = vector.multi_reduction <maximumf>, %134, %cst_45 [1] : vector<1x128xf32> to vector<1xf32>
    %136 = vector.shape_cast %135 : vector<1xf32> to vector<1x1xf32>
    %137 = vector.broadcast %136 : vector<1x1xf32> to vector<1x128xf32>
    %138 = arith.subf %134, %137 : vector<1x128xf32>
    %139 = math.exp %138 : vector<1x128xf32>
    %cst_46 = arith.constant dense<0.000000e+00> : vector<1xf32>
    %140 = vector.multi_reduction <add>, %139, %cst_46 [1] : vector<1x128xf32> to vector<1xf32>
    %141 = vector.shape_cast %140 : vector<1xf32> to vector<1x1xf32>
    %142 = math.log %141 : vector<1x1xf32>
    %143 = vector.broadcast %142 : vector<1x1xf32> to vector<1x128xf32>
    %144 = arith.subf %138, %143 : vector<1x128xf32>
    %cst_47 = arith.constant 1.000000e+00 : f32
    %145 = vector.broadcast %cst_47 : f32 to vector<1x1xf32>
    %146 = arith.subf %145, %95 : vector<1x1xf32>
    %147 = vector.broadcast %146 : vector<1x1xf32> to vector<1x128xf32>
    %148 = arith.mulf %144, %147 : vector<1x128xf32>
    %c1 = arith.constant 1 : index
    %c0_48 = arith.constant 0 : index
    %c0_49 = arith.constant 0 : index
    %149 = vector.load %arg9[%c1, %c0_48, %c0_49] : memref<6x1x128xf32, #tpu.memory_space<vmem>>, vector<1x1x128xf32>
    %150 = vector.shape_cast %149 : vector<1x1x128xf32> to vector<1x128xf32>
    %151 = vector.shape_cast %148 : vector<1x128xf32> to vector<1x1x128xf32>
    tpu.vector_store %arg9[%c1, %c0_48, %c0_49], %151 {strides = array<i32>} : memref<6x1x128xf32, #tpu.memory_space<vmem>>, vector<1x1x128xf32>,
    %152 = vector.broadcast %136 : vector<1x1xf32> to vector<1x128xf32>
    %153 = arith.cmpf oeq, %134, %152 : vector<1x128xf32>
    %c128_i32_50 = arith.constant 128 : i32
    %154 = vector.broadcast %c128_i32_50 : i32 to vector<1x128xi32>
    %155 = arith.select %153, %0, %154 : vector<1x128xi1>, vector<1x128xi32>
    %cst_51 = arith.constant dense<2147483647> : vector<1xi32>
    %156 = vector.multi_reduction <minsi>, %155, %cst_51 [1] : vector<1x128xi32> to vector<1xi32>
    %157 = vector.shape_cast %156 : vector<1xi32> to vector<1x1xi32>
    %158 = vector.broadcast %157 : vector<1x1xi32> to vector<1x128xi32>
    %159 = arith.cmpi eq, %0, %158 : vector<1x128xi32>
    %160 = arith.extui %159 : vector<1x128xi1> to vector<1x128xi32>
    %161 = arith.sitofp %160 : vector<1x128xi32> to vector<1x128xf32>
    %c1_52 = arith.constant 1 : index
    %162 = memref.load %arg2[%c1_52] : memref<6xi32, #tpu.memory_space<smem>>
    %163 = vector.broadcast %162 : i32 to vector<1x128xi32>
    %164 = arith.cmpi eq, %0, %163 : vector<1x128xi32>
    %165 = arith.extui %164 : vector<1x128xi1> to vector<1x128xi32>
    %166 = arith.sitofp %165 : vector<1x128xi32> to vector<1x128xf32>
    %c1_53 = arith.constant 1 : index
    %167 = memref.load %arg1[%c1_53] : memref<6xi32, #tpu.memory_space<smem>>
    %c0_i32_54 = arith.constant 0 : i32
    %168 = arith.cmpi sgt, %167, %c0_i32_54 : i32
    %169 = arith.extui %168 : i1 to i32
    %170 = arith.sitofp %169 : i32 to f32
    %171 = vector.broadcast %170 : f32 to vector<1x128xf32>
    %172 = arith.mulf %171, %166 : vector<1x128xf32>
    %cst_55 = arith.constant 1.000000e+00 : f32
    %173 = arith.subf %cst_55, %170 : f32
    %174 = vector.broadcast %173 : f32 to vector<1x128xf32>
    %175 = arith.mulf %174, %161 : vector<1x128xf32>
    %176 = arith.addf %172, %175 : vector<1x128xf32>
    %c1_i32_56 = arith.constant 1 : i32
    %177 = vector.broadcast %c1_i32_56 : i32 to vector<1x1xi32>
    %178 = arith.cmpi eq, %157, %177 : vector<1x1xi32>
    %179 = arith.extui %178 : vector<1x1xi1> to vector<1x1xi32>
    %180 = arith.sitofp %179 : vector<1x1xi32> to vector<1x1xf32>
    %cst_57 = arith.constant 1.000000e+00 : f32
    %181 = arith.subf %cst_57, %170 : f32
    %182 = vector.broadcast %181 : f32 to vector<1x1xf32>
    %183 = arith.mulf %182, %180 : vector<1x1xf32>
    %184 = arith.maximumf %95, %183 : vector<1x1xf32>
    %185 = arith.truncf %176 : vector<1x128xf32> to vector<1x128xbf16>
    %c0_58 = arith.constant 0 : index
    %c0_59 = arith.constant 0 : index
    %186 = vector.load %arg4[%c0_58, %c0_59] : memref<128x384xbf16, #tpu.memory_space<vmem>>, vector<128x384xbf16>
    %cst_60 = arith.constant dense<0.000000e+00> : vector<1x384xf32>
    %187 = tpu.matmul %185, %186, %cst_60 {dimension_numbers = #tpu.dot_dimension_numbers<[1], [0], [0], [1], [0, 0, 1, 1], [], []>} : vector<1x128xbf16>, vector<128x384xbf16>, vector<1x384xf32> -> vector<1x384xf32>
    %188 = arith.truncf %129 : vector<1x128xf32> to vector<1x128xbf16>
    %c0_61 = arith.constant 0 : index
    %c0_62 = arith.constant 0 : index
    %189 = vector.load %arg5[%c0_61, %c0_62] : memref<128x384xbf16, #tpu.memory_space<vmem>>, vector<128x384xbf16>
    %cst_63 = arith.constant dense<0.000000e+00> : vector<1x384xf32>
    %190 = tpu.matmul %188, %189, %cst_63 {dimension_numbers = #tpu.dot_dimension_numbers<[1], [0], [0], [1], [0, 0, 1, 1], [], []>} : vector<1x128xbf16>, vector<128x384xbf16>, vector<1x384xf32> -> vector<1x384xf32>
    %c0_64 = arith.constant 0 : index
    %c0_65 = arith.constant 0 : index
    %191 = vector.load %arg6[%c0_64, %c0_65] : memref<1x384xf32, #tpu.memory_space<vmem>>, vector<1x384xf32>
    %192 = arith.addf %190, %191 : vector<1x384xf32>
    %193 = vector.extract_strided_slice %187 {offsets = [0, 0], sizes = [1, 128], strides = [1, 1]} : vector<1x384xf32> to vector<1x128xf32>
    %194 = vector.extract_strided_slice %187 {offsets = [0, 128], sizes = [1, 128], strides = [1, 1]} : vector<1x384xf32> to vector<1x128xf32>
    %195 = vector.extract_strided_slice %187 {offsets = [0, 256], sizes = [1, 128], strides = [1, 1]} : vector<1x384xf32> to vector<1x128xf32>
    %196 = vector.extract_strided_slice %192 {offsets = [0, 0], sizes = [1, 128], strides = [1, 1]} : vector<1x384xf32> to vector<1x128xf32>
    %197 = vector.extract_strided_slice %192 {offsets = [0, 128], sizes = [1, 128], strides = [1, 1]} : vector<1x384xf32> to vector<1x128xf32>
    %198 = vector.extract_strided_slice %192 {offsets = [0, 256], sizes = [1, 128], strides = [1, 1]} : vector<1x384xf32> to vector<1x128xf32>
    %199 = arith.addf %193, %196 : vector<1x128xf32>
    %200 = arith.negf %199 : vector<1x128xf32>
    %201 = math.exp %200 : vector<1x128xf32>
    %cst_66 = arith.constant 1.000000e+00 : f32
    %202 = vector.broadcast %cst_66 : f32 to vector<1x128xf32>
    %203 = arith.addf %202, %201 : vector<1x128xf32>
    %204 = arith.divf %202, %203 : vector<1x128xf32>
    %205 = arith.addf %194, %197 : vector<1x128xf32>
    %206 = arith.negf %205 : vector<1x128xf32>
    %207 = math.exp %206 : vector<1x128xf32>
    %cst_67 = arith.constant 1.000000e+00 : f32
    %208 = vector.broadcast %cst_67 : f32 to vector<1x128xf32>
    %209 = arith.addf %208, %207 : vector<1x128xf32>
    %210 = arith.divf %208, %209 : vector<1x128xf32>
    %211 = arith.mulf %204, %198 : vector<1x128xf32>
    %212 = arith.addf %195, %211 : vector<1x128xf32>
    %213 = math.tanh %212 : vector<1x128xf32>
    %cst_68 = arith.constant 1.000000e+00 : f32
    %214 = vector.broadcast %cst_68 : f32 to vector<1x128xf32>
    %215 = arith.subf %214, %210 : vector<1x128xf32>
    %216 = arith.mulf %215, %213 : vector<1x128xf32>
    %217 = arith.mulf %210, %129 : vector<1x128xf32>
    %218 = arith.addf %216, %217 : vector<1x128xf32>
    %219 = arith.truncf %218 : vector<1x128xf32> to vector<1x128xbf16>
    %c0_69 = arith.constant 0 : index
    %c0_70 = arith.constant 0 : index
    %220 = vector.load %arg7[%c0_69, %c0_70] : memref<128x128xbf16, #tpu.memory_space<vmem>>, vector<128x128xbf16>
    %cst_71 = arith.constant dense<0.000000e+00> : vector<1x128xf32>
    %221 = tpu.matmul %219, %220, %cst_71 {dimension_numbers = #tpu.dot_dimension_numbers<[1], [0], [0], [1], [0, 0, 1, 1], [], []>} : vector<1x128xbf16>, vector<128x128xbf16>, vector<1x128xf32> -> vector<1x128xf32>
    %c0_72 = arith.constant 0 : index
    %c0_73 = arith.constant 0 : index
    %222 = vector.load %arg8[%c0_72, %c0_73] : memref<1x128xf32, #tpu.memory_space<vmem>>, vector<1x128xf32>
    %223 = arith.addf %221, %222 : vector<1x128xf32>
    %cst_74 = arith.constant dense<0xFF800000> : vector<1xf32>
    %224 = vector.multi_reduction <maximumf>, %223, %cst_74 [1] : vector<1x128xf32> to vector<1xf32>
    %225 = vector.shape_cast %224 : vector<1xf32> to vector<1x1xf32>
    %226 = vector.broadcast %225 : vector<1x1xf32> to vector<1x128xf32>
    %227 = arith.subf %223, %226 : vector<1x128xf32>
    %228 = math.exp %227 : vector<1x128xf32>
    %cst_75 = arith.constant dense<0.000000e+00> : vector<1xf32>
    %229 = vector.multi_reduction <add>, %228, %cst_75 [1] : vector<1x128xf32> to vector<1xf32>
    %230 = vector.shape_cast %229 : vector<1xf32> to vector<1x1xf32>
    %231 = math.log %230 : vector<1x1xf32>
    %232 = vector.broadcast %231 : vector<1x1xf32> to vector<1x128xf32>
    %233 = arith.subf %227, %232 : vector<1x128xf32>
    %cst_76 = arith.constant 1.000000e+00 : f32
    %234 = vector.broadcast %cst_76 : f32 to vector<1x1xf32>
    %235 = arith.subf %234, %184 : vector<1x1xf32>
    %236 = vector.broadcast %235 : vector<1x1xf32> to vector<1x128xf32>
    %237 = arith.mulf %233, %236 : vector<1x128xf32>
    %c2 = arith.constant 2 : index
    %c0_77 = arith.constant 0 : index
    %c0_78 = arith.constant 0 : index
    %238 = vector.load %arg9[%c2, %c0_77, %c0_78] : memref<6x1x128xf32, #tpu.memory_space<vmem>>, vector<1x1x128xf32>
    %239 = vector.shape_cast %238 : vector<1x1x128xf32> to vector<1x128xf32>
    %240 = vector.shape_cast %237 : vector<1x128xf32> to vector<1x1x128xf32>
    tpu.vector_store %arg9[%c2, %c0_77, %c0_78], %240 {strides = array<i32>} : memref<6x1x128xf32, #tpu.memory_space<vmem>>, vector<1x1x128xf32>,
    %241 = vector.broadcast %225 : vector<1x1xf32> to vector<1x128xf32>
    %242 = arith.cmpf oeq, %223, %241 : vector<1x128xf32>
    %c128_i32_79 = arith.constant 128 : i32
    %243 = vector.broadcast %c128_i32_79 : i32 to vector<1x128xi32>
    %244 = arith.select %242, %0, %243 : vector<1x128xi1>, vector<1x128xi32>
    %cst_80 = arith.constant dense<2147483647> : vector<1xi32>
    %245 = vector.multi_reduction <minsi>, %244, %cst_80 [1] : vector<1x128xi32> to vector<1xi32>
    %246 = vector.shape_cast %245 : vector<1xi32> to vector<1x1xi32>
    %247 = vector.broadcast %246 : vector<1x1xi32> to vector<1x128xi32>
    %248 = arith.cmpi eq, %0, %247 : vector<1x128xi32>
    %249 = arith.extui %248 : vector<1x128xi1> to vector<1x128xi32>
    %250 = arith.sitofp %249 : vector<1x128xi32> to vector<1x128xf32>
    %c2_81 = arith.constant 2 : index
    %251 = memref.load %arg2[%c2_81] : memref<6xi32, #tpu.memory_space<smem>>
    %252 = vector.broadcast %251 : i32 to vector<1x128xi32>
    %253 = arith.cmpi eq, %0, %252 : vector<1x128xi32>
    %254 = arith.extui %253 : vector<1x128xi1> to vector<1x128xi32>
    %255 = arith.sitofp %254 : vector<1x128xi32> to vector<1x128xf32>
    %c2_82 = arith.constant 2 : index
    %256 = memref.load %arg1[%c2_82] : memref<6xi32, #tpu.memory_space<smem>>
    %c0_i32_83 = arith.constant 0 : i32
    %257 = arith.cmpi sgt, %256, %c0_i32_83 : i32
    %258 = arith.extui %257 : i1 to i32
    %259 = arith.sitofp %258 : i32 to f32
    %260 = vector.broadcast %259 : f32 to vector<1x128xf32>
    %261 = arith.mulf %260, %255 : vector<1x128xf32>
    %cst_84 = arith.constant 1.000000e+00 : f32
    %262 = arith.subf %cst_84, %259 : f32
    %263 = vector.broadcast %262 : f32 to vector<1x128xf32>
    %264 = arith.mulf %263, %250 : vector<1x128xf32>
    %265 = arith.addf %261, %264 : vector<1x128xf32>
    %c1_i32_85 = arith.constant 1 : i32
    %266 = vector.broadcast %c1_i32_85 : i32 to vector<1x1xi32>
    %267 = arith.cmpi eq, %246, %266 : vector<1x1xi32>
    %268 = arith.extui %267 : vector<1x1xi1> to vector<1x1xi32>
    %269 = arith.sitofp %268 : vector<1x1xi32> to vector<1x1xf32>
    %cst_86 = arith.constant 1.000000e+00 : f32
    %270 = arith.subf %cst_86, %259 : f32
    %271 = vector.broadcast %270 : f32 to vector<1x1xf32>
    %272 = arith.mulf %271, %269 : vector<1x1xf32>
    %273 = arith.maximumf %184, %272 : vector<1x1xf32>
    %274 = arith.truncf %265 : vector<1x128xf32> to vector<1x128xbf16>
    %c0_87 = arith.constant 0 : index
    %c0_88 = arith.constant 0 : index
    %275 = vector.load %arg4[%c0_87, %c0_88] : memref<128x384xbf16, #tpu.memory_space<vmem>>, vector<128x384xbf16>
    %cst_89 = arith.constant dense<0.000000e+00> : vector<1x384xf32>
    %276 = tpu.matmul %274, %275, %cst_89 {dimension_numbers = #tpu.dot_dimension_numbers<[1], [0], [0], [1], [0, 0, 1, 1], [], []>} : vector<1x128xbf16>, vector<128x384xbf16>, vector<1x384xf32> -> vector<1x384xf32>
    %277 = arith.truncf %218 : vector<1x128xf32> to vector<1x128xbf16>
    %c0_90 = arith.constant 0 : index
    %c0_91 = arith.constant 0 : index
    %278 = vector.load %arg5[%c0_90, %c0_91] : memref<128x384xbf16, #tpu.memory_space<vmem>>, vector<128x384xbf16>
    %cst_92 = arith.constant dense<0.000000e+00> : vector<1x384xf32>
    %279 = tpu.matmul %277, %278, %cst_92 {dimension_numbers = #tpu.dot_dimension_numbers<[1], [0], [0], [1], [0, 0, 1, 1], [], []>} : vector<1x128xbf16>, vector<128x384xbf16>, vector<1x384xf32> -> vector<1x384xf32>
    %c0_93 = arith.constant 0 : index
    %c0_94 = arith.constant 0 : index
    %280 = vector.load %arg6[%c0_93, %c0_94] : memref<1x384xf32, #tpu.memory_space<vmem>>, vector<1x384xf32>
    %281 = arith.addf %279, %280 : vector<1x384xf32>
    %282 = vector.extract_strided_slice %276 {offsets = [0, 0], sizes = [1, 128], strides = [1, 1]} : vector<1x384xf32> to vector<1x128xf32>
    %283 = vector.extract_strided_slice %276 {offsets = [0, 128], sizes = [1, 128], strides = [1, 1]} : vector<1x384xf32> to vector<1x128xf32>
    %284 = vector.extract_strided_slice %276 {offsets = [0, 256], sizes = [1, 128], strides = [1, 1]} : vector<1x384xf32> to vector<1x128xf32>
    %285 = vector.extract_strided_slice %281 {offsets = [0, 0], sizes = [1, 128], strides = [1, 1]} : vector<1x384xf32> to vector<1x128xf32>
    %286 = vector.extract_strided_slice %281 {offsets = [0, 128], sizes = [1, 128], strides = [1, 1]} : vector<1x384xf32> to vector<1x128xf32>
    %287 = vector.extract_strided_slice %281 {offsets = [0, 256], sizes = [1, 128], strides = [1, 1]} : vector<1x384xf32> to vector<1x128xf32>
    %288 = arith.addf %282, %285 : vector<1x128xf32>
    %289 = arith.negf %288 : vector<1x128xf32>
    %290 = math.exp %289 : vector<1x128xf32>
    %cst_95 = arith.constant 1.000000e+00 : f32
    %291 = vector.broadcast %cst_95 : f32 to vector<1x128xf32>
    %292 = arith.addf %291, %290 : vector<1x128xf32>
    %293 = arith.divf %291, %292 : vector<1x128xf32>
    %294 = arith.addf %283, %286 : vector<1x128xf32>
    %295 = arith.negf %294 : vector<1x128xf32>
    %296 = math.exp %295 : vector<1x128xf32>
    %cst_96 = arith.constant 1.000000e+00 : f32
    %297 = vector.broadcast %cst_96 : f32 to vector<1x128xf32>
    %298 = arith.addf %297, %296 : vector<1x128xf32>
    %299 = arith.divf %297, %298 : vector<1x128xf32>
    %300 = arith.mulf %293, %287 : vector<1x128xf32>
    %301 = arith.addf %284, %300 : vector<1x128xf32>
    %302 = math.tanh %301 : vector<1x128xf32>
    %cst_97 = arith.constant 1.000000e+00 : f32
    %303 = vector.broadcast %cst_97 : f32 to vector<1x128xf32>
    %304 = arith.subf %303, %299 : vector<1x128xf32>
    %305 = arith.mulf %304, %302 : vector<1x128xf32>
    %306 = arith.mulf %299, %218 : vector<1x128xf32>
    %307 = arith.addf %305, %306 : vector<1x128xf32>
    %308 = arith.truncf %307 : vector<1x128xf32> to vector<1x128xbf16>
    %c0_98 = arith.constant 0 : index
    %c0_99 = arith.constant 0 : index
    %309 = vector.load %arg7[%c0_98, %c0_99] : memref<128x128xbf16, #tpu.memory_space<vmem>>, vector<128x128xbf16>
    %cst_100 = arith.constant dense<0.000000e+00> : vector<1x128xf32>
    %310 = tpu.matmul %308, %309, %cst_100 {dimension_numbers = #tpu.dot_dimension_numbers<[1], [0], [0], [1], [0, 0, 1, 1], [], []>} : vector<1x128xbf16>, vector<128x128xbf16>, vector<1x128xf32> -> vector<1x128xf32>
    %c0_101 = arith.constant 0 : index
    %c0_102 = arith.constant 0 : index
    %311 = vector.load %arg8[%c0_101, %c0_102] : memref<1x128xf32, #tpu.memory_space<vmem>>, vector<1x128xf32>
    %312 = arith.addf %310, %311 : vector<1x128xf32>
    %cst_103 = arith.constant dense<0xFF800000> : vector<1xf32>
    %313 = vector.multi_reduction <maximumf>, %312, %cst_103 [1] : vector<1x128xf32> to vector<1xf32>
    %314 = vector.shape_cast %313 : vector<1xf32> to vector<1x1xf32>
    %315 = vector.broadcast %314 : vector<1x1xf32> to vector<1x128xf32>
    %316 = arith.subf %312, %315 : vector<1x128xf32>
    %317 = math.exp %316 : vector<1x128xf32>
    %cst_104 = arith.constant dense<0.000000e+00> : vector<1xf32>
    %318 = vector.multi_reduction <add>, %317, %cst_104 [1] : vector<1x128xf32> to vector<1xf32>
    %319 = vector.shape_cast %318 : vector<1xf32> to vector<1x1xf32>
    %320 = math.log %319 : vector<1x1xf32>
    %321 = vector.broadcast %320 : vector<1x1xf32> to vector<1x128xf32>
    %322 = arith.subf %316, %321 : vector<1x128xf32>
    %cst_105 = arith.constant 1.000000e+00 : f32
    %323 = vector.broadcast %cst_105 : f32 to vector<1x1xf32>
    %324 = arith.subf %323, %273 : vector<1x1xf32>
    %325 = vector.broadcast %324 : vector<1x1xf32> to vector<1x128xf32>
    %326 = arith.mulf %322, %325 : vector<1x128xf32>
    %c3 = arith.constant 3 : index
    %c0_106 = arith.constant 0 : index
    %c0_107 = arith.constant 0 : index
    %327 = vector.load %arg9[%c3, %c0_106, %c0_107] : memref<6x1x128xf32, #tpu.memory_space<vmem>>, vector<1x1x128xf32>
    %328 = vector.shape_cast %327 : vector<1x1x128xf32> to vector<1x128xf32>
    %329 = vector.shape_cast %326 : vector<1x128xf32> to vector<1x1x128xf32>
    tpu.vector_store %arg9[%c3, %c0_106, %c0_107], %329 {strides = array<i32>} : memref<6x1x128xf32, #tpu.memory_space<vmem>>, vector<1x1x128xf32>,
    %330 = vector.broadcast %314 : vector<1x1xf32> to vector<1x128xf32>
    %331 = arith.cmpf oeq, %312, %330 : vector<1x128xf32>
    %c128_i32_108 = arith.constant 128 : i32
    %332 = vector.broadcast %c128_i32_108 : i32 to vector<1x128xi32>
    %333 = arith.select %331, %0, %332 : vector<1x128xi1>, vector<1x128xi32>
    %cst_109 = arith.constant dense<2147483647> : vector<1xi32>
    %334 = vector.multi_reduction <minsi>, %333, %cst_109 [1] : vector<1x128xi32> to vector<1xi32>
    %335 = vector.shape_cast %334 : vector<1xi32> to vector<1x1xi32>
    %336 = vector.broadcast %335 : vector<1x1xi32> to vector<1x128xi32>
    %337 = arith.cmpi eq, %0, %336 : vector<1x128xi32>
    %338 = arith.extui %337 : vector<1x128xi1> to vector<1x128xi32>
    %339 = arith.sitofp %338 : vector<1x128xi32> to vector<1x128xf32>
    %c3_110 = arith.constant 3 : index
    %340 = memref.load %arg2[%c3_110] : memref<6xi32, #tpu.memory_space<smem>>
    %341 = vector.broadcast %340 : i32 to vector<1x128xi32>
    %342 = arith.cmpi eq, %0, %341 : vector<1x128xi32>
    %343 = arith.extui %342 : vector<1x128xi1> to vector<1x128xi32>
    %344 = arith.sitofp %343 : vector<1x128xi32> to vector<1x128xf32>
    %c3_111 = arith.constant 3 : index
    %345 = memref.load %arg1[%c3_111] : memref<6xi32, #tpu.memory_space<smem>>
    %c0_i32_112 = arith.constant 0 : i32
    %346 = arith.cmpi sgt, %345, %c0_i32_112 : i32
    %347 = arith.extui %346 : i1 to i32
    %348 = arith.sitofp %347 : i32 to f32
    %349 = vector.broadcast %348 : f32 to vector<1x128xf32>
    %350 = arith.mulf %349, %344 : vector<1x128xf32>
    %cst_113 = arith.constant 1.000000e+00 : f32
    %351 = arith.subf %cst_113, %348 : f32
    %352 = vector.broadcast %351 : f32 to vector<1x128xf32>
    %353 = arith.mulf %352, %339 : vector<1x128xf32>
    %354 = arith.addf %350, %353 : vector<1x128xf32>
    %c1_i32_114 = arith.constant 1 : i32
    %355 = vector.broadcast %c1_i32_114 : i32 to vector<1x1xi32>
    %356 = arith.cmpi eq, %335, %355 : vector<1x1xi32>
    %357 = arith.extui %356 : vector<1x1xi1> to vector<1x1xi32>
    %358 = arith.sitofp %357 : vector<1x1xi32> to vector<1x1xf32>
    %cst_115 = arith.constant 1.000000e+00 : f32
    %359 = arith.subf %cst_115, %348 : f32
    %360 = vector.broadcast %359 : f32 to vector<1x1xf32>
    %361 = arith.mulf %360, %358 : vector<1x1xf32>
    %362 = arith.maximumf %273, %361 : vector<1x1xf32>
    %363 = arith.truncf %354 : vector<1x128xf32> to vector<1x128xbf16>
    %c0_116 = arith.constant 0 : index
    %c0_117 = arith.constant 0 : index
    %364 = vector.load %arg4[%c0_116, %c0_117] : memref<128x384xbf16, #tpu.memory_space<vmem>>, vector<128x384xbf16>
    %cst_118 = arith.constant dense<0.000000e+00> : vector<1x384xf32>
    %365 = tpu.matmul %363, %364, %cst_118 {dimension_numbers = #tpu.dot_dimension_numbers<[1], [0], [0], [1], [0, 0, 1, 1], [], []>} : vector<1x128xbf16>, vector<128x384xbf16>, vector<1x384xf32> -> vector<1x384xf32>
    %366 = arith.truncf %307 : vector<1x128xf32> to vector<1x128xbf16>
    %c0_119 = arith.constant 0 : index
    %c0_120 = arith.constant 0 : index
    %367 = vector.load %arg5[%c0_119, %c0_120] : memref<128x384xbf16, #tpu.memory_space<vmem>>, vector<128x384xbf16>
    %cst_121 = arith.constant dense<0.000000e+00> : vector<1x384xf32>
    %368 = tpu.matmul %366, %367, %cst_121 {dimension_numbers = #tpu.dot_dimension_numbers<[1], [0], [0], [1], [0, 0, 1, 1], [], []>} : vector<1x128xbf16>, vector<128x384xbf16>, vector<1x384xf32> -> vector<1x384xf32>
    %c0_122 = arith.constant 0 : index
    %c0_123 = arith.constant 0 : index
    %369 = vector.load %arg6[%c0_122, %c0_123] : memref<1x384xf32, #tpu.memory_space<vmem>>, vector<1x384xf32>
    %370 = arith.addf %368, %369 : vector<1x384xf32>
    %371 = vector.extract_strided_slice %365 {offsets = [0, 0], sizes = [1, 128], strides = [1, 1]} : vector<1x384xf32> to vector<1x128xf32>
    %372 = vector.extract_strided_slice %365 {offsets = [0, 128], sizes = [1, 128], strides = [1, 1]} : vector<1x384xf32> to vector<1x128xf32>
    %373 = vector.extract_strided_slice %365 {offsets = [0, 256], sizes = [1, 128], strides = [1, 1]} : vector<1x384xf32> to vector<1x128xf32>
    %374 = vector.extract_strided_slice %370 {offsets = [0, 0], sizes = [1, 128], strides = [1, 1]} : vector<1x384xf32> to vector<1x128xf32>
    %375 = vector.extract_strided_slice %370 {offsets = [0, 128], sizes = [1, 128], strides = [1, 1]} : vector<1x384xf32> to vector<1x128xf32>
    %376 = vector.extract_strided_slice %370 {offsets = [0, 256], sizes = [1, 128], strides = [1, 1]} : vector<1x384xf32> to vector<1x128xf32>
    %377 = arith.addf %371, %374 : vector<1x128xf32>
    %378 = arith.negf %377 : vector<1x128xf32>
    %379 = math.exp %378 : vector<1x128xf32>
    %cst_124 = arith.constant 1.000000e+00 : f32
    %380 = vector.broadcast %cst_124 : f32 to vector<1x128xf32>
    %381 = arith.addf %380, %379 : vector<1x128xf32>
    %382 = arith.divf %380, %381 : vector<1x128xf32>
    %383 = arith.addf %372, %375 : vector<1x128xf32>
    %384 = arith.negf %383 : vector<1x128xf32>
    %385 = math.exp %384 : vector<1x128xf32>
    %cst_125 = arith.constant 1.000000e+00 : f32
    %386 = vector.broadcast %cst_125 : f32 to vector<1x128xf32>
    %387 = arith.addf %386, %385 : vector<1x128xf32>
    %388 = arith.divf %386, %387 : vector<1x128xf32>
    %389 = arith.mulf %382, %376 : vector<1x128xf32>
    %390 = arith.addf %373, %389 : vector<1x128xf32>
    %391 = math.tanh %390 : vector<1x128xf32>
    %cst_126 = arith.constant 1.000000e+00 : f32
    %392 = vector.broadcast %cst_126 : f32 to vector<1x128xf32>
    %393 = arith.subf %392, %388 : vector<1x128xf32>
    %394 = arith.mulf %393, %391 : vector<1x128xf32>
    %395 = arith.mulf %388, %307 : vector<1x128xf32>
    %396 = arith.addf %394, %395 : vector<1x128xf32>
    %397 = arith.truncf %396 : vector<1x128xf32> to vector<1x128xbf16>
    %c0_127 = arith.constant 0 : index
    %c0_128 = arith.constant 0 : index
    %398 = vector.load %arg7[%c0_127, %c0_128] : memref<128x128xbf16, #tpu.memory_space<vmem>>, vector<128x128xbf16>
    %cst_129 = arith.constant dense<0.000000e+00> : vector<1x128xf32>
    %399 = tpu.matmul %397, %398, %cst_129 {dimension_numbers = #tpu.dot_dimension_numbers<[1], [0], [0], [1], [0, 0, 1, 1], [], []>} : vector<1x128xbf16>, vector<128x128xbf16>, vector<1x128xf32> -> vector<1x128xf32>
    %c0_130 = arith.constant 0 : index
    %c0_131 = arith.constant 0 : index
    %400 = vector.load %arg8[%c0_130, %c0_131] : memref<1x128xf32, #tpu.memory_space<vmem>>, vector<1x128xf32>
    %401 = arith.addf %399, %400 : vector<1x128xf32>
    %cst_132 = arith.constant dense<0xFF800000> : vector<1xf32>
    %402 = vector.multi_reduction <maximumf>, %401, %cst_132 [1] : vector<1x128xf32> to vector<1xf32>
    %403 = vector.shape_cast %402 : vector<1xf32> to vector<1x1xf32>
    %404 = vector.broadcast %403 : vector<1x1xf32> to vector<1x128xf32>
    %405 = arith.subf %401, %404 : vector<1x128xf32>
    %406 = math.exp %405 : vector<1x128xf32>
    %cst_133 = arith.constant dense<0.000000e+00> : vector<1xf32>
    %407 = vector.multi_reduction <add>, %406, %cst_133 [1] : vector<1x128xf32> to vector<1xf32>
    %408 = vector.shape_cast %407 : vector<1xf32> to vector<1x1xf32>
    %409 = math.log %408 : vector<1x1xf32>
    %410 = vector.broadcast %409 : vector<1x1xf32> to vector<1x128xf32>
    %411 = arith.subf %405, %410 : vector<1x128xf32>
    %cst_134 = arith.constant 1.000000e+00 : f32
    %412 = vector.broadcast %cst_134 : f32 to vector<1x1xf32>
    %413 = arith.subf %412, %362 : vector<1x1xf32>
    %414 = vector.broadcast %413 : vector<1x1xf32> to vector<1x128xf32>
    %415 = arith.mulf %411, %414 : vector<1x128xf32>
    %c4 = arith.constant 4 : index
    %c0_135 = arith.constant 0 : index
    %c0_136 = arith.constant 0 : index
    %416 = vector.load %arg9[%c4, %c0_135, %c0_136] : memref<6x1x128xf32, #tpu.memory_space<vmem>>, vector<1x1x128xf32>
    %417 = vector.shape_cast %416 : vector<1x1x128xf32> to vector<1x128xf32>
    %418 = vector.shape_cast %415 : vector<1x128xf32> to vector<1x1x128xf32>
    tpu.vector_store %arg9[%c4, %c0_135, %c0_136], %418 {strides = array<i32>} : memref<6x1x128xf32, #tpu.memory_space<vmem>>, vector<1x1x128xf32>,
    %419 = vector.broadcast %403 : vector<1x1xf32> to vector<1x128xf32>
    %420 = arith.cmpf oeq, %401, %419 : vector<1x128xf32>
    %c128_i32_137 = arith.constant 128 : i32
    %421 = vector.broadcast %c128_i32_137 : i32 to vector<1x128xi32>
    %422 = arith.select %420, %0, %421 : vector<1x128xi1>, vector<1x128xi32>
    %cst_138 = arith.constant dense<2147483647> : vector<1xi32>
    %423 = vector.multi_reduction <minsi>, %422, %cst_138 [1] : vector<1x128xi32> to vector<1xi32>
    %424 = vector.shape_cast %423 : vector<1xi32> to vector<1x1xi32>
    %425 = vector.broadcast %424 : vector<1x1xi32> to vector<1x128xi32>
    %426 = arith.cmpi eq, %0, %425 : vector<1x128xi32>
    %427 = arith.extui %426 : vector<1x128xi1> to vector<1x128xi32>
    %428 = arith.sitofp %427 : vector<1x128xi32> to vector<1x128xf32>
    %c4_139 = arith.constant 4 : index
    %429 = memref.load %arg2[%c4_139] : memref<6xi32, #tpu.memory_space<smem>>
    %430 = vector.broadcast %429 : i32 to vector<1x128xi32>
    %431 = arith.cmpi eq, %0, %430 : vector<1x128xi32>
    %432 = arith.extui %431 : vector<1x128xi1> to vector<1x128xi32>
    %433 = arith.sitofp %432 : vector<1x128xi32> to vector<1x128xf32>
    %c4_140 = arith.constant 4 : index
    %434 = memref.load %arg1[%c4_140] : memref<6xi32, #tpu.memory_space<smem>>
    %c0_i32_141 = arith.constant 0 : i32
    %435 = arith.cmpi sgt, %434, %c0_i32_141 : i32
    %436 = arith.extui %435 : i1 to i32
    %437 = arith.sitofp %436 : i32 to f32
    %438 = vector.broadcast %437 : f32 to vector<1x128xf32>
    %439 = arith.mulf %438, %433 : vector<1x128xf32>
    %cst_142 = arith.constant 1.000000e+00 : f32
    %440 = arith.subf %cst_142, %437 : f32
    %441 = vector.broadcast %440 : f32 to vector<1x128xf32>
    %442 = arith.mulf %441, %428 : vector<1x128xf32>
    %443 = arith.addf %439, %442 : vector<1x128xf32>
    %c1_i32_143 = arith.constant 1 : i32
    %444 = vector.broadcast %c1_i32_143 : i32 to vector<1x1xi32>
    %445 = arith.cmpi eq, %424, %444 : vector<1x1xi32>
    %446 = arith.extui %445 : vector<1x1xi1> to vector<1x1xi32>
    %447 = arith.sitofp %446 : vector<1x1xi32> to vector<1x1xf32>
    %cst_144 = arith.constant 1.000000e+00 : f32
    %448 = arith.subf %cst_144, %437 : f32
    %449 = vector.broadcast %448 : f32 to vector<1x1xf32>
    %450 = arith.mulf %449, %447 : vector<1x1xf32>
    %451 = arith.maximumf %362, %450 : vector<1x1xf32>
    %452 = arith.truncf %443 : vector<1x128xf32> to vector<1x128xbf16>
    %c0_145 = arith.constant 0 : index
    %c0_146 = arith.constant 0 : index
    %453 = vector.load %arg4[%c0_145, %c0_146] : memref<128x384xbf16, #tpu.memory_space<vmem>>, vector<128x384xbf16>
    %cst_147 = arith.constant dense<0.000000e+00> : vector<1x384xf32>
    %454 = tpu.matmul %452, %453, %cst_147 {dimension_numbers = #tpu.dot_dimension_numbers<[1], [0], [0], [1], [0, 0, 1, 1], [], []>} : vector<1x128xbf16>, vector<128x384xbf16>, vector<1x384xf32> -> vector<1x384xf32>
    %455 = arith.truncf %396 : vector<1x128xf32> to vector<1x128xbf16>
    %c0_148 = arith.constant 0 : index
    %c0_149 = arith.constant 0 : index
    %456 = vector.load %arg5[%c0_148, %c0_149] : memref<128x384xbf16, #tpu.memory_space<vmem>>, vector<128x384xbf16>
    %cst_150 = arith.constant dense<0.000000e+00> : vector<1x384xf32>
    %457 = tpu.matmul %455, %456, %cst_150 {dimension_numbers = #tpu.dot_dimension_numbers<[1], [0], [0], [1], [0, 0, 1, 1], [], []>} : vector<1x128xbf16>, vector<128x384xbf16>, vector<1x384xf32> -> vector<1x384xf32>
    %c0_151 = arith.constant 0 : index
    %c0_152 = arith.constant 0 : index
    %458 = vector.load %arg6[%c0_151, %c0_152] : memref<1x384xf32, #tpu.memory_space<vmem>>, vector<1x384xf32>
    %459 = arith.addf %457, %458 : vector<1x384xf32>
    %460 = vector.extract_strided_slice %454 {offsets = [0, 0], sizes = [1, 128], strides = [1, 1]} : vector<1x384xf32> to vector<1x128xf32>
    %461 = vector.extract_strided_slice %454 {offsets = [0, 128], sizes = [1, 128], strides = [1, 1]} : vector<1x384xf32> to vector<1x128xf32>
    %462 = vector.extract_strided_slice %454 {offsets = [0, 256], sizes = [1, 128], strides = [1, 1]} : vector<1x384xf32> to vector<1x128xf32>
    %463 = vector.extract_strided_slice %459 {offsets = [0, 0], sizes = [1, 128], strides = [1, 1]} : vector<1x384xf32> to vector<1x128xf32>
    %464 = vector.extract_strided_slice %459 {offsets = [0, 128], sizes = [1, 128], strides = [1, 1]} : vector<1x384xf32> to vector<1x128xf32>
    %465 = vector.extract_strided_slice %459 {offsets = [0, 256], sizes = [1, 128], strides = [1, 1]} : vector<1x384xf32> to vector<1x128xf32>
    %466 = arith.addf %460, %463 : vector<1x128xf32>
    %467 = arith.negf %466 : vector<1x128xf32>
    %468 = math.exp %467 : vector<1x128xf32>
    %cst_153 = arith.constant 1.000000e+00 : f32
    %469 = vector.broadcast %cst_153 : f32 to vector<1x128xf32>
    %470 = arith.addf %469, %468 : vector<1x128xf32>
    %471 = arith.divf %469, %470 : vector<1x128xf32>
    %472 = arith.addf %461, %464 : vector<1x128xf32>
    %473 = arith.negf %472 : vector<1x128xf32>
    %474 = math.exp %473 : vector<1x128xf32>
    %cst_154 = arith.constant 1.000000e+00 : f32
    %475 = vector.broadcast %cst_154 : f32 to vector<1x128xf32>
    %476 = arith.addf %475, %474 : vector<1x128xf32>
    %477 = arith.divf %475, %476 : vector<1x128xf32>
    %478 = arith.mulf %471, %465 : vector<1x128xf32>
    %479 = arith.addf %462, %478 : vector<1x128xf32>
    %480 = math.tanh %479 : vector<1x128xf32>
    %cst_155 = arith.constant 1.000000e+00 : f32
    %481 = vector.broadcast %cst_155 : f32 to vector<1x128xf32>
    %482 = arith.subf %481, %477 : vector<1x128xf32>
    %483 = arith.mulf %482, %480 : vector<1x128xf32>
    %484 = arith.mulf %477, %396 : vector<1x128xf32>
    %485 = arith.addf %483, %484 : vector<1x128xf32>
    %486 = arith.truncf %485 : vector<1x128xf32> to vector<1x128xbf16>
    %c0_156 = arith.constant 0 : index
    %c0_157 = arith.constant 0 : index
    %487 = vector.load %arg7[%c0_156, %c0_157] : memref<128x128xbf16, #tpu.memory_space<vmem>>, vector<128x128xbf16>
    %cst_158 = arith.constant dense<0.000000e+00> : vector<1x128xf32>
    %488 = tpu.matmul %486, %487, %cst_158 {dimension_numbers = #tpu.dot_dimension_numbers<[1], [0], [0], [1], [0, 0, 1, 1], [], []>} : vector<1x128xbf16>, vector<128x128xbf16>, vector<1x128xf32> -> vector<1x128xf32>
    %c0_159 = arith.constant 0 : index
    %c0_160 = arith.constant 0 : index
    %489 = vector.load %arg8[%c0_159, %c0_160] : memref<1x128xf32, #tpu.memory_space<vmem>>, vector<1x128xf32>
    %490 = arith.addf %488, %489 : vector<1x128xf32>
    %cst_161 = arith.constant dense<0xFF800000> : vector<1xf32>
    %491 = vector.multi_reduction <maximumf>, %490, %cst_161 [1] : vector<1x128xf32> to vector<1xf32>
    %492 = vector.shape_cast %491 : vector<1xf32> to vector<1x1xf32>
    %493 = vector.broadcast %492 : vector<1x1xf32> to vector<1x128xf32>
    %494 = arith.subf %490, %493 : vector<1x128xf32>
    %495 = math.exp %494 : vector<1x128xf32>
    %cst_162 = arith.constant dense<0.000000e+00> : vector<1xf32>
    %496 = vector.multi_reduction <add>, %495, %cst_162 [1] : vector<1x128xf32> to vector<1xf32>
    %497 = vector.shape_cast %496 : vector<1xf32> to vector<1x1xf32>
    %498 = math.log %497 : vector<1x1xf32>
    %499 = vector.broadcast %498 : vector<1x1xf32> to vector<1x128xf32>
    %500 = arith.subf %494, %499 : vector<1x128xf32>
    %cst_163 = arith.constant 1.000000e+00 : f32
    %501 = vector.broadcast %cst_163 : f32 to vector<1x1xf32>
    %502 = arith.subf %501, %451 : vector<1x1xf32>
    %503 = vector.broadcast %502 : vector<1x1xf32> to vector<1x128xf32>
    %504 = arith.mulf %500, %503 : vector<1x128xf32>
    %c5 = arith.constant 5 : index
    %c0_164 = arith.constant 0 : index
    %c0_165 = arith.constant 0 : index
    %505 = vector.load %arg9[%c5, %c0_164, %c0_165] : memref<6x1x128xf32, #tpu.memory_space<vmem>>, vector<1x1x128xf32>
    %506 = vector.shape_cast %505 : vector<1x1x128xf32> to vector<1x128xf32>
    %507 = vector.shape_cast %504 : vector<1x128xf32> to vector<1x1x128xf32>
    tpu.vector_store %arg9[%c5, %c0_164, %c0_165], %507 {strides = array<i32>} : memref<6x1x128xf32, #tpu.memory_space<vmem>>, vector<1x1x128xf32>,
    return
  }
  func.func @transform_0(%arg0: i32, %arg1: memref<6xi32, #tpu.memory_space<smem>>, %arg2: memref<6xi32, #tpu.memory_space<smem>>) -> (i32, i32) {
    %c0_i32 = arith.constant 0 : i32
    %c0_i32_0 = arith.constant 0 : i32
    %c0_i32_1 = arith.constant 0 : i32
    return %c0_i32, %c0_i32_0 : i32, i32
  }
  func.func @transform_1(%arg0: i32, %arg1: memref<6xi32, #tpu.memory_space<smem>>, %arg2: memref<6xi32, #tpu.memory_space<smem>>) -> (i32, i32) {
    %c0_i32 = arith.constant 0 : i32
    %c0_i32_0 = arith.constant 0 : i32
    %c0_i32_1 = arith.constant 0 : i32
    return %c0_i32, %c0_i32_0 : i32, i32
  }
  func.func @transform_2(%arg0: i32, %arg1: memref<6xi32, #tpu.memory_space<smem>>, %arg2: memref<6xi32, #tpu.memory_space<smem>>) -> (i32, i32) {
    %c0_i32 = arith.constant 0 : i32
    %c0_i32_0 = arith.constant 0 : i32
    %c0_i32_1 = arith.constant 0 : i32
    return %c0_i32, %c0_i32_0 : i32, i32
  }
  func.func @transform_3(%arg0: i32, %arg1: memref<6xi32, #tpu.memory_space<smem>>, %arg2: memref<6xi32, #tpu.memory_space<smem>>) -> (i32, i32) {
    %c0_i32 = arith.constant 0 : i32
    %c0_i32_0 = arith.constant 0 : i32
    %c0_i32_1 = arith.constant 0 : i32
    return %c0_i32, %c0_i32_0 : i32, i32
  }
  func.func @transform_4(%arg0: i32, %arg1: memref<6xi32, #tpu.memory_space<smem>>, %arg2: memref<6xi32, #tpu.memory_space<smem>>) -> (i32, i32) {
    %c0_i32 = arith.constant 0 : i32
    %c0_i32_0 = arith.constant 0 : i32
    %c0_i32_1 = arith.constant 0 : i32
    return %c0_i32, %c0_i32_0 : i32, i32
  }
  func.func @transform_5(%arg0: i32, %arg1: memref<6xi32, #tpu.memory_space<smem>>, %arg2: memref<6xi32, #tpu.memory_space<smem>>) -> (i32, i32) {
    %c0_i32 = arith.constant 0 : i32
    %c0_i32_0 = arith.constant 0 : i32
    %c0_i32_1 = arith.constant 0 : i32
    return %c0_i32, %c0_i32_0 : i32, i32
  }
  func.func @transform_6(%arg0: i32, %arg1: memref<6xi32, #tpu.memory_space<smem>>, %arg2: memref<6xi32, #tpu.memory_space<smem>>) -> (i32, i32, i32) {
    %c0_i32 = arith.constant 0 : i32
    %c0_i32_0 = arith.constant 0 : i32
    %c0_i32_1 = arith.constant 0 : i32
    %c0_i32_2 = arith.constant 0 : i32
    return %c0_i32, %c0_i32_0, %c0_i32_1 : i32, i32, i32
  }
}

</mosaic_0001>

<bundles_post_ra>
// kernel: tpu_custom_call.1
= control target key start
LH: loop header
LB: loop body
LE: loop exit
PB: predicated region body
PF: predicated region fallthrough
CT: control target
= control target key end

     0   :  { %s6529_s0 = inlined_call_operand.hbm [shape: s32[6], index: 0, kind: input, shape index: {}]   ;;  %s6530_s2 = inlined_call_operand.vmem [shape: f32[1,128], index: 2, kind: input, shape index: {}]   ;;  %s6531_s3 = inlined_call_operand.hbm [shape: bf16[128,384], index: 3, kind: input, shape index: {}]   ;;  %s6532_s4 = inlined_call_operand.hbm [shape: bf16[128,384], index: 4, kind: input, shape index: {}]   ;;  %s6533_s5 = inlined_call_operand.vmem [shape: f32[1,384], index: 5, kind: input, shape index: {}]   ;;  %s6534_s6 = inlined_call_operand.hbm [shape: bf16[128,128], index: 6, kind: input, shape index: {}]   ;;  %s6535_s7 = inlined_call_operand.vmem [shape: f32[1,128], index: 7, kind: input, shape index: {}]   ;;  %s6536_s8 = inlined_call_operand.hbm [shape: f32[6,1,128], index: 8, kind: output, shape index: {}]   ;;  %s6537_s1 = inlined_call_operand.vmem [shape: s32[6], index: 1, kind: input, shape index: {}]  }
   0x1   :  { %s5489_s29 = scalar_lea.hbm %s6529_s0, 16 }
   0x2   :  { %p5490_p0 = scmp.ne.s32.totalorder %s6529_s0, %s5489_s29  ;;  %p5493_p1 = scmp.lt.u32.totalorder %s5489_s29, %s6529_s0 }
   0x4   :  { %p5495_p2 = pnand %p5493_p1, %p5490_p0 }
   0x6   :  { %5498 = shalt.err (!%p5495_p2)  }
   0x7   :  { %s5607_s12 = smov [#allocation3]   ;;  %s15_s17 = sshll.u32 %s6537_s1, 4  ;;  %s16_s17 = int_to_ptr.vmem [resolvable:$true] %s15_s17 }
   0x8   :  { %14 = dma.hbm_to_smem %s6529_s0, 16, %s5607_s12, [#allocation2] }
   0x9   :  { %s5499_s18 = scalar_lea.vmem %s16_s17, 16  ;;  %p5504_p4 = scmp.lt.s32.totalorder %s16_s17, %s16_s17 }
   0xa   :  { %p5500_p3 = scmp.ne.s32.totalorder %s16_s17, %s5499_s18  ;;  %p5505_p5 = scmp.lt.s32.totalorder %s5499_s18, %s5499_s18 }
   0xc   :  { %p5506_p6 = por %p5505_p5, %p5504_p4 }
   0xe   :  { %p5507_p7 = pnand %p5506_p6, %p5500_p3 }
  0x10   :  { %5510 = shalt.err (!%p5507_p7)  }
  0x11   :  { %s5608_s19 = smov [#allocation4]  }
  0x12   :  { %18 = dma.vmem_to_smem %s16_s17, 16, %s5608_s19, [#allocation2] }
  0x13   :  { %5599 = dma.done.wait [#allocation2], 32 }
  0x14   :  { %5600 = vsyncadd [#allocation2], 4294967264 }
  0x15   :  { %20 = sfence }
  0x16   :  { %21 = vsyncpa [#allocation6], 0 }
  0x17   :  { %22 = vsyncpa [#allocation9], 0 }
  0x18   :  { %23 = vsyncpa [#allocation7], 0  ;;  %s5609_s0 = smov [#allocation8]   ;;  %s5610_s21 = smov [#allocation5]  }
  0x19   :  { %s43_s20 = sshll.u32 %s5609_s0, 4  ;;  %s31_s1 = sshll.u32 %s5610_s21, 4  ;;  %s44_s20 = int_to_ptr.vmem [resolvable:$true] %s43_s20  ;;  %s5683_s1 = int_to_ptr.vmem [resolvable:$true] %s31_s1 }
  0x1a   :  { %s5511_s24 = scalar_lea.hbm %s6532_s4, 3072 }
  0x1b   :  { %p5512_p8 = scmp.ne.s32.totalorder %s6532_s4, %s5511_s24  ;;  %p5515_p9 = scmp.lt.u32.totalorder %s5511_s24, %s6532_s4 }
  0x1d   :  { %p5517_p10 = pnand %p5515_p9, %p5512_p8 }
  0x1f   :  { %5520 = shalt.err (!%p5517_p10)
}
  0x20   :  { %s5521_s29 = scalar_lea.vmem %s44_s20, 3072  ;;  %p5526_p12 = scmp.lt.s32.totalorder %s44_s20, %s44_s20 }
  0x21   :  { %p5522_p11 = scmp.ne.s32.totalorder %s44_s20, %s5521_s29  ;;  %p5527_p13 = scmp.lt.s32.totalorder %s5521_s29, %s5521_s29 }
  0x23   :  { %p5528_p0 = por %p5527_p13, %p5526_p12 }
  0x25   :  { %p5529_p1 = pnand %p5528_p0, %p5522_p11 }
  0x27   :  { %5532 = shalt.err (!%p5529_p1)
}
  0x28   :  { %s5611_s30 = smov 192   ;;  %s5612_s9 = smov 12  }
  0x29   :  { %49 = dma.hbm_to_vmem [thread:$0]  %s6532_s4, 3072, %s44_s20, [#allocation9], %s5611_s30, %s5611_s30, %s5612_s9  }
  0x2a   :  { %s5533_s14 = scalar_lea.hbm %s6531_s3, 3072 }
  0x2b   :  { %p5534_p2 = scmp.ne.s32.totalorder %s6531_s3, %s5533_s14  ;;  %p5537_p3 = scmp.lt.u32.totalorder %s5533_s14, %s6531_s3 }
  0x2d   :  { %p5539_p4 = pnand %p5537_p3, %p5534_p2 }
  0x2f   :  { %5542 = shalt.err (!%p5539_p4)
}
  0x30   :  { %s5543_s19 = scalar_lea.vmem %s5683_s1, 3072  ;;  %p5548_p6 = scmp.lt.s32.totalorder %s5683_s1, %s5683_s1 }
  0x31   :  { %p5544_p5 = scmp.ne.s32.totalorder %s5683_s1, %s5543_s19  ;;  %p5549_p7 = scmp.lt.s32.totalorder %s5543_s19, %s5543_s19 }
  0x33   :  { %p5550_p8 = por %p5549_p7, %p5548_p6 }
  0x35   :  { %p5551_p9 = pnand %p5550_p8, %p5544_p5 }
  0x37   :  { %5554 = shalt.err (!%p5551_p9)
}
  0x38   :  { %37 = dma.hbm_to_vmem [thread:$0]  %s6531_s3, 3072, %s5683_s1, [#allocation6], %s5611_s30, %s5611_s30, %s5612_s9  }
  0x39   :  { %s5613_s20 = smov [#allocation10]   ;;  %s5555_s24 = scalar_lea.hbm %s6534_s6, 1024 }
  0x3a   :  { %s57_s21 = sshll.u32 %s5613_s20, 4  ;;  %p5556_p10 = scmp.ne.s32.totalorder %s6534_s6, %s5555_s24  ;;  %s58_s21 = int_to_ptr.vmem [resolvable:$true] %s57_s21 }
  0x3b   :  { %p5559_p11 = scmp.lt.u32.totalorder %s5555_s24, %s6534_s6 }
  0x3d   :  { %p5561_p12 = pnand %p5559_p11, %p5556_p10 }
  0x3f   :  { %5564 = shalt.err (!%p5561_p12)
}
  0x40   :  { %s5565_s29 = scalar_lea.vmem %s58_s21, 1024  ;;  %p5570_p0 = scmp.lt.s32.totalorder %s58_s21, %s58_s21 }
  0x41   :  { %p5566_p13 = scmp.ne.s32.totalorder %s58_s21, %s5565_s29  ;;  %p5571_p1 = scmp.lt.s32.totalorder %s5565_s29, %s5565_s29 }
  0x43   :  { %p5572_p2 = por %p5571_p1, %p5570_p0 }
  0x45   :  { %p5573_p3 = pnand %p5572_p2, %p5566_p13 }
  0x47   :  { %5576 = shalt.err (!%p5573_p3)
}
  0x48   :  { %s5614_s3 = smov 64   ;;  %s5615_s1 = smov 4  }
  0x49   :  { %63 = dma.hbm_to_vmem [thread:$0]  %s6534_s6, 1024, %s58_s21, [#allocation9], %s5614_s3, %s5614_s3, %s5615_s1  }
  0x4a   :  { %5601 = dma.done.wait [#allocation6], 3072  }
  0x4b   :  { %5602 = vsyncadd [#allocation6], 4294964224 }
  0x4c   :  { %5603 = dma.done.wait [#allocation9], 4096  }
  0x4d   :  { %5604 = vsyncadd [#allocation9], 4294963200  ;;  %v5616_v0 = vmov 0.0   ;;  %v5617_v1 = vmov 0   ;;  %vm5618_vm0 = vmmov 0   ;;  %v76_v17 = vlaneseq  ;;  %v5171_v56 = vld [vmem:[#allocation10] sm:$0xff]  }
  0x4e   :  { %4695 = vmatprep.subr.bf16.mxu1 %v5616_v0  ;;  %275 = vmatprep.mubr.bf16.mxu0 %v5617_v1  ;;  %v5730_v2 = vld [vmem:[#allocation5 + $0x4] ss:$12 sps:$4 sm:$0xff]   ;;  %v5732_v3 = vld [vmem:[#allocation5] ss:$12 sps:$4 sm:$0xff]   ;;  %v5735_v4 = vld [vmem:[#allocation5 + $0x1c] ss:$12 sps:$4 sm:$0xff]  }
  0x4f   :  { %4711 = vmatprep.mubr.msk.bf16.mxu1 %vm5618_vm0, %v5616_v0  ;;  %243 = vmatprep.subr.bf16.mxu0 %v5730_v2  ;;  %v5738_v5 = vld [vmem:[#allocation5 + $0x18] ss:$12 sps:$4 sm:$0xff]   ;;  %v5741_v6 = vld [vmem:[#allocation5 + $0x34] ss:$12 sps:$4 sm:$0xff]   ;;  %v5744_v7 = vld [vmem:[#allocation5 + $0x30] ss:$12 sps:$4 sm:$0xff]  }
  0x50   :  { %244 = vmatpush1.bf16.msra.mxu0 %v5732_v3  ;;  %v5747_v8 = vld [vmem:[#allocation5 + $0x4c] ss:$12 sps:$4 sm:$0xff]   ;;  %v5127_v9 = vld [vmem:[#allocation5 + $0x8] ss:$12 sps:$4 sm:$0xff]   ;;  %v5753_v11 = vld [vmem:[#allocation5 + $0x64] ss:$12 sps:$4 sm:$0xff]  }
  0x51   :  { %245 = vmatprep.subr.bf16.mxu0 %v5735_v4  ;;  %v5750_v10 = vld [vmem:[#allocation5 + $0x48] ss:$12 sps:$4 sm:$0xff]   ;;  %4696 = vmatpush3.bf16.msra.mxu1 %v5127_v9  ;;  %v5131_v12 = vld [vmem:[#allocation5 + $0x20] ss:$12 sps:$4 sm:$0xff]   ;;  %v5133_v14 = vld [vmem:[#allocation5 + $0x38] ss:$12 sps:$4 sm:$0xff]  }
  0x52   :  { %4697 = vmatprep.subr.bf16.mxu1 %v5616_v0  ;;  %v5756_v13 = vld [vmem:[#allocation5 + $0x60] ss:$12 sps:$4 sm:$0xff]   ;;  %v5760_v15 = vld [vmem:[#allocation5 + $0x7c] ss:$12 sps:$4 sm:$0xff]   ;;  %v5764_v16 = vld [vmem:[#allocation5 + $0x78] ss:$12 sps:$4 sm:$0xff]  }
  0x53   :  { %v5137_v18 = vld [vmem:[#allocation5 + $0x50] ss:$12 sps:$4 sm:$0xff]   ;;  %v5767_v19 = vld [vmem:[#allocation5 + $0x94] ss:$12 sps:$4 sm:$0xff]   ;;  %v5774_v21 = vand.u32 127, %v76_v17  ;;  %v5172_v57 = vld [vmem:[#allocation10 + $0x8] sm:$0xff]  }
  0x54   :  { %246 = vmatpush1.bf16.msra.mxu0 %v5738_v5  ;;  %v5770_v20 = vld [vmem:[#allocation5 + $0x90] ss:$12 sps:$4 sm:$0xff]   ;;  %v5141_v22 = vld [vmem:[#allocation5 + $0x68] ss:$12 sps:$4 sm:$0xff]   ;;  %v5777_v23 = vld [vmem:[#allocation5 + $0xac] ss:$12 sps:$4 sm:$0xff]  }
  0x55   :  { %247 = vmatprep.subr.bf16.mxu0 %v5741_v6  ;;  %4698 = vmatpush3.bf16.msra.mxu1 %v5131_v12  ;;  %v5781_v24 = vld [vmem:[#allocation5 + $0xa8] ss:$12 sps:$4 sm:$0xff]   ;;  %vm79_vm1 = vcmp.eq.s32.totalorder %v5774_v21, 0  ;;  %v5145_v25 = vld [vmem:[#allocation5 + $0x80] ss:$12 sps:$4 sm:$0xff]   ;;  %v5174_v59 = vld [vmem:[#allocation10 + $0x18] sm:$0xff]  }
  0x56   :  { %4699 = vmatprep.subr.bf16.mxu1 %v5616_v0  ;;  %v5785_v26 = vld [vmem:[#allocation8 + $0x4] ss:$12 sps:$4 sm:$0xff]   ;;  %vm5788_vm2 = vmpackc.low %vm79_vm1, %vm79_vm1  ;;  %v5134_v28 = vld [vmem:[#allocation8] ss:$12 sps:$4 sm:$0xff]   ;;  %v5619_v31 = vmov 1.0|1.0  }
  0x57   :  { %v5149_v29 = vld [vmem:[#allocation5 + $0x98] ss:$12 sps:$4 sm:$0xff]   ;;  %v5140_v30 = vld [vmem:[#allocation8 + $0x1c] ss:$12 sps:$4 sm:$0xff]   ;;  %v5144_v34 = vld [vmem:[#allocation8 + $0x34] ss:$12 sps:$4 sm:$0xff]  }
  0x58   :  { %248 = vmatpush1.bf16.msra.mxu0 %v5744_v7  ;;  %v5138_v32 = vld [vmem:[#allocation8 + $0x18] ss:$12 sps:$4 sm:$0xff]   ;;  %v5153_v33 = vld [vmem:[#allocation5 + $0xb0] ss:$12 sps:$4 sm:$0xff]   ;;  %v5160_v36 = vld [vmem:[#allocation8 + $0x8] ss:$12 sps:$4 sm:$0xff]  }
  0x59   :  { %249 = vmatprep.subr.bf16.mxu0 %v5747_v8  ;;  %4700 = vmatpush3.bf16.msra.mxu1 %v5133_v14  ;;  %v5142_v35 = vld [vmem:[#allocation8 + $0x30] ss:$12 sps:$4 sm:$0xff]   ;;  %v5148_v37 = vld [vmem:[#allocation8 + $0x4c] ss:$12 sps:$4 sm:$0xff]   ;;  %v5146_v38 = vld [vmem:[#allocation8 + $0x48] ss:$12 sps:$4 sm:$0xff]  }
  0x5a   :  { %4701 = vmatprep.subr.bf16.mxu1 %v5616_v0  ;;  %v5164_v39 = vld [vmem:[#allocation8 + $0x20] ss:$12 sps:$4 sm:$0xff]   ;;  %v5152_v40 = vld [vmem:[#allocation8 + $0x64] ss:$12 sps:$4 sm:$0xff]   ;;  %v5156_v43 = vld [vmem:[#allocation8 + $0x7c] ss:$12 sps:$4 sm:$0xff]  }
  0x5b   :  { %v5150_v41 = vld [vmem:[#allocation8 + $0x60] ss:$12 sps:$4 sm:$0xff]   ;;  %v5165_v42 = vld [vmem:[#allocation8 + $0x38] ss:$12 sps:$4 sm:$0xff]   ;;  %v5166_v45 = vld [vmem:[#allocation8 + $0x50] ss:$12 sps:$4 sm:$0xff]  }
  0x5c   :  { %250 = vmatpush1.bf16.msra.mxu0 %v5750_v10  ;;  %v5806_v44 = vld [vmem:[#allocation8 + $0x78] ss:$12 sps:$4 sm:$0xff]   ;;  %v5808_v46 = vld [vmem:[#allocation8 + $0x94] ss:$12 sps:$4 sm:$0xff]   ;;  %v5811_v47 = vld [vmem:[#allocation8 + $0x90] ss:$12 sps:$4 sm:$0xff]  }
  0x5d   :  { %251 = vmatprep.subr.bf16.mxu0 %v5753_v11  ;;  %4702 = vmatpush3.bf16.msra.mxu1 %v5137_v18  ;;  %v5167_v48 = vld [vmem:[#allocation8 + $0x68] ss:$12 sps:$4 sm:$0xff]   ;;  %v5813_v49 = vld [vmem:[#allocation8 + $0xac] ss:$12 sps:$4 sm:$0xff]   ;;  %v5170_v55 = vld [vmem:[#allocation8 + $0xb0] ss:$12 sps:$4 sm:$0xff]  }
  0x5e   :  { %4703 = vmatprep.subr.bf16.mxu1 %v5616_v0  ;;  %v5818_v50 = vld [vmem:[#allocation8 + $0xa8] ss:$12 sps:$4 sm:$0xff]   ;;  %v5823_v51 = vld [vmem:[%s6530_s2] sm:$0x1]  ;;  %v5168_v52 = vld [vmem:[#allocation8 + $0x80] ss:$12 sps:$4 sm:$0xff]  }
  0x5f   :  { %v5169_v53 = vld [vmem:[#allocation8 + $0x98] ss:$12 sps:$4 sm:$0xff]   ;;  %v324_v54 = vpack.c.bf16 %v5823_v51, %v5823_v51  ;;  %v5173_v58 = vld [vmem:[#allocation10 + $0x10] sm:$0xff]   ;;  %v5176_v61 = vld [vmem:[#allocation10 + $0x28] sm:$0xff]   ;;  %vm710_vm3 = vcmask 1040384   ;;  %s749_s14 = sld [smem:[#allocation3]] }
  0x60   :  { %252 = vmatpush1.bf16.msra.mxu0 %v5756_v13  ;;  %v5175_v60 = vld [vmem:[#allocation10 + $0x20] sm:$0xff]   ;;  %v5177_v62 = vld [vmem:[#allocation10 + $0x30] sm:$0xff]   ;;  %v5178_v63 = vld [vmem:[#allocation10 + $0x38] sm:$0xff]   ;;  %s744_s15 = sld [smem:[#allocation4]]  ;;  %s4284_s21 = sld [smem:[#allocation3 + $0x1]] }
  0x61   :  { %253 = vmatprep.subr.bf16.mxu0 %v5760_v15  ;;  %4704 = vmatpush3.bf16.msra.mxu1 %v5141_v22  ;;  %s4282_s22 = sld [smem:[#allocation4 + $0x1]]  ;;  %s4347_s3 = sld [smem:[#allocation3 + $0x2]] }
  0x62   :  { %4705 = vmatprep.subr.bf16.mxu1 %v5616_v0  ;;  %s4345_s1 = sld [smem:[#allocation4 + $0x2]]  ;;  %s4410_s13 = sld [smem:[#allocation3 + $0x3]] }
  0x63   :  { %s4473_s20 = sld [smem:[#allocation3 + $0x4]] }
  0x64   :  { %254 = vmatpush1.bf16.msra.mxu0 %v5764_v16 }
  0x65   :  { %255 = vmatprep.subr.bf16.mxu0 %v5767_v19  ;;  %4706 = vmatpush3.bf16.msra.mxu1 %v5145_v25  ;;  %p750_p4 = scmp.gt.s32.totalorder %s749_s14, 0  ;;  %s4408_s14 = sld [smem:[#allocation4 + $0x3]] }
  0x66   :  { %4707 = vmatprep.subr.bf16.mxu1 %v5616_v0  ;;  %p1433_p5 = scmp.gt.s32.totalorder %s4284_s21, 0  ;;  %s4471_s21 = sld [smem:[#allocation4 + $0x4]] }
  0x67   :  { %s751_s16 = scalar_select %p750_p4, 1, 0 }
  0x68   :  { %256 = vmatpush1.bf16.msra.mxu0 %v5770_v20  ;;  %s1434_s23 = scalar_select %p1433_p5, 1, 0 }
  0x69   :  { %257 = vmatprep.subr.bf16.mxu0 %v5777_v23  ;;  %4708 = vmatpush3.bf16.msra.mxu1 %v5149_v29  ;;  %s752_s17 = scvt.s32.f32 %s751_s16  ;;  %p2116_p6 = scmp.gt.s32.totalorder %s4347_s3, 0 }
  0x6a   :  { %4709 = vmatprep.subr.bf16.mxu1 %v5616_v0  ;;  %s1435_s24 = scvt.s32.f32 %s1434_s23  ;;  %p2799_p7 = scmp.gt.s32.totalorder %s4410_s13, 0 }
  0x6b   :  { %s755_s18 = ssub.f32 1.0, %s752_s17  ;;  %p3482_p8 = scmp.gt.s32.totalorder %s4473_s20, 0 }
  0x6c   :  { %258 = vmatpush1.bf16.msra.mxu0 %v5781_v24  ;;  %s1438_s25 = ssub.f32 1.0, %s1435_s24 }
  0x6d   :  { %502 = vmatprep.subr.bf16.mxu0 %v5785_v26  ;;  %4710 = vmatpush3.bf16.msra.mxu1 %v5153_v33  ;;  %s2117_s30 = scalar_select %p2116_p6, 1, 0 }
  0x6e   :  { %4715 = vmatprep.subr.bf16.mxu1 %v5616_v0 }
  0x6f   :  { %4183 = vmatmul.mubr.msk.bf16.vlgmr.msra.gmra.mrb[0].mxu0 %vm5788_vm2, %v5619_v31  ;;  %s2118_s9 = scvt.s32.f32 %s2117_s30 }
  0x70   :  { %503 = vmatpush1.bf16.msra.mxu0 %v5134_v28  ;;  %534 = vmatprep.mubr.bf16.mxu0 %v5617_v1 }
  0x71   :  { %504 = vmatprep.subr.bf16.mxu0 %v5140_v30  ;;  %4712 = vmatmul.mubr.msk.bf16.vlgmr.msra.gmra.mrb[0].mxu1 %vm5788_vm2, %v5619_v31  ;;  %s2121_s6 = ssub.f32 1.0, %s2118_s9 }
  0x72   :  { %4716 = vmatpush3.bf16.msra.mxu1 %v5160_v36  ;;  %4731 = vmatprep.mubr.msk.bf16.mxu1 %vm5618_vm0, %v5616_v0 }
  0x73   :  { %4717 = vmatprep.subr.bf16.mxu1 %v5616_v0 }
  0x74   :  { %505 = vmatpush1.bf16.msra.mxu0 %v5138_v32 }
  0x75   :  { %506 = vmatprep.subr.bf16.mxu0 %v5144_v34 }
  0x76   :  { %4718 = vmatpush3.bf16.msra.mxu1 %v5164_v39 }
  0x77   :  { %4719 = vmatprep.subr.bf16.mxu1 %v5616_v0 }
  0x78   :  { %507 = vmatpush1.bf16.msra.mxu0 %v5142_v35 }
  0x79   :  { %508 = vmatprep.subr.bf16.mxu0 %v5148_v37 }
  0x7a   :  { %4720 = vmatpush3.bf16.msra.mxu1 %v5165_v42  ;;  %v621_v42 = vld [vmem:[%s6535_s7] sm:$0x1] }
  0x7b   :  { %4721 = vmatprep.subr.bf16.mxu1 %v5616_v0 }
  0x7c   :  { %509 = vmatpush1.bf16.msra.mxu0 %v5146_v38 }
  0x7d   :  { %510 = vmatprep.subr.bf16.mxu0 %v5152_v40 }
  0x7e   :  { %4722 = vmatpush3.bf16.msra.mxu1 %v5166_v45 }
  0x7f   :  { %4723 = vmatprep.subr.bf16.mxu1 %v5616_v0 }
  0x80   :  { %511 = vmatpush1.bf16.msra.mxu0 %v5150_v41 }
  0x81   :  { %512 = vmatprep.subr.bf16.mxu0 %v5156_v43 }
  0x82   :  { %4724 = vmatpush3.bf16.msra.mxu1 %v5167_v48 }
  0x83   :  { %4725 = vmatprep.subr.bf16.mxu1 %v5616_v0 }
  0x84   :  { %513 = vmatpush1.bf16.msra.mxu0 %v5806_v44 }
  0x85   :  { %514 = vmatprep.subr.bf16.mxu0 %v5808_v46 }
  0x86   :  { %4726 = vmatpush3.bf16.msra.mxu1 %v5168_v52 }
  0x87   :  { %4727 = vmatprep.subr.bf16.mxu1 %v5616_v0 }
  0x88   :  { %515 = vmatpush1.bf16.msra.mxu0 %v5811_v47 }
  0x89   :  { %516 = vmatprep.subr.bf16.mxu0 %v5813_v49 }
  0x8a   :  { %4728 = vmatpush3.bf16.msra.mxu1 %v5169_v53 }
  0x8b   :  { %4729 = vmatprep.subr.bf16.mxu1 %v5616_v0 }
  0x8c   :  { %517 = vmatpush1.bf16.msra.mxu0 %v5818_v50 }
  0x8d   :  { %4735 = vmatprep.subr.bf16.mxu0 %v5616_v0 }
  0x8e   :  { %4730 = vmatpush3.bf16.msra.mxu1 %v5170_v55 }
  0x8f   :  { %535 = vmatmul.mubr.bf16.vlgmr.msra.gmra.mrb[0].mxu0 %v324_v54  ;;  %925 = vmatprep.subr.bf16.mxu1 %v5730_v2 }
  0x90   :  { %4751 = vmatprep.mubr.msk.bf16.mxu0 %vm5618_vm0, %v5616_v0  ;;  %4736 = vmatpush3.bf16.msra.mxu0 %v5171_v56 }
  0x91   :  { %4732 = vmatmul.mubr.bf16.vlgmr.msra.gmra.mrb[4].mxu1 %v324_v54  ;;  %4737 = vmatprep.subr.bf16.mxu0 %v5616_v0 }
  0x92   :  { %926 = vmatpush1.bf16.msra.mxu1 %v5732_v3  ;;  %957 = vmatprep.mubr.bf16.mxu1 %v5617_v1 }
  0x93   :  { %927 = vmatprep.subr.bf16.mxu1 %v5735_v4 }
  0x94   :  { %4738 = vmatpush3.bf16.msra.mxu0 %v5172_v57 }
  0x95   :  { %4739 = vmatprep.subr.bf16.mxu0 %v5616_v0 }
  0x96   :  { %928 = vmatpush1.bf16.msra.mxu1 %v5738_v5 }
  0x97   :  { %929 = vmatprep.subr.bf16.mxu1 %v5741_v6  ;;  %v488_v6 = vshrl.u32 %v76_v17, 7 }
  0x98   :  { %4740 = vmatpush3.bf16.msra.mxu0 %v5173_v58 }
  0x99   :  { %4741 = vmatprep.subr.bf16.mxu0 %v5616_v0  ;;  %v5868_v9 = vsub.s32 1, %v488_v6  ;;  %v5872_v27 = vsub.s32 2, %v488_v6 }
  0x9a   :  { %930 = vmatpush1.bf16.msra.mxu1 %v5744_v7  ;;  %v5863_v7 = vsub.s32 0, %v488_v6  ;;  %v5184_v6 = vld [vmem:[#allocation5 + $0x80] ss:$12 sps:$4 sm:$0xff]  }
  0x9b   :  { %931 = vmatprep.subr.bf16.mxu1 %v5747_v8  ;;  %v357_v8 = vld [vmem:[%s6533_s5] sm:$0x7] }
  0x9c   :  { %4742 = vmatpush3.bf16.msra.mxu0 %v5174_v59  ;;  %v494_v12 = vrot.slane %v357_v8, %v5868_v9  ;;  %v498_v28 = vrot.slane %v357_v8, %v5872_v27  ;;  %v5179_v59 = vld [vmem:[#allocation5 + $0x8] ss:$12 sps:$4 sm:$0xff]  }
  0x9d   :  { %4743 = vmatprep.subr.bf16.mxu0 %v5616_v0 }
  0x9e   :  { %932 = vmatpush1.bf16.msra.mxu1 %v5750_v10  ;;  %v490_v10 = vrot.slane %v357_v8, %v5863_v7  ;;  %v5185_v8 = vld [vmem:[#allocation5 + $0x98] ss:$12 sps:$4 sm:$0xff]  }
  0x9f   :  { %933 = vmatprep.subr.bf16.mxu1 %v5753_v11 }
  0xa0   :  { %4744 = vmatpush3.bf16.msra.mxu0 %v5175_v60  ;;  %v5180_v60 = vld [vmem:[#allocation5 + $0x20] ss:$12 sps:$4 sm:$0xff]  }
  0xa1   :  { %4745 = vmatprep.subr.bf16.mxu0 %v5616_v0 }
  0xa2   :  { %934 = vmatpush1.bf16.msra.mxu1 %v5756_v13 }
  0xa3   :  { %935 = vmatprep.subr.bf16.mxu1 %v5760_v15 }
  0xa4   :  { %4746 = vmatpush3.bf16.msra.mxu0 %v5176_v61  ;;  %v5181_v61 = vld [vmem:[#allocation5 + $0x38] ss:$12 sps:$4 sm:$0xff]  }
  0xa5   :  { %4747 = vmatprep.subr.bf16.mxu0 %v5616_v0 }
  0xa6   :  { %936 = vmatpush1.bf16.msra.mxu1 %v5764_v16 }
  0xa7   :  { %937 = vmatprep.subr.bf16.mxu1 %v5767_v19 }
  0xa8   :  { %4748 = vmatpush3.bf16.msra.mxu0 %v5177_v62  ;;  %v5182_v62 = vld [vmem:[#allocation5 + $0x50] ss:$12 sps:$4 sm:$0xff]  }
  0xa9   :  { %4749 = vmatprep.subr.bf16.mxu0 %v5616_v0 }
  0xaa   :  { %938 = vmatpush1.bf16.msra.mxu1 %v5770_v20 }
  0xab   :  { %939 = vmatprep.subr.bf16.mxu1 %v5777_v23 }
  0xac   :  { %4750 = vmatpush3.bf16.msra.mxu0 %v5178_v63  ;;  %v5183_v63 = vld [vmem:[#allocation5 + $0x68] ss:$12 sps:$4 sm:$0xff]  }
  0xad   :  { %4755 = vmatprep.subr.bf16.mxu0 %v5616_v0 }
  0xae   :  { %940 = vmatpush1.bf16.msra.mxu1 %v5781_v24 }
  0xaf   :  { %1183 = vmatprep.subr.bf16.mxu1 %v5785_v26 }
 0x144   :  { %v318_v2 = vpop.f32.mrb[0].mxu1 }
 0x145   :  { %v4713_v3 = vpop.f32.mrb[1].mxu1 }
 0x146   :  { %v321_v4 = vpop.f32.mrb[2].mxu1 }
 0x147   :  { %v4714_v5 = vpop.f32.mrb[3].mxu1 }
 0x162   :  { %v536_v11 = vpop.f32.mrb[0].mxu0 }
 0x163   :  { %v537_v13 = vadd.f32 %v536_v11, %v490_v10  ;;  %v538_v14 = vpop.f32.mrb[1].mxu0  ;;  %v5186_v10 = vld [vmem:[#allocation5 + $0xb0] ss:$12 sps:$4 sm:$0xff]   ;;  %v745_v11 = vstv %s744_s15  ;;  %s2800_s15 = scalar_select %p2799_p7, 1, 0 }
 0x164   :  { %v540_v15 = vpop.f32.mrb[2].mxu0  ;;  %v539_v19 = vadd.f32 %v538_v14, %v494_v12  ;;  %v577_v20 = vpop.f32.mrb[4].mxu1  ;;  %vm746_vm6 = vcmp.eq.s32.totalorder %v5774_v21, %v745_v11 }
 0x165   :  { %v4210_v16 = vmul.f32 -1.442695, %v537_v13  ;;  %v541_v18 = vpop.f32.mrb[3].mxu0  ;;  %v4733_v22 = vpop.f32.mrb[5].mxu1  ;;  %v578_v31 = vadd.f32 %v577_v20, %v498_v28  ;;  %v5187_v28 = vld [vmem:[#allocation8 + $0x8] ss:$12 sps:$4 sm:$0xff]   ;;  %s2801_s16 = scvt.s32.f32 %s2800_s15 }
 0x166   :  { %v4211_v17 = vmul.f32 -1.442695, %v539_v19  ;;  %v580_v23 = vpop.f32.mrb[6].mxu1  ;;  %v753_v18 = vstv %s752_s17 }
 0x167   :  { %5395 = vpow2.f32 %v4210_v16  ;;  %v4734_v24 = vpop.f32.mrb[7].mxu1  ;;  %v4221_v16 = vsel %vm746_vm6, 1.0, %v5616_v0  ;;  %s2804_s17 = ssub.f32 1.0, %s2801_s16 }
 0x168   :  { %5397 = vpow2.f32 %v4211_v17  ;;  %v756_v17 = vstv %s755_s18  ;;  %v754_v20 = vmul.f32 %v4221_v16, %v753_v18 }
 0x171   :  { %v5396_v25 = vpop.eup %5395 }
 0x172   :  { %v587_v26 = vadd.f32 1.0, %v5396_v25  ;;  %v5398_v29 = vpop.eup %5397 }
 0x173   :  { %v594_v30 = vadd.f32 1.0, %v5398_v29 }
 0x174   :  { %5399 = vrcp.f32 %v587_v26 }
 0x175   :  { %5401 = vrcp.f32 %v594_v30  ;;  %v5479_v30 = vld [vmem:[#allocation8] ss:$12 sps:$4 sm:$0xff]  }
 0x17e   :  { %v5400_v32 = vpop.eup %5399 }
 0x17f   :  { %v597_v33 = vmul.f32 %v5400_v32, %v578_v31  ;;  %v5402_v35 = vpop.eup %5401  ;;  %v5188_v31 = vld [vmem:[#allocation8 + $0x20] ss:$12 sps:$4 sm:$0xff]   ;;  %v5480_v32 = vld [vmem:[#allocation8 + $0x1c] ss:$12 sps:$4 sm:$0xff]  }
 0x180   :  { %v600_v36 = vsub.f32 1.0, %v5402_v35  ;;  %v602_v39 = vmul.f32 %v5402_v35, %v5823_v51  ;;  %v5482_v35 = vld [vmem:[#allocation8 + $0x34] ss:$12 sps:$4 sm:$0xff]  }
 0x181   :  { %v598_v34 = vadd.f32 %v597_v33, %v318_v2  ;;  %v5481_v33 = vld [vmem:[#allocation8 + $0x18] ss:$12 sps:$4 sm:$0xff]  }
 0x183   :  { %5403 = vtanh.f32 %v598_v34  ;;  %v5189_v34 = vld [vmem:[#allocation8 + $0x38] ss:$12 sps:$4 sm:$0xff]  }
 0x18d   :  { %v5404_v37 = vpop.eup %5403 }
 0x18e   :  { %v601_v38 = vmul.f32 %v5404_v37, %v600_v36  ;;  %v5483_v36 = vld [vmem:[#allocation8 + $0x30] ss:$12 sps:$4 sm:$0xff]  }
 0x18f   :  { %v5190_v37 = vld [vmem:[#allocation8 + $0x50] ss:$12 sps:$4 sm:$0xff]  }
 0x190   :  { %v5876_v40 = vadd.f32 %v602_v39, %v601_v38  ;;  %v5484_v38 = vld [vmem:[#allocation8 + $0x4c] ss:$12 sps:$4 sm:$0xff]   ;;  %v5485_v39 = vld [vmem:[#allocation8 + $0x48] ss:$12 sps:$4 sm:$0xff]  }
 0x192   :  { %v5880_v41 = vpack.c.bf16 %v5876_v40, %v5876_v40 }
 0x194   :  { %4752 = vmatmul.mubr.bf16.vlgmr.msra.gmra.mrb[4].mxu0 %v5880_v41 }
 0x195   :  { %4771 = vmatprep.mubr.msk.bf16.mxu0 %vm5618_vm0, %v5616_v0  ;;  %4756 = vmatpush3.bf16.msra.mxu0 %v5179_v59 }
 0x196   :  { %4757 = vmatprep.subr.bf16.mxu0 %v5616_v0 }
 0x199   :  { %4758 = vmatpush3.bf16.msra.mxu0 %v5180_v60 }
 0x19a   :  { %4759 = vmatprep.subr.bf16.mxu0 %v5616_v0 }
 0x19d   :  { %4760 = vmatpush3.bf16.msra.mxu0 %v5181_v61 }
 0x19e   :  { %4761 = vmatprep.subr.bf16.mxu0 %v5616_v0 }
 0x1a1   :  { %4762 = vmatpush3.bf16.msra.mxu0 %v5182_v62  ;;  %v1038_v62 = vld [vmem:[%s6533_s5] sm:$0x7] }
 0x1a2   :  { %4763 = vmatprep.subr.bf16.mxu0 %v5616_v0 }
 0x1a5   :  { %4764 = vmatpush3.bf16.msra.mxu0 %v5183_v63  ;;  %v1171_v63 = vrot.slane %v1038_v62, %v5863_v7 }
 0x1a6   :  { %4765 = vmatprep.subr.bf16.mxu0 %v5616_v0 }
 0x1a9   :  { %4766 = vmatpush3.bf16.msra.mxu0 %v5184_v6 }
 0x1aa   :  { %4767 = vmatprep.subr.bf16.mxu0 %v5616_v0 }
 0x1ad   :  { %4768 = vmatpush3.bf16.msra.mxu0 %v5185_v8 }
 0x1ae   :  { %4769 = vmatprep.subr.bf16.mxu0 %v5616_v0 }
 0x1b1   :  { %4770 = vmatpush3.bf16.msra.mxu0 %v5186_v10 }
 0x1b2   :  { %4775 = vmatprep.subr.bf16.mxu0 %v5616_v0 }
 0x267   :  { %v704_v43 = vpop.f32.mrb[4].mxu0 }
 0x268   :  { %v5888_v45 = vadd.f32 %v704_v43, %v621_v42  ;;  %v4753_v48 = vpop.f32.mrb[5].mxu0  ;;  %v5191_v42 = vld [vmem:[#allocation8 + $0x68] ss:$12 sps:$4 sm:$0xff]   ;;  %v5486_v43 = vld [vmem:[#allocation8 + $0x64] ss:$12 sps:$4 sm:$0xff]  }
 0x269   :  { %v707_v51 = vpop.f32.mrb[6].mxu0  ;;  %v5487_v48 = vld [vmem:[#allocation8 + $0x60] ss:$12 sps:$4 sm:$0xff]  }
 0x26a   :  { %v4754_v52 = vpop.f32.mrb[7].mxu0  ;;  %v711_v53 = vsel %vm710_vm3, %v5888_v45, -inf  ;;  %v5192_v51 = vld [vmem:[#allocation8 + $0x80] ss:$12 sps:$4 sm:$0xff]  }
 0x26b   :  { %712 = vmax.xlane.f32.xlu0 %v711_v53  ;;  %v5488_v52 = vld [vmem:[#allocation8 + $0x7c] ss:$12 sps:$4 sm:$0xff]   ;;  %v5193_v53 = vld [vmem:[#allocation8 + $0x98] ss:$12 sps:$4 sm:$0xff]  }
 0x2f8   :  { %v5892_v54 = vpop.xlane.xlu0 %712 }
 0x2f9   :  { %vm724_vm4 = vcmp.eq.f32.partialorder %v5888_v45, %v5892_v54 }
 0x2fa   :  { %v725_v55 = vsel %vm724_vm4, %v5774_v21, 128 }
 0x2fb   :  { %v726_v56 = vsel %vm710_vm3, %v725_v55, 2147483647  ;;  %v5194_v55 = vld [vmem:[#allocation8 + $0xb0] ss:$12 sps:$4 sm:$0xff]  }
 0x2fc   :  { %v728_v57 = vshra.s32 %v726_v56, 16  ;;  %v727_v2 = vand.u32 65535, %v726_v56  ;;  %v5201_v56 = vld [vmem:[#allocation10 + $0x30] sm:$0xff]  }
 0x2fe   :  { %v730_v58 = vcvt.s32.f32 %v728_v57  ;;  %v729_v4 = vcvt.s32.f32 %v727_v2  ;;  %v5202_v57 = vld [vmem:[#allocation10 + $0x38] sm:$0xff]  }
 0x300   :  { %731 = vmin.xlane.f32.xlu0 %v730_v58 }
 0x38d   :  { %v732_v3 = vpop.xlane.xlu0 %731 }
 0x38e   :  { %vm733_vm5 = vcmp.eq.f32.partialorder %v730_v58, %v732_v3  ;;  %v738_v12 = vcvt.f32.s32 %v732_v3 }
 0x38f   :  { %v734_v5 = vsel %vm733_vm5, %v729_v4, inf  ;;  %v1175_v4 = vrot.slane %v1038_v62, %v5868_v9 }
 0x390   :  { %735 = vmin.xlane.f32.xlu1 %v734_v5  ;;  %v739_v14 = vshll.u32 %v738_v12, 16 }
 0x41d   :  { %v736_v13 = vpop.xlane.xlu1 %735 }
 0x41e   :  { %v737_v15 = vcvt.f32.s32 %v736_v13 }
 0x420   :  { %v740_v19 = vadd.s32 %v739_v14, %v737_v15 }
 0x422   :  { %vm741_vm7 = vcmp.eq.s32.totalorder %v5774_v21, %v740_v19  ;;  %vm759_vm8 = vcmp.eq.s32.totalorder %v740_v19, 1 }
 0x423   :  { %v4220_v22 = vsel %vm741_vm7, 1.0, %v5616_v0  ;;  %v4222_v23 = vsel %vm759_vm8, 1.0, %v5616_v0 }
 0x424   :  { %v757_v24 = vmul.f32 %v4220_v22, %v756_v17  ;;  %v5911_v25 = vmul.f32 %v4222_v23, %v756_v17 }
 0x426   :  { %v758_v26 = vadd.f32 %v757_v24, %v754_v20  ;;  %v1179_v20 = vrot.slane %v1038_v62, %v5872_v27  ;;  %v5997_v62 = vld [vmem:[#allocation5 + $0x64] ss:$12 sps:$4 sm:$0xff]  }
 0x428   :  { %v764_v29 = vpack.c.bf16 %v758_v26, %v758_v26 }
 0x42a   :  { %958 = vmatmul.mubr.bf16.vlgmr.msra.gmra.mrb[8].mxu1 %v764_v29  ;;  %4772 = vmatmul.mubr.bf16.vlgmr.msra.gmra.mrb[8].mxu0 %v764_v29 }
 0x42b   :  { %1184 = vmatpush1.bf16.msra.mxu1 %v5479_v30  ;;  %4776 = vmatpush3.bf16.msra.mxu0 %v5187_v28 }
 0x42c   :  { %1185 = vmatprep.subr.bf16.mxu1 %v5480_v32  ;;  %4777 = vmatprep.subr.bf16.mxu0 %v5616_v0 }
 0x42d   :  { %1215 = vmatprep.mubr.bf16.mxu1 %v5617_v1  ;;  %4791 = vmatprep.mubr.msk.bf16.mxu0 %vm5618_vm0, %v5616_v0 }
 0x42f   :  { %1186 = vmatpush1.bf16.msra.mxu1 %v5481_v33  ;;  %4778 = vmatpush3.bf16.msra.mxu0 %v5188_v31 }
 0x430   :  { %1187 = vmatprep.subr.bf16.mxu1 %v5482_v35  ;;  %4779 = vmatprep.subr.bf16.mxu0 %v5616_v0 }
 0x433   :  { %1188 = vmatpush1.bf16.msra.mxu1 %v5483_v36  ;;  %4780 = vmatpush3.bf16.msra.mxu0 %v5189_v34  ;;  %v1302_v36 = vld [vmem:[%s6535_s7] sm:$0x1] }
 0x434   :  { %1189 = vmatprep.subr.bf16.mxu1 %v5484_v38  ;;  %4781 = vmatprep.subr.bf16.mxu0 %v5616_v0 }
 0x437   :  { %1190 = vmatpush1.bf16.msra.mxu1 %v5485_v39  ;;  %4782 = vmatpush3.bf16.msra.mxu0 %v5190_v37 }
 0x438   :  { %1191 = vmatprep.subr.bf16.mxu1 %v5486_v43  ;;  %4783 = vmatprep.subr.bf16.mxu0 %v5616_v0 }
 0x43b   :  { %1192 = vmatpush1.bf16.msra.mxu1 %v5487_v48  ;;  %4784 = vmatpush3.bf16.msra.mxu0 %v5191_v42 }
 0x43c   :  { %1193 = vmatprep.subr.bf16.mxu1 %v5488_v52  ;;  %4785 = vmatprep.subr.bf16.mxu0 %v5616_v0 }
 0x43f   :  { %1194 = vmatpush1.bf16.msra.mxu1 %v5806_v44  ;;  %4786 = vmatpush3.bf16.msra.mxu0 %v5192_v51  ;;  %v5195_v44 = vld [vmem:[#allocation10] sm:$0xff]  }
 0x440   :  { %1195 = vmatprep.subr.bf16.mxu1 %v5808_v46  ;;  %4787 = vmatprep.subr.bf16.mxu0 %v5616_v0  ;;  %v5196_v46 = vld [vmem:[#allocation10 + $0x8] sm:$0xff]  }
 0x443   :  { %1196 = vmatpush1.bf16.msra.mxu1 %v5811_v47  ;;  %4788 = vmatpush3.bf16.msra.mxu0 %v5193_v53  ;;  %v5197_v47 = vld [vmem:[#allocation10 + $0x10] sm:$0xff]  }
 0x444   :  { %1197 = vmatprep.subr.bf16.mxu1 %v5813_v49  ;;  %4789 = vmatprep.subr.bf16.mxu0 %v5616_v0  ;;  %v5198_v49 = vld [vmem:[#allocation10 + $0x18] sm:$0xff]  }
 0x447   :  { %1198 = vmatpush1.bf16.msra.mxu1 %v5818_v50  ;;  %4790 = vmatpush3.bf16.msra.mxu0 %v5194_v55  ;;  %v5199_v50 = vld [vmem:[#allocation10 + $0x20] sm:$0xff]  }
 0x448   :  { %4795 = vmatprep.subr.bf16.mxu1 %v5616_v0 }
 0x44a   :  { %1216 = vmatmul.mubr.bf16.vlgmr.msra.gmra.mrb[8].mxu1 %v5880_v41  ;;  %4792 = vmatmul.mubr.bf16.vlgmr.msra.gmra.mrb[12].mxu0 %v5880_v41  ;;  %v5200_v41 = vld [vmem:[#allocation10 + $0x28] sm:$0xff]  }
 0x44b   :  { %4811 = vmatprep.mubr.msk.bf16.mxu1 %vm5618_vm0, %v5616_v0  ;;  %1640 = vmatprep.mubr.bf16.mxu0 %v5617_v1 }
 0x44c   :  { %4796 = vmatpush3.bf16.msra.mxu1 %v5195_v44  ;;  %v5971_v44 = vld [vmem:[#allocation5] ss:$12 sps:$4 sm:$0xff]  }
 0x44d   :  { %4797 = vmatprep.subr.bf16.mxu1 %v5616_v0 }
 0x450   :  { %4798 = vmatpush3.bf16.msra.mxu1 %v5196_v46  ;;  %v5973_v46 = vld [vmem:[#allocation5 + $0x4] ss:$12 sps:$4 sm:$0xff]  }
 0x451   :  { %4799 = vmatprep.subr.bf16.mxu1 %v5616_v0  ;;  %1608 = vmatprep.subr.bf16.mxu0 %v5973_v46 }
 0x452   :  { %1609 = vmatpush1.bf16.msra.mxu0 %v5971_v44 }
 0x454   :  { %4800 = vmatpush3.bf16.msra.mxu1 %v5197_v47  ;;  %v5206_v47 = vld [vmem:[#allocation5 + $0x8] ss:$12 sps:$4 sm:$0xff]  }
 0x455   :  { %4801 = vmatprep.subr.bf16.mxu1 %v5616_v0 }
 0x458   :  { %4802 = vmatpush3.bf16.msra.mxu1 %v5198_v49  ;;  %v5975_v49 = vld [vmem:[#allocation5 + $0x1c] ss:$12 sps:$4 sm:$0xff]  }
 0x459   :  { %4803 = vmatprep.subr.bf16.mxu1 %v5616_v0  ;;  %1610 = vmatprep.subr.bf16.mxu0 %v5975_v49 }
 0x45c   :  { %4804 = vmatpush3.bf16.msra.mxu1 %v5199_v50  ;;  %v5210_v50 = vld [vmem:[#allocation5 + $0x20] ss:$12 sps:$4 sm:$0xff]  }
 0x45d   :  { %4805 = vmatprep.subr.bf16.mxu1 %v5616_v0 }
 0x460   :  { %4806 = vmatpush3.bf16.msra.mxu1 %v5200_v41  ;;  %v5979_v41 = vld [vmem:[#allocation5 + $0x18] ss:$12 sps:$4 sm:$0xff]  }
 0x461   :  { %4807 = vmatprep.subr.bf16.mxu1 %v5616_v0  ;;  %1611 = vmatpush1.bf16.msra.mxu0 %v5979_v41 }
 0x464   :  { %4808 = vmatpush3.bf16.msra.mxu1 %v5201_v56  ;;  %v5983_v56 = vld [vmem:[#allocation5 + $0x34] ss:$12 sps:$4 sm:$0xff]  }
 0x465   :  { %4809 = vmatprep.subr.bf16.mxu1 %v5616_v0  ;;  %1612 = vmatprep.subr.bf16.mxu0 %v5983_v56 }
 0x468   :  { %4810 = vmatpush3.bf16.msra.mxu1 %v5202_v57  ;;  %v5214_v57 = vld [vmem:[#allocation5 + $0x38] ss:$12 sps:$4 sm:$0xff]  }
 0x469   :  { %4815 = vmatprep.subr.bf16.mxu1 %v5616_v0 }
 0x4fd   :  { %v1000_v58 = vpop.f32.mrb[8].mxu0 }
 0x4fe   :  { %v4773_v59 = vpop.f32.mrb[9].mxu0 }
 0x4ff   :  { %v1003_v60 = vpop.f32.mrb[10].mxu0  ;;  %v5990_v59 = vld [vmem:[#allocation5 + $0x4c] ss:$12 sps:$4 sm:$0xff]  }
 0x500   :  { %v4774_v61 = vpop.f32.mrb[11].mxu0  ;;  %v5218_v60 = vld [vmem:[#allocation5 + $0x50] ss:$12 sps:$4 sm:$0xff]  }
 0x501   :  { %v5993_v61 = vld [vmem:[#allocation5 + $0x48] ss:$12 sps:$4 sm:$0xff]  }
 0x51d   :  { %v1217_v2 = vpop.f32.mrb[8].mxu1  ;;  %v1258_v3 = vpop.f32.mrb[12].mxu0 }
 0x51e   :  { %v1218_v5 = vadd.f32 %v1217_v2, %v1171_v63  ;;  %v1219_v6 = vpop.f32.mrb[9].mxu1  ;;  %v4793_v8 = vpop.f32.mrb[13].mxu0  ;;  %v1259_v23 = vadd.f32 %v1258_v3, %v1179_v20  ;;  %v5222_v63 = vld [vmem:[#allocation5 + $0x68] ss:$12 sps:$4 sm:$0xff]   ;;  %v6000_v2 = vld [vmem:[#allocation5 + $0x60] ss:$12 sps:$4 sm:$0xff]  }
 0x51f   :  { %v1221_v10 = vpop.f32.mrb[10].mxu1  ;;  %v1261_v11 = vpop.f32.mrb[14].mxu0  ;;  %v1220_v15 = vadd.f32 %v1219_v6, %v1175_v4  ;;  %v6004_v3 = vld [vmem:[#allocation5 + $0x7c] ss:$12 sps:$4 sm:$0xff]   ;;  %v6007_v4 = vld [vmem:[#allocation5 + $0x78] ss:$12 sps:$4 sm:$0xff]  }
 0x520   :  { %v4271_v12 = vmul.f32 -1.442695, %v1218_v5  ;;  %v1222_v13 = vpop.f32.mrb[11].mxu1  ;;  %v4794_v14 = vpop.f32.mrb[15].mxu0  ;;  %v5226_v11 = vld [vmem:[#allocation5 + $0x80] ss:$12 sps:$4 sm:$0xff]  }
 0x521   :  { %v4272_v16 = vmul.f32 -1.442695, %v1220_v15  ;;  %v6015_v13 = vld [vmem:[#allocation5 + $0x90] ss:$12 sps:$4 sm:$0xff]   ;;  %v5230_v14 = vld [vmem:[#allocation5 + $0x98] ss:$12 sps:$4 sm:$0xff]  }
 0x522   :  { %5405 = vpow2.f32 %v4271_v12  ;;  %v6012_v12 = vld [vmem:[#allocation5 + $0x94] ss:$12 sps:$4 sm:$0xff]   ;;  %v6019_v15 = vld [vmem:[#allocation5 + $0xac] ss:$12 sps:$4 sm:$0xff]  }
 0x523   :  { %5407 = vpow2.f32 %v4272_v16  ;;  %v6022_v16 = vld [vmem:[#allocation5 + $0xa8] ss:$12 sps:$4 sm:$0xff]  }
 0x52c   :  { %v5406_v18 = vpop.eup %5405 }
 0x52d   :  { %v1268_v19 = vadd.f32 1.0, %v5406_v18  ;;  %v5408_v17 = vpop.eup %5407  ;;  %v5234_v18 = vld [vmem:[#allocation5 + $0xb0] ss:$12 sps:$4 sm:$0xff]  }
 0x52e   :  { %v1275_v22 = vadd.f32 1.0, %v5408_v17  ;;  %v1428_v17 = vstv %s4282_s22  ;;  %s3483_s22 = scalar_select %p3482_p8, 1, 0 }
 0x52f   :  { %5409 = vrcp.f32 %v1268_v19  ;;  %v6026_v19 = vld [vmem:[#allocation8 + $0x4] ss:$12 sps:$4 sm:$0xff]   ;;  %vm1429_vm11 = vcmp.eq.s32.totalorder %v5774_v21, %v1428_v17  ;;  %v5258_v17 = vld [vmem:[#allocation8 + $0x80] ss:$12 sps:$4 sm:$0xff]  }
 0x530   :  { %5411 = vrcp.f32 %v1275_v22  ;;  %s3484_s23 = scvt.s32.f32 %s3483_s22 }
 0x539   :  { %v5410_v24 = vpop.eup %5409 }
 0x53a   :  { %v1278_v26 = vmul.f32 %v5410_v24, %v1259_v23  ;;  %v5412_v29 = vpop.eup %5411 }
 0x53b   :  { %v1281_v30 = vsub.f32 1.0, %v5412_v29  ;;  %v1283_v33 = vmul.f32 %v5412_v29, %v5876_v40 }
 0x53c   :  { %v1279_v28 = vadd.f32 %v1278_v26, %v1000_v58  ;;  %v5986_v58 = vld [vmem:[#allocation5 + $0x30] ss:$12 sps:$4 sm:$0xff]   ;;  %v4283_v26 = vsel %vm1429_vm11, 1.0, %v5616_v0 }
 0x53d   :  { %1613 = vmatpush1.bf16.msra.mxu0 %v5986_v58 }
 0x53e   :  { %5413 = vtanh.f32 %v1279_v28  ;;  %1614 = vmatprep.subr.bf16.mxu0 %v5990_v59  ;;  %v1436_v28 = vstv %s1435_s24  ;;  %s3487_s24 = ssub.f32 1.0, %s3484_s23 }
 0x541   :  { %1615 = vmatpush1.bf16.msra.mxu0 %v5993_v61 }
 0x542   :  { %1616 = vmatprep.subr.bf16.mxu0 %v5997_v62 }
 0x545   :  { %1617 = vmatpush1.bf16.msra.mxu0 %v6000_v2 }
 0x546   :  { %1618 = vmatprep.subr.bf16.mxu0 %v6004_v3 }
 0x548   :  { %v5414_v31 = vpop.eup %5413 }
 0x549   :  { %v1282_v32 = vmul.f32 %v5414_v31, %v1281_v30  ;;  %1619 = vmatpush1.bf16.msra.mxu0 %v6007_v4  ;;  %v1439_v30 = vstv %s1438_s25  ;;  %v1437_v31 = vmul.f32 %v4283_v26, %v1436_v28  ;;  %v6090_v26 = vld [vmem:[#allocation8 + $0xa8] ss:$12 sps:$4 sm:$0xff]   ;;  %v5266_v28 = vld [vmem:[#allocation8 + $0xb0] ss:$12 sps:$4 sm:$0xff]  }
 0x54a   :  { %1620 = vmatprep.subr.bf16.mxu0 %v6012_v12 }
 0x54b   :  { %v5949_v34 = vadd.f32 %v1283_v33, %v1282_v32 }
 0x54d   :  { %v5953_v35 = vpack.c.bf16 %v5949_v34, %v5949_v34  ;;  %1621 = vmatpush1.bf16.msra.mxu0 %v6015_v13 }
 0x54e   :  { %1622 = vmatprep.subr.bf16.mxu0 %v6019_v15 }
 0x54f   :  { %4812 = vmatmul.mubr.bf16.vlgmr.msra.gmra.mrb[12].mxu1 %v5953_v35 }
 0x550   :  { %4831 = vmatprep.mubr.msk.bf16.mxu1 %vm5618_vm0, %v5616_v0  ;;  %4816 = vmatpush3.bf16.msra.mxu1 %v5206_v47  ;;  %v5242_v47 = vld [vmem:[#allocation8 + $0x20] ss:$12 sps:$4 sm:$0xff]  }
 0x551   :  { %4817 = vmatprep.subr.bf16.mxu1 %v5616_v0  ;;  %1623 = vmatpush1.bf16.msra.mxu0 %v6022_v16 }
 0x552   :  { %1866 = vmatprep.subr.bf16.mxu0 %v6026_v19 }
 0x554   :  { %4818 = vmatpush3.bf16.msra.mxu1 %v5210_v50  ;;  %v6049_v50 = vld [vmem:[#allocation8 + $0x34] ss:$12 sps:$4 sm:$0xff]  }
 0x555   :  { %4819 = vmatprep.subr.bf16.mxu1 %v5616_v0 }
 0x558   :  { %4820 = vmatpush3.bf16.msra.mxu1 %v5214_v57  ;;  %v6055_v57 = vld [vmem:[#allocation8 + $0x30] ss:$12 sps:$4 sm:$0xff]  }
 0x559   :  { %4821 = vmatprep.subr.bf16.mxu1 %v5616_v0 }
 0x55c   :  { %4822 = vmatpush3.bf16.msra.mxu1 %v5218_v60  ;;  %v5246_v60 = vld [vmem:[#allocation8 + $0x38] ss:$12 sps:$4 sm:$0xff]  }
 0x55d   :  { %4823 = vmatprep.subr.bf16.mxu1 %v5616_v0 }
 0x560   :  { %4824 = vmatpush3.bf16.msra.mxu1 %v5222_v63  ;;  %v6059_v63 = vld [vmem:[#allocation8 + $0x4c] ss:$12 sps:$4 sm:$0xff]  }
 0x561   :  { %4825 = vmatprep.subr.bf16.mxu1 %v5616_v0 }
 0x564   :  { %4826 = vmatpush3.bf16.msra.mxu1 %v5226_v11  ;;  %v5254_v11 = vld [vmem:[#allocation8 + $0x68] ss:$12 sps:$4 sm:$0xff]  }
 0x565   :  { %4827 = vmatprep.subr.bf16.mxu1 %v5616_v0 }
 0x568   :  { %4828 = vmatpush3.bf16.msra.mxu1 %v5230_v14  ;;  %v6073_v14 = vld [vmem:[#allocation8 + $0x7c] ss:$12 sps:$4 sm:$0xff]  }
 0x569   :  { %4829 = vmatprep.subr.bf16.mxu1 %v5616_v0 }
 0x56c   :  { %4830 = vmatpush3.bf16.msra.mxu1 %v5234_v18  ;;  %v6076_v18 = vld [vmem:[#allocation8 + $0x78] ss:$12 sps:$4 sm:$0xff]  }
 0x56d   :  { %4835 = vmatprep.subr.bf16.mxu1 %v5616_v0 }
 0x622   :  { %v1385_v37 = vpop.f32.mrb[12].mxu1 }
 0x623   :  { %v5961_v38 = vadd.f32 %v1385_v37, %v1302_v36  ;;  %v4813_v39 = vpop.f32.mrb[13].mxu1  ;;  %v763_v36 = vmax.f32 %v5911_v25, 0.0 }
 0x624   :  { %v1388_v40 = vpop.f32.mrb[14].mxu1 }
 0x625   :  { %v4814_v42 = vpop.f32.mrb[15].mxu1  ;;  %v1391_v43 = vsel %vm710_vm3, %v5961_v38, -inf }
 0x626   :  { %1392 = vmax.xlane.f32.xlu1 %v1391_v43  ;;  %v6040_v43 = vld [vmem:[#allocation8] ss:$12 sps:$4 sm:$0xff]  }
 0x6b3   :  { %v5965_v48 = vpop.xlane.xlu1 %1392 }
 0x6b4   :  { %vm1407_vm9 = vcmp.eq.f32.partialorder %v5961_v38, %v5965_v48 }
 0x6b5   :  { %v1408_v51 = vsel %vm1407_vm9, %v5774_v21, 128 }
 0x6b6   :  { %v1409_v52 = vsel %vm710_vm3, %v1408_v51, 2147483647  ;;  %v5238_v51 = vld [vmem:[#allocation8 + $0x8] ss:$12 sps:$4 sm:$0xff]  }
 0x6b7   :  { %v1411_v53 = vshra.s32 %v1409_v52, 16  ;;  %v1410_v5 = vand.u32 65535, %v1409_v52 }
 0x6b9   :  { %v1413_v55 = vcvt.s32.f32 %v1411_v53  ;;  %v1412_v8 = vcvt.s32.f32 %v1410_v5  ;;  %v6042_v53 = vld [vmem:[#allocation8 + $0x1c] ss:$12 sps:$4 sm:$0xff]  }
 0x6ba   :  { %v6062_v5 = vld [vmem:[#allocation8 + $0x48] ss:$12 sps:$4 sm:$0xff]  }
 0x6bb   :  { %1414 = vmin.xlane.f32.xlu0 %v1413_v55 }
 0x748   :  { %v1415_v6 = vpop.xlane.xlu0 %1414 }
 0x749   :  { %vm1416_vm10 = vcmp.eq.f32.partialorder %v1413_v55, %v1415_v6  ;;  %v1421_v20 = vcvt.f32.s32 %v1415_v6  ;;  %v6045_v55 = vld [vmem:[#allocation8 + $0x18] ss:$12 sps:$4 sm:$0xff]   ;;  %v5250_v6 = vld [vmem:[#allocation8 + $0x50] ss:$12 sps:$4 sm:$0xff]  }
 0x74a   :  { %v1417_v10 = vsel %vm1416_vm10, %v1412_v8, inf  ;;  %v6066_v8 = vld [vmem:[#allocation8 + $0x64] ss:$12 sps:$4 sm:$0xff]  }
 0x74b   :  { %1418 = vmin.xlane.f32.xlu1 %v1417_v10  ;;  %v1422_v23 = vshll.u32 %v1421_v20, 16  ;;  %v6069_v10 = vld [vmem:[#allocation8 + $0x60] ss:$12 sps:$4 sm:$0xff]  }
 0x74c   :  { %v6080_v20 = vld [vmem:[#allocation8 + $0x94] ss:$12 sps:$4 sm:$0xff]  }
 0x7d8   :  { %v1419_v22 = vpop.xlane.xlu1 %1418 }
 0x7d9   :  { %v1420_v24 = vcvt.f32.s32 %v1419_v22  ;;  %v6083_v22 = vld [vmem:[#allocation8 + $0x90] ss:$12 sps:$4 sm:$0xff]  }
 0x7db   :  { %v1423_v29 = vadd.s32 %v1422_v23, %v1420_v24  ;;  %v5262_v23 = vld [vmem:[#allocation8 + $0x98] ss:$12 sps:$4 sm:$0xff]  }
 0x7dc   :  { %v6087_v24 = vld [vmem:[#allocation8 + $0xac] ss:$12 sps:$4 sm:$0xff]  }
 0x7dd   :  { %vm1424_vm12 = vcmp.eq.s32.totalorder %v5774_v21, %v1423_v29  ;;  %vm1442_vm13 = vcmp.eq.s32.totalorder %v1423_v29, 1 }
 0x7de   :  { %v4281_v32 = vsel %vm1424_vm12, 1.0, %v5616_v0  ;;  %v4285_v33 = vsel %vm1442_vm13, 1.0, %v5616_v0 }
 0x7df   :  { %v1440_v37 = vmul.f32 %v4281_v32, %v1439_v30  ;;  %v1445_v39 = vmul.f32 %v4285_v33, %v1439_v30 }
 0x7e1   :  { %v6038_v40 = vmax.f32 %v763_v36, %v1445_v39  ;;  %v1441_v42 = vadd.f32 %v1440_v37, %v1437_v31 }
 0x7e3   :  { %v1447_v52 = vpack.c.bf16 %v1441_v42, %v1441_v42 }
 0x7e5   :  { %1641 = vmatmul.mubr.bf16.vlgmr.msra.gmra.mrb[16].mxu0 %v1447_v52  ;;  %4832 = vmatmul.mubr.bf16.vlgmr.msra.gmra.mrb[16].mxu1 %v1447_v52 }
 0x7e6   :  { %1867 = vmatpush1.bf16.msra.mxu0 %v6040_v43  ;;  %4836 = vmatpush3.bf16.msra.mxu1 %v5238_v51 }
 0x7e7   :  { %1868 = vmatprep.subr.bf16.mxu0 %v6042_v53  ;;  %4837 = vmatprep.subr.bf16.mxu1 %v5616_v0 }
 0x7e8   :  { %1898 = vmatprep.mubr.bf16.mxu0 %v5617_v1  ;;  %4851 = vmatprep.mubr.msk.bf16.mxu1 %vm5618_vm0, %v5616_v0 }
 0x7ea   :  { %1869 = vmatpush1.bf16.msra.mxu0 %v6045_v55  ;;  %4838 = vmatpush3.bf16.msra.mxu1 %v5242_v47 }
 0x7eb   :  { %1870 = vmatprep.subr.bf16.mxu0 %v6049_v50  ;;  %4839 = vmatprep.subr.bf16.mxu1 %v5616_v0 }
 0x7ee   :  { %1871 = vmatpush1.bf16.msra.mxu0 %v6055_v57  ;;  %4840 = vmatpush3.bf16.msra.mxu1 %v5246_v60 }
 0x7ef   :  { %1872 = vmatprep.subr.bf16.mxu0 %v6059_v63  ;;  %4841 = vmatprep.subr.bf16.mxu1 %v5616_v0 }
 0x7f2   :  { %1873 = vmatpush1.bf16.msra.mxu0 %v6062_v5  ;;  %4842 = vmatpush3.bf16.msra.mxu1 %v5250_v6 }
 0x7f3   :  { %1874 = vmatprep.subr.bf16.mxu0 %v6066_v8  ;;  %4843 = vmatprep.subr.bf16.mxu1 %v5616_v0 }
 0x7f6   :  { %1875 = vmatpush1.bf16.msra.mxu0 %v6069_v10  ;;  %4844 = vmatpush3.bf16.msra.mxu1 %v5254_v11 }
 0x7f7   :  { %1876 = vmatprep.subr.bf16.mxu0 %v6073_v14  ;;  %4845 = vmatprep.subr.bf16.mxu1 %v5616_v0 }
 0x7fa   :  { %1877 = vmatpush1.bf16.msra.mxu0 %v6076_v18  ;;  %4846 = vmatpush3.bf16.msra.mxu1 %v5258_v17 }
 0x7fb   :  { %1878 = vmatprep.subr.bf16.mxu0 %v6080_v20  ;;  %4847 = vmatprep.subr.bf16.mxu1 %v5616_v0 }
 0x7fe   :  { %1879 = vmatpush1.bf16.msra.mxu0 %v6083_v22  ;;  %4848 = vmatpush3.bf16.msra.mxu1 %v5262_v23 }
 0x7ff   :  { %1880 = vmatprep.subr.bf16.mxu0 %v6087_v24  ;;  %4849 = vmatprep.subr.bf16.mxu1 %v5616_v0 }
 0x802   :  { %1881 = vmatpush1.bf16.msra.mxu0 %v6090_v26  ;;  %4850 = vmatpush3.bf16.msra.mxu1 %v5266_v28 }
 0x803   :  { %4855 = vmatprep.subr.bf16.mxu0 %v5616_v0  ;;  %2291 = vmatprep.subr.bf16.mxu1 %v5973_v46  ;;  %v5269_v46 = vld [vmem:[#allocation10 + $0x10] sm:$0xff]  }
 0x805   :  { %1899 = vmatmul.mubr.bf16.vlgmr.msra.gmra.mrb[16].mxu0 %v5953_v35  ;;  %4852 = vmatmul.mubr.bf16.vlgmr.msra.gmra.mrb[20].mxu1 %v5953_v35  ;;  %v5267_v35 = vld [vmem:[#allocation10] sm:$0xff]  }
 0x806   :  { %4871 = vmatprep.mubr.msk.bf16.mxu0 %vm5618_vm0, %v5616_v0  ;;  %2292 = vmatpush1.bf16.msra.mxu1 %v5971_v44  ;;  %v5268_v44 = vld [vmem:[#allocation10 + $0x8] sm:$0xff]  }
 0x807   :  { %2293 = vmatprep.subr.bf16.mxu1 %v5975_v49  ;;  %2323 = vmatprep.mubr.bf16.mxu1 %v5617_v1  ;;  %v5270_v49 = vld [vmem:[#allocation10 + $0x18] sm:$0xff]  }
 0x808   :  { %4856 = vmatpush3.bf16.msra.mxu0 %v5267_v35 }
 0x809   :  { %4857 = vmatprep.subr.bf16.mxu0 %v5616_v0 }
 0x80a   :  { %2294 = vmatpush1.bf16.msra.mxu1 %v5979_v41  ;;  %v5271_v41 = vld [vmem:[#allocation10 + $0x20] sm:$0xff]  }
 0x80b   :  { %2295 = vmatprep.subr.bf16.mxu1 %v5983_v56  ;;  %v5272_v56 = vld [vmem:[#allocation10 + $0x28] sm:$0xff]  }
 0x80c   :  { %4858 = vmatpush3.bf16.msra.mxu0 %v5268_v44 }
 0x80d   :  { %4859 = vmatprep.subr.bf16.mxu0 %v5616_v0 }
 0x80e   :  { %2296 = vmatpush1.bf16.msra.mxu1 %v5986_v58  ;;  %v5273_v58 = vld [vmem:[#allocation10 + $0x30] sm:$0xff]  }
 0x80f   :  { %2297 = vmatprep.subr.bf16.mxu1 %v5990_v59  ;;  %v5274_v59 = vld [vmem:[#allocation10 + $0x38] sm:$0xff]  }
 0x810   :  { %4860 = vmatpush3.bf16.msra.mxu0 %v5269_v46 }
 0x811   :  { %4861 = vmatprep.subr.bf16.mxu0 %v5616_v0 }
 0x812   :  { %2298 = vmatpush1.bf16.msra.mxu1 %v5993_v61 }
 0x813   :  { %2299 = vmatprep.subr.bf16.mxu1 %v5997_v62 }
 0x814   :  { %4862 = vmatpush3.bf16.msra.mxu0 %v5270_v49 }
 0x815   :  { %4863 = vmatprep.subr.bf16.mxu0 %v5616_v0 }
 0x816   :  { %2300 = vmatpush1.bf16.msra.mxu1 %v6000_v2 }
 0x817   :  { %2301 = vmatprep.subr.bf16.mxu1 %v6004_v3 }
 0x818   :  { %4864 = vmatpush3.bf16.msra.mxu0 %v5271_v41 }
 0x819   :  { %4865 = vmatprep.subr.bf16.mxu0 %v5616_v0 }
 0x81a   :  { %2302 = vmatpush1.bf16.msra.mxu1 %v6007_v4  ;;  %v1721_v4 = vld [vmem:[%s6533_s5] sm:$0x7] }
 0x81b   :  { %2303 = vmatprep.subr.bf16.mxu1 %v6012_v12  ;;  %v1854_v12 = vrot.slane %v1721_v4, %v5863_v7  ;;  %v1862_v6 = vrot.slane %v1721_v4, %v5872_v27 }
 0x81c   :  { %4866 = vmatpush3.bf16.msra.mxu0 %v5272_v56 }
 0x81d   :  { %4867 = vmatprep.subr.bf16.mxu0 %v5616_v0 }
 0x81e   :  { %2304 = vmatpush1.bf16.msra.mxu1 %v6015_v13 }
 0x81f   :  { %2305 = vmatprep.subr.bf16.mxu1 %v6019_v15 }
 0x820   :  { %4868 = vmatpush3.bf16.msra.mxu0 %v5273_v58 }
 0x821   :  { %4869 = vmatprep.subr.bf16.mxu0 %v5616_v0 }
 0x822   :  { %2306 = vmatpush1.bf16.msra.mxu1 %v6022_v16  ;;  %v1858_v16 = vrot.slane %v1721_v4, %v5868_v9 }
 0x823   :  { %2549 = vmatprep.subr.bf16.mxu1 %v6026_v19 }
 0x824   :  { %4870 = vmatpush3.bf16.msra.mxu0 %v5274_v59 }
 0x825   :  { %4875 = vmatprep.subr.bf16.mxu0 %v5616_v0 }
 0x8b8   :  { %v1683_v61 = vpop.f32.mrb[16].mxu1 }
 0x8b9   :  { %v4833_v62 = vpop.f32.mrb[17].mxu1 }
 0x8ba   :  { %v1686_v2 = vpop.f32.mrb[18].mxu1 }
 0x8bb   :  { %v4834_v3 = vpop.f32.mrb[19].mxu1 }
 0x8d8   :  { %v1900_v13 = vpop.f32.mrb[16].mxu0  ;;  %v1941_v15 = vpop.f32.mrb[20].mxu1 }
 0x8d9   :  { %v1901_v19 = vadd.f32 %v1900_v13, %v1854_v12  ;;  %v1902_v29 = vpop.f32.mrb[17].mxu0  ;;  %v4853_v30 = vpop.f32.mrb[21].mxu1  ;;  %v1942_v17 = vadd.f32 %v1941_v15, %v1862_v6  ;;  %v5282_v6 = vld [vmem:[#allocation5 + $0xb0] ss:$12 sps:$4 sm:$0xff]  }
 0x8da   :  { %v1904_v31 = vpop.f32.mrb[18].mxu0  ;;  %v1944_v32 = vpop.f32.mrb[22].mxu1  ;;  %v1903_v42 = vadd.f32 %v1902_v29, %v1858_v16  ;;  %v5275_v30 = vld [vmem:[#allocation5 + $0x8] ss:$12 sps:$4 sm:$0xff]  }
 0x8db   :  { %v4334_v33 = vmul.f32 -1.442695, %v1901_v19  ;;  %v1905_v37 = vpop.f32.mrb[19].mxu0  ;;  %v4854_v39 = vpop.f32.mrb[23].mxu1  ;;  %v5276_v31 = vld [vmem:[#allocation5 + $0x20] ss:$12 sps:$4 sm:$0xff]  }
 0x8dc   :  { %v4335_v51 = vmul.f32 -1.442695, %v1903_v42  ;;  %v5277_v32 = vld [vmem:[#allocation5 + $0x38] ss:$12 sps:$4 sm:$0xff]   ;;  %v5279_v37 = vld [vmem:[#allocation5 + $0x68] ss:$12 sps:$4 sm:$0xff]  }
 0x8dd   :  { %5415 = vpow2.f32 %v4334_v33  ;;  %v5278_v33 = vld [vmem:[#allocation5 + $0x50] ss:$12 sps:$4 sm:$0xff]  }
 0x8de   :  { %5417 = vpow2.f32 %v4335_v51 }
 0x8e7   :  { %v5416_v52 = vpop.eup %5415 }
 0x8e8   :  { %v1951_v47 = vadd.f32 1.0, %v5416_v52  ;;  %v5418_v60 = vpop.eup %5417 }
 0x8e9   :  { %v1958_v11 = vadd.f32 1.0, %v5418_v60  ;;  %v5281_v60 = vld [vmem:[#allocation5 + $0x98] ss:$12 sps:$4 sm:$0xff]  }
 0x8ea   :  { %5419 = vrcp.f32 %v1951_v47  ;;  %v5280_v47 = vld [vmem:[#allocation5 + $0x80] ss:$12 sps:$4 sm:$0xff]  }
 0x8eb   :  { %5421 = vrcp.f32 %v1958_v11  ;;  %v2111_v11 = vstv %s4345_s1 }
 0x8ec   :  { %vm2112_vm1 = vcmp.eq.s32.totalorder %v5774_v21, %v2111_v11 }
 0x8f4   :  { %v5420_v23 = vpop.eup %5419 }
 0x8f5   :  { %v1961_v28 = vmul.f32 %v5420_v23, %v1942_v17  ;;  %v5422_v44 = vpop.eup %5421 }
 0x8f6   :  { %v1964_v46 = vsub.f32 1.0, %v5422_v44  ;;  %v1966_v56 = vmul.f32 %v5422_v44, %v5949_v34  ;;  %v4346_v44 = vsel %vm2112_vm1, 1.0, %v5616_v0 }
 0x8f7   :  { %v1962_v35 = vadd.f32 %v1961_v28, %v1683_v61  ;;  %v1985_v61 = vld [vmem:[%s6535_s7] sm:$0x1] }
 0x8f9   :  { %5423 = vtanh.f32 %v1962_v35 }
 0x903   :  { %v5424_v49 = vpop.eup %5423 }
 0x904   :  { %v1965_v41 = vmul.f32 %v5424_v49, %v1964_v46  ;;  %v2119_v46 = vstv %s2118_s9 }
 0x906   :  { %v6133_v58 = vadd.f32 %v1966_v56, %v1965_v41  ;;  %v2122_v41 = vstv %s2121_s6  ;;  %v2120_v56 = vmul.f32 %v4346_v44, %v2119_v46 }
 0x908   :  { %v6137_v59 = vpack.c.bf16 %v6133_v58, %v6133_v58 }
 0x90a   :  { %4872 = vmatmul.mubr.bf16.vlgmr.msra.gmra.mrb[20].mxu0 %v6137_v59 }
 0x90b   :  { %4891 = vmatprep.mubr.msk.bf16.mxu0 %vm5618_vm0, %v5616_v0  ;;  %4876 = vmatpush3.bf16.msra.mxu0 %v5275_v30  ;;  %v2404_v30 = vld [vmem:[%s6533_s5] sm:$0x7] }
 0x90c   :  { %4877 = vmatprep.subr.bf16.mxu0 %v5616_v0  ;;  %v2545_v46 = vrot.slane %v2404_v30, %v5872_v27 }
 0x90f   :  { %4878 = vmatpush3.bf16.msra.mxu0 %v5276_v31  ;;  %v2537_v31 = vrot.slane %v2404_v30, %v5863_v7 }
 0x910   :  { %4879 = vmatprep.subr.bf16.mxu0 %v5616_v0 }
 0x913   :  { %4880 = vmatpush3.bf16.msra.mxu0 %v5277_v32 }
 0x914   :  { %4881 = vmatprep.subr.bf16.mxu0 %v5616_v0 }
 0x917   :  { %4882 = vmatpush3.bf16.msra.mxu0 %v5278_v33 }
 0x918   :  { %4883 = vmatprep.subr.bf16.mxu0 %v5616_v0 }
 0x91b   :  { %4884 = vmatpush3.bf16.msra.mxu0 %v5279_v37  ;;  %v2541_v37 = vrot.slane %v2404_v30, %v5868_v9  ;;  %v6246_v30 = vld [vmem:[#allocation5 + $0x18] ss:$12 sps:$4 sm:$0xff]  }
 0x91c   :  { %4885 = vmatprep.subr.bf16.mxu0 %v5616_v0 }
 0x91f   :  { %4886 = vmatpush3.bf16.msra.mxu0 %v5280_v47 }
 0x920   :  { %4887 = vmatprep.subr.bf16.mxu0 %v5616_v0 }
 0x923   :  { %4888 = vmatpush3.bf16.msra.mxu0 %v5281_v60 }
 0x924   :  { %4889 = vmatprep.subr.bf16.mxu0 %v5616_v0 }
 0x927   :  { %4890 = vmatpush3.bf16.msra.mxu0 %v5282_v6 }
 0x928   :  { %4895 = vmatprep.subr.bf16.mxu0 %v5616_v0 }
 0x9dd   :  { %v2068_v62 = vpop.f32.mrb[20].mxu0 }
 0x9de   :  { %v6145_v2 = vadd.f32 %v2068_v62, %v1985_v61  ;;  %v4873_v3 = vpop.f32.mrb[21].mxu0 }
 0x9df   :  { %v2071_v34 = vpop.f32.mrb[22].mxu0 }
 0x9e0   :  { %v4874_v4 = vpop.f32.mrb[23].mxu0  ;;  %v2074_v12 = vsel %vm710_vm3, %v6145_v2, -inf }
 0x9e1   :  { %2075 = vmax.xlane.f32.xlu0 %v2074_v12  ;;  %v5283_v12 = vld [vmem:[#allocation8 + $0x8] ss:$12 sps:$4 sm:$0xff]  }
 0xa6e   :  { %v6149_v13 = vpop.xlane.xlu0 %2075 }
 0xa6f   :  { %vm2090_vm14 = vcmp.eq.f32.partialorder %v6145_v2, %v6149_v13 }
 0xa70   :  { %v2091_v15 = vsel %vm2090_vm14, %v5774_v21, 128 }
 0xa71   :  { %v2092_v16 = vsel %vm710_vm3, %v2091_v15, 2147483647 }
 0xa72   :  { %v2094_v19 = vshra.s32 %v2092_v16, 16  ;;  %v2093_v39 = vand.u32 65535, %v2092_v16  ;;  %v5284_v16 = vld [vmem:[#allocation8 + $0x20] ss:$12 sps:$4 sm:$0xff]  }
 0xa74   :  { %v2096_v29 = vcvt.s32.f32 %v2094_v19  ;;  %v2095_v51 = vcvt.s32.f32 %v2093_v39  ;;  %v5285_v19 = vld [vmem:[#allocation8 + $0x38] ss:$12 sps:$4 sm:$0xff]  }
 0xa76   :  { %2097 = vmin.xlane.f32.xlu1 %v2096_v29 }
 0xb03   :  { %v2098_v42 = vpop.xlane.xlu1 %2097 }
 0xb04   :  { %vm2099_vm15 = vcmp.eq.f32.partialorder %v2096_v29, %v2098_v42  ;;  %v2104_v17 = vcvt.f32.s32 %v2098_v42 }
 0xb05   :  { %v2100_v52 = vsel %vm2099_vm15, %v2095_v51, inf }
 0xb06   :  { %2101 = vmin.xlane.f32.xlu0 %v2100_v52  ;;  %v2105_v28 = vshll.u32 %v2104_v17, 16 }
 0xb93   :  { %v2102_v23 = vpop.xlane.xlu0 %2101 }
 0xb94   :  { %v2103_v35 = vcvt.f32.s32 %v2102_v23 }
 0xb96   :  { %v2106_v49 = vadd.s32 %v2105_v28, %v2103_v35 }
 0xb98   :  { %vm2107_vm2 = vcmp.eq.s32.totalorder %v5774_v21, %v2106_v49  ;;  %vm2125_vm4 = vcmp.eq.s32.totalorder %v2106_v49, 1 }
 0xb99   :  { %v4344_v61 = vsel %vm2107_vm2, 1.0, %v5616_v0  ;;  %v4348_v62 = vsel %vm2125_vm4, 1.0, %v5616_v0 }
 0xb9a   :  { %v2123_v3 = vmul.f32 %v4344_v61, %v2122_v41  ;;  %v6168_v34 = vmul.f32 %v4348_v62, %v2122_v41 }
 0xb9c   :  { %v2124_v4 = vadd.f32 %v2123_v3, %v2120_v56 }
 0xb9e   :  { %v2130_v15 = vpack.c.bf16 %v2124_v4, %v2124_v4 }
 0xba0   :  { %2324 = vmatmul.mubr.bf16.vlgmr.msra.gmra.mrb[24].mxu1 %v2130_v15  ;;  %4892 = vmatmul.mubr.bf16.vlgmr.msra.gmra.mrb[24].mxu0 %v2130_v15 }
 0xba1   :  { %2550 = vmatpush1.bf16.msra.mxu1 %v6040_v43  ;;  %4896 = vmatpush3.bf16.msra.mxu0 %v5283_v12  ;;  %v5286_v43 = vld [vmem:[#allocation8 + $0x50] ss:$12 sps:$4 sm:$0xff]  }
 0xba2   :  { %2551 = vmatprep.subr.bf16.mxu1 %v6042_v53  ;;  %4897 = vmatprep.subr.bf16.mxu0 %v5616_v0  ;;  %v5287_v53 = vld [vmem:[#allocation8 + $0x68] ss:$12 sps:$4 sm:$0xff]  }
 0xba3   :  { %2581 = vmatprep.mubr.bf16.mxu1 %v5617_v1  ;;  %4911 = vmatprep.mubr.msk.bf16.mxu0 %vm5618_vm0, %v5616_v0 }
 0xba5   :  { %2552 = vmatpush1.bf16.msra.mxu1 %v6045_v55  ;;  %4898 = vmatpush3.bf16.msra.mxu0 %v5284_v16  ;;  %v5288_v55 = vld [vmem:[#allocation8 + $0x80] ss:$12 sps:$4 sm:$0xff]  }
 0xba6   :  { %2553 = vmatprep.subr.bf16.mxu1 %v6049_v50  ;;  %4899 = vmatprep.subr.bf16.mxu0 %v5616_v0  ;;  %v5289_v50 = vld [vmem:[#allocation8 + $0x98] ss:$12 sps:$4 sm:$0xff]  }
 0xba9   :  { %2554 = vmatpush1.bf16.msra.mxu1 %v6055_v57  ;;  %4900 = vmatpush3.bf16.msra.mxu0 %v5285_v19  ;;  %v5290_v57 = vld [vmem:[#allocation8 + $0xb0] ss:$12 sps:$4 sm:$0xff]  }
 0xbaa   :  { %2555 = vmatprep.subr.bf16.mxu1 %v6059_v63  ;;  %4901 = vmatprep.subr.bf16.mxu0 %v5616_v0  ;;  %v5291_v63 = vld [vmem:[#allocation10] sm:$0xff]  }
 0xbad   :  { %2556 = vmatpush1.bf16.msra.mxu1 %v6062_v5  ;;  %4902 = vmatpush3.bf16.msra.mxu0 %v5286_v43  ;;  %v5292_v5 = vld [vmem:[#allocation10 + $0x8] sm:$0xff]  }
 0xbae   :  { %2557 = vmatprep.subr.bf16.mxu1 %v6066_v8  ;;  %4903 = vmatprep.subr.bf16.mxu0 %v5616_v0  ;;  %v5293_v8 = vld [vmem:[#allocation10 + $0x10] sm:$0xff]  }
 0xbb1   :  { %2558 = vmatpush1.bf16.msra.mxu1 %v6069_v10  ;;  %4904 = vmatpush3.bf16.msra.mxu0 %v5287_v53  ;;  %v5294_v10 = vld [vmem:[#allocation10 + $0x18] sm:$0xff]  }
 0xbb2   :  { %2559 = vmatprep.subr.bf16.mxu1 %v6073_v14  ;;  %4905 = vmatprep.subr.bf16.mxu0 %v5616_v0  ;;  %v5295_v14 = vld [vmem:[#allocation10 + $0x20] sm:$0xff]   ;;  %v2668_v53 = vld [vmem:[%s6535_s7] sm:$0x1] }
 0xbb5   :  { %2560 = vmatpush1.bf16.msra.mxu1 %v6076_v18  ;;  %4906 = vmatpush3.bf16.msra.mxu0 %v5288_v55  ;;  %v5296_v18 = vld [vmem:[#allocation10 + $0x28] sm:$0xff]  }
 0xbb6   :  { %2561 = vmatprep.subr.bf16.mxu1 %v6080_v20  ;;  %4907 = vmatprep.subr.bf16.mxu0 %v5616_v0  ;;  %v5297_v20 = vld [vmem:[#allocation10 + $0x30] sm:$0xff]  }
 0xbb9   :  { %2562 = vmatpush1.bf16.msra.mxu1 %v6083_v22  ;;  %4908 = vmatpush3.bf16.msra.mxu0 %v5289_v50  ;;  %v5298_v22 = vld [vmem:[#allocation10 + $0x38] sm:$0xff]  }
 0xbba   :  { %2563 = vmatprep.subr.bf16.mxu1 %v6087_v24  ;;  %4909 = vmatprep.subr.bf16.mxu0 %v5616_v0 }
 0xbbd   :  { %2564 = vmatpush1.bf16.msra.mxu1 %v6090_v26  ;;  %4910 = vmatpush3.bf16.msra.mxu0 %v5290_v57 }
 0xbbe   :  { %4915 = vmatprep.subr.bf16.mxu1 %v5616_v0 }
 0xbc0   :  { %2582 = vmatmul.mubr.bf16.vlgmr.msra.gmra.mrb[24].mxu1 %v6137_v59  ;;  %4912 = vmatmul.mubr.bf16.vlgmr.msra.gmra.mrb[28].mxu0 %v6137_v59 }
 0xbc1   :  { %4931 = vmatprep.mubr.msk.bf16.mxu1 %vm5618_vm0, %v5616_v0  ;;  %3006 = vmatprep.mubr.bf16.mxu0 %v5617_v1 }
 0xbc2   :  { %4916 = vmatpush3.bf16.msra.mxu1 %v5291_v63 }
 0xbc3   :  { %4917 = vmatprep.subr.bf16.mxu1 %v5616_v0 }
 0xbc6   :  { %4918 = vmatpush3.bf16.msra.mxu1 %v5292_v5 }
 0xbc7   :  { %4919 = vmatprep.subr.bf16.mxu1 %v5616_v0 }
 0xbca   :  { %4920 = vmatpush3.bf16.msra.mxu1 %v5293_v8 }
 0xbcb   :  { %4921 = vmatprep.subr.bf16.mxu1 %v5616_v0 }
 0xbce   :  { %4922 = vmatpush3.bf16.msra.mxu1 %v5294_v10 }
 0xbcf   :  { %4923 = vmatprep.subr.bf16.mxu1 %v5616_v0 }
 0xbd2   :  { %4924 = vmatpush3.bf16.msra.mxu1 %v5295_v14 }
 0xbd3   :  { %4925 = vmatprep.subr.bf16.mxu1 %v5616_v0 }
 0xbd6   :  { %4926 = vmatpush3.bf16.msra.mxu1 %v5296_v18 }
 0xbd7   :  { %4927 = vmatprep.subr.bf16.mxu1 %v5616_v0 }
 0xbda   :  { %4928 = vmatpush3.bf16.msra.mxu1 %v5297_v20 }
 0xbdb   :  { %4929 = vmatprep.subr.bf16.mxu1 %v5616_v0 }
 0xbde   :  { %4930 = vmatpush3.bf16.msra.mxu1 %v5298_v22  ;;  %v6238_v22 = vld [vmem:[#allocation5] ss:$12 sps:$4 sm:$0xff]  }
 0xbdf   :  { %4935 = vmatprep.subr.bf16.mxu1 %v5616_v0 }
 0xc73   :  { %v2366_v24 = vpop.f32.mrb[24].mxu0 }
 0xc74   :  { %v4893_v26 = vpop.f32.mrb[25].mxu0 }
 0xc75   :  { %v2369_v59 = vpop.f32.mrb[26].mxu0  ;;  %v5302_v26 = vld [vmem:[#allocation5 + $0x8] ss:$12 sps:$4 sm:$0xff]  }
 0xc76   :  { %v4894_v29 = vpop.f32.mrb[27].mxu0  ;;  %v6242_v59 = vld [vmem:[#allocation5 + $0x1c] ss:$12 sps:$4 sm:$0xff]  }
 0xc77   :  { %v5306_v29 = vld [vmem:[#allocation5 + $0x20] ss:$12 sps:$4 sm:$0xff]  }
 0xc93   :  { %v2583_v32 = vpop.f32.mrb[24].mxu1  ;;  %v2624_v33 = vpop.f32.mrb[28].mxu0 }
 0xc94   :  { %v2584_v39 = vadd.f32 %v2583_v32, %v2537_v31  ;;  %v2585_v42 = vpop.f32.mrb[25].mxu1  ;;  %v4913_v51 = vpop.f32.mrb[29].mxu0  ;;  %v2625_v41 = vadd.f32 %v2624_v33, %v2545_v46  ;;  %v6250_v31 = vld [vmem:[#allocation5 + $0x34] ss:$12 sps:$4 sm:$0xff]   ;;  %v5310_v32 = vld [vmem:[#allocation5 + $0x38] ss:$12 sps:$4 sm:$0xff]  }
 0xc95   :  { %v2587_v52 = vpop.f32.mrb[26].mxu1  ;;  %v2627_v47 = vpop.f32.mrb[30].mxu0  ;;  %v2586_v17 = vadd.f32 %v2585_v42, %v2541_v37  ;;  %v6253_v33 = vld [vmem:[#allocation5 + $0x30] ss:$12 sps:$4 sm:$0xff]   ;;  %v6257_v37 = vld [vmem:[#allocation5 + $0x4c] ss:$12 sps:$4 sm:$0xff]  }
 0xc96   :  { %v4397_v60 = vmul.f32 -1.442695, %v2584_v39  ;;  %v2588_v6 = vpop.f32.mrb[27].mxu1  ;;  %v4914_v11 = vpop.f32.mrb[31].mxu0  ;;  %v5314_v39 = vld [vmem:[#allocation5 + $0x50] ss:$12 sps:$4 sm:$0xff]  }
 0xc97   :  { %v4398_v23 = vmul.f32 -1.442695, %v2586_v17  ;;  %v6260_v42 = vld [vmem:[#allocation5 + $0x48] ss:$12 sps:$4 sm:$0xff]   ;;  %v6264_v51 = vld [vmem:[#allocation5 + $0x64] ss:$12 sps:$4 sm:$0xff]  }
 0xc98   :  { %5425 = vpow2.f32 %v4397_v60  ;;  %v5318_v52 = vld [vmem:[#allocation5 + $0x68] ss:$12 sps:$4 sm:$0xff]   ;;  %v6267_v47 = vld [vmem:[#allocation5 + $0x60] ss:$12 sps:$4 sm:$0xff]   ;;  %v6274_v6 = vld [vmem:[#allocation5 + $0x78] ss:$12 sps:$4 sm:$0xff]  }
 0xc99   :  { %5427 = vpow2.f32 %v4398_v23  ;;  %v6271_v60 = vld [vmem:[#allocation5 + $0x7c] ss:$12 sps:$4 sm:$0xff]  }
 0xc9a   :  { %v6282_v46 = vld [vmem:[#allocation5 + $0x90] ss:$12 sps:$4 sm:$0xff]  }
 0xca2   :  { %v5426_v28 = vpop.eup %5425 }
 0xca3   :  { %v2634_v35 = vadd.f32 1.0, %v5426_v28  ;;  %v5428_v44 = vpop.eup %5427 }
 0xca4   :  { %v2641_v49 = vadd.f32 1.0, %v5428_v44  ;;  %v6279_v44 = vld [vmem:[#allocation5 + $0x94] ss:$12 sps:$4 sm:$0xff]  }
 0xca5   :  { %5429 = vrcp.f32 %v2634_v35  ;;  %v5322_v35 = vld [vmem:[#allocation5 + $0x80] ss:$12 sps:$4 sm:$0xff]  }
 0xca6   :  { %5431 = vrcp.f32 %v2641_v49  ;;  %v5326_v49 = vld [vmem:[#allocation5 + $0x98] ss:$12 sps:$4 sm:$0xff]  }
 0xcaf   :  { %v5430_v56 = vpop.eup %5429 }
 0xcb0   :  { %v2644_v61 = vmul.f32 %v5430_v56, %v2625_v41  ;;  %v5432_v3 = vpop.eup %5431  ;;  %v6286_v41 = vld [vmem:[#allocation5 + $0xac] ss:$12 sps:$4 sm:$0xff]   ;;  %v6289_v56 = vld [vmem:[#allocation5 + $0xa8] ss:$12 sps:$4 sm:$0xff]  }
 0xcb1   :  { %v2647_v4 = vsub.f32 1.0, %v5432_v3  ;;  %v2649_v16 = vmul.f32 %v5432_v3, %v6133_v58  ;;  %v2794_v3 = vstv %s4408_s14 }
 0xcb2   :  { %v2645_v62 = vadd.f32 %v2644_v61, %v2366_v24  ;;  %v6240_v24 = vld [vmem:[#allocation5 + $0x4] ss:$12 sps:$4 sm:$0xff]   ;;  %vm2795_vm7 = vcmp.eq.s32.totalorder %v5774_v21, %v2794_v3 }
 0xcb3   :  { %2974 = vmatprep.subr.bf16.mxu0 %v6240_v24  ;;  %v5330_v61 = vld [vmem:[#allocation5 + $0xb0] ss:$12 sps:$4 sm:$0xff]  }
 0xcb4   :  { %5433 = vtanh.f32 %v2645_v62  ;;  %2975 = vmatpush1.bf16.msra.mxu0 %v6238_v22  ;;  %v6293_v62 = vld [vmem:[#allocation8 + $0x4] ss:$12 sps:$4 sm:$0xff]  }
 0xcb5   :  { %2976 = vmatprep.subr.bf16.mxu0 %v6242_v59  ;;  %v6330_v3 = vld [vmem:[#allocation8 + $0x64] ss:$12 sps:$4 sm:$0xff]  }
 0xcb8   :  { %2977 = vmatpush1.bf16.msra.mxu0 %v6246_v30 }
 0xcb9   :  { %2978 = vmatprep.subr.bf16.mxu0 %v6250_v31 }
 0xcbc   :  { %2979 = vmatpush1.bf16.msra.mxu0 %v6253_v33 }
 0xcbd   :  { %2980 = vmatprep.subr.bf16.mxu0 %v6257_v37 }
 0xcbe   :  { %v5434_v12 = vpop.eup %5433 }
 0xcbf   :  { %v2648_v15 = vmul.f32 %v5434_v12, %v2647_v4 }
 0xcc0   :  { %2981 = vmatpush1.bf16.msra.mxu0 %v6260_v42 }
 0xcc1   :  { %v6216_v19 = vadd.f32 %v2649_v16, %v2648_v15  ;;  %2982 = vmatprep.subr.bf16.mxu0 %v6264_v51 }
 0xcc3   :  { %v6220_v43 = vpack.c.bf16 %v6216_v19, %v6216_v19 }
 0xcc4   :  { %2983 = vmatpush1.bf16.msra.mxu0 %v6267_v47 }
 0xcc5   :  { %4932 = vmatmul.mubr.bf16.vlgmr.msra.gmra.mrb[28].mxu1 %v6220_v43  ;;  %2984 = vmatprep.subr.bf16.mxu0 %v6271_v60 }
 0xcc6   :  { %4951 = vmatprep.mubr.msk.bf16.mxu1 %vm5618_vm0, %v5616_v0  ;;  %4936 = vmatpush3.bf16.msra.mxu1 %v5302_v26  ;;  %v6304_v26 = vld [vmem:[#allocation8] ss:$12 sps:$4 sm:$0xff]  }
 0xcc7   :  { %4937 = vmatprep.subr.bf16.mxu1 %v5616_v0 }
 0xcc8   :  { %2985 = vmatpush1.bf16.msra.mxu0 %v6274_v6 }
 0xcc9   :  { %2986 = vmatprep.subr.bf16.mxu0 %v6279_v44 }
 0xcca   :  { %4938 = vmatpush3.bf16.msra.mxu1 %v5306_v29  ;;  %v5334_v29 = vld [vmem:[#allocation8 + $0x8] ss:$12 sps:$4 sm:$0xff]  }
 0xccb   :  { %4939 = vmatprep.subr.bf16.mxu1 %v5616_v0 }
 0xccc   :  { %2987 = vmatpush1.bf16.msra.mxu0 %v6282_v46 }
 0xccd   :  { %2988 = vmatprep.subr.bf16.mxu0 %v6286_v41 }
 0xcce   :  { %4940 = vmatpush3.bf16.msra.mxu1 %v5310_v32 }
 0xccf   :  { %4941 = vmatprep.subr.bf16.mxu1 %v5616_v0 }
 0xcd0   :  { %2989 = vmatpush1.bf16.msra.mxu0 %v6289_v56 }
 0xcd1   :  { %3232 = vmatprep.subr.bf16.mxu0 %v6293_v62 }
 0xcd2   :  { %4942 = vmatpush3.bf16.msra.mxu1 %v5314_v39  ;;  %v6306_v39 = vld [vmem:[#allocation8 + $0x1c] ss:$12 sps:$4 sm:$0xff]  }
 0xcd3   :  { %4943 = vmatprep.subr.bf16.mxu1 %v5616_v0 }
 0xcd6   :  { %4944 = vmatpush3.bf16.msra.mxu1 %v5318_v52  ;;  %v6309_v52 = vld [vmem:[#allocation8 + $0x18] ss:$12 sps:$4 sm:$0xff]  }
 0xcd7   :  { %4945 = vmatprep.subr.bf16.mxu1 %v5616_v0 }
 0xcda   :  { %4946 = vmatpush3.bf16.msra.mxu1 %v5322_v35  ;;  %v6323_v35 = vld [vmem:[#allocation8 + $0x4c] ss:$12 sps:$4 sm:$0xff]  }
 0xcdb   :  { %4947 = vmatprep.subr.bf16.mxu1 %v5616_v0 }
 0xcde   :  { %4948 = vmatpush3.bf16.msra.mxu1 %v5326_v49  ;;  %v6326_v49 = vld [vmem:[#allocation8 + $0x48] ss:$12 sps:$4 sm:$0xff]  }
 0xcdf   :  { %4949 = vmatprep.subr.bf16.mxu1 %v5616_v0 }
 0xce2   :  { %4950 = vmatpush3.bf16.msra.mxu1 %v5330_v61  ;;  %v5346_v61 = vld [vmem:[#allocation8 + $0x50] ss:$12 sps:$4 sm:$0xff]  }
 0xce3   :  { %4955 = vmatprep.subr.bf16.mxu1 %v5616_v0 }
 0xd98   :  { %v2751_v55 = vpop.f32.mrb[28].mxu1 }
 0xd99   :  { %v6228_v50 = vadd.f32 %v2751_v55, %v2668_v53  ;;  %v4933_v57 = vpop.f32.mrb[29].mxu1  ;;  %v4409_v53 = vsel %vm2795_vm7, 1.0, %v5616_v0  ;;  %v2802_v55 = vstv %s2801_s16 }
 0xd9a   :  { %v2754_v58 = vpop.f32.mrb[30].mxu1 }
 0xd9b   :  { %v4934_v63 = vpop.f32.mrb[31].mxu1  ;;  %v2757_v5 = vsel %vm710_vm3, %v6228_v50, -inf  ;;  %v2805_v58 = vstv %s2804_s17 }
 0xd9c   :  { %2758 = vmax.xlane.f32.xlu1 %v2757_v5  ;;  %v2803_v63 = vmul.f32 %v4409_v53, %v2802_v55  ;;  %v5354_v53 = vld [vmem:[#allocation8 + $0x80] ss:$12 sps:$4 sm:$0xff]  }
 0xd9d   :  { %v6344_v55 = vld [vmem:[#allocation8 + $0x94] ss:$12 sps:$4 sm:$0xff]  }
 0xe29   :  { %v6232_v8 = vpop.xlane.xlu1 %2758 }
 0xe2a   :  { %vm2773_vm5 = vcmp.eq.f32.partialorder %v6228_v50, %v6232_v8 }
 0xe2b   :  { %v2774_v10 = vsel %vm2773_vm5, %v5774_v21, 128 }
 0xe2c   :  { %v2775_v14 = vsel %vm710_vm3, %v2774_v10, 2147483647 }
 0xe2d   :  { %v2777_v18 = vshra.s32 %v2775_v14, 16  ;;  %v2776_v11 = vand.u32 65535, %v2775_v14 }
 0xe2f   :  { %v2779_v20 = vcvt.s32.f32 %v2777_v18  ;;  %v2778_v23 = vcvt.s32.f32 %v2776_v11  ;;  %v5338_v11 = vld [vmem:[#allocation8 + $0x20] ss:$12 sps:$4 sm:$0xff]  }
 0xe31   :  { %2780 = vmin.xlane.f32.xlu0 %v2779_v20 }
 0xebe   :  { %v2781_v17 = vpop.xlane.xlu0 %2780 }
 0xebf   :  { %vm2782_vm6 = vcmp.eq.f32.partialorder %v2779_v20, %v2781_v17  ;;  %v2787_v4 = vcvt.f32.s32 %v2781_v17  ;;  %v6313_v17 = vld [vmem:[#allocation8 + $0x34] ss:$12 sps:$4 sm:$0xff]  }
 0xec0   :  { %v2783_v28 = vsel %vm2782_vm6, %v2778_v23, inf  ;;  %v6319_v23 = vld [vmem:[#allocation8 + $0x30] ss:$12 sps:$4 sm:$0xff]  }
 0xec1   :  { %2784 = vmin.xlane.f32.xlu1 %v2783_v28  ;;  %v2788_v15 = vshll.u32 %v2787_v4, 16  ;;  %v5342_v28 = vld [vmem:[#allocation8 + $0x38] ss:$12 sps:$4 sm:$0xff]   ;;  %v6333_v4 = vld [vmem:[#allocation8 + $0x60] ss:$12 sps:$4 sm:$0xff]  }
 0xf4e   :  { %v2785_v12 = vpop.xlane.xlu1 %2784 }
 0xf4f   :  { %v2786_v16 = vcvt.f32.s32 %v2785_v12  ;;  %v5350_v12 = vld [vmem:[#allocation8 + $0x68] ss:$12 sps:$4 sm:$0xff]  }
 0xf51   :  { %v2789_v57 = vadd.s32 %v2788_v15, %v2786_v16  ;;  %v6337_v15 = vld [vmem:[#allocation8 + $0x7c] ss:$12 sps:$4 sm:$0xff]   ;;  %v6340_v16 = vld [vmem:[#allocation8 + $0x78] ss:$12 sps:$4 sm:$0xff]  }
 0xf53   :  { %vm2790_vm8 = vcmp.eq.s32.totalorder %v5774_v21, %v2789_v57  ;;  %vm2808_vm9 = vcmp.eq.s32.totalorder %v2789_v57, 1  ;;  %v6347_v57 = vld [vmem:[#allocation8 + $0x90] ss:$12 sps:$4 sm:$0xff]  }
 0xf54   :  { %v4407_v5 = vsel %vm2790_vm8, 1.0, %v5616_v0  ;;  %v4411_v10 = vsel %vm2808_vm9, 1.0, %v5616_v0 }
 0xf55   :  { %v2806_v14 = vmul.f32 %v4407_v5, %v2805_v58  ;;  %v6302_v18 = vmul.f32 %v4411_v10, %v2805_v58  ;;  %v5358_v58 = vld [vmem:[#allocation8 + $0x98] ss:$12 sps:$4 sm:$0xff]   ;;  %v6354_v5 = vld [vmem:[#allocation8 + $0xa8] ss:$12 sps:$4 sm:$0xff]   ;;  %v5362_v10 = vld [vmem:[#allocation8 + $0xb0] ss:$12 sps:$4 sm:$0xff]  }
 0xf57   :  { %v2807_v20 = vadd.f32 %v2806_v14, %v2803_v63  ;;  %v6351_v63 = vld [vmem:[#allocation8 + $0xac] ss:$12 sps:$4 sm:$0xff]  }
 0xf59   :  { %v2813_v32 = vpack.c.bf16 %v2807_v20, %v2807_v20 }
 0xf5b   :  { %3007 = vmatmul.mubr.bf16.vlgmr.msra.gmra.mrb[32].mxu0 %v2813_v32  ;;  %4952 = vmatmul.mubr.bf16.vlgmr.msra.gmra.mrb[32].mxu1 %v2813_v32 }
 0xf5c   :  { %3233 = vmatpush1.bf16.msra.mxu0 %v6304_v26  ;;  %4956 = vmatpush3.bf16.msra.mxu1 %v5334_v29 }
 0xf5d   :  { %3234 = vmatprep.subr.bf16.mxu0 %v6306_v39  ;;  %4957 = vmatprep.subr.bf16.mxu1 %v5616_v0 }
 0xf5e   :  { %3264 = vmatprep.mubr.bf16.mxu0 %v5617_v1  ;;  %4971 = vmatprep.mubr.msk.bf16.mxu1 %vm5618_vm0, %v5616_v0 }
 0xf60   :  { %3235 = vmatpush1.bf16.msra.mxu0 %v6309_v52  ;;  %4958 = vmatpush3.bf16.msra.mxu1 %v5338_v11 }
 0xf61   :  { %3236 = vmatprep.subr.bf16.mxu0 %v6313_v17  ;;  %4959 = vmatprep.subr.bf16.mxu1 %v5616_v0 }
 0xf64   :  { %3237 = vmatpush1.bf16.msra.mxu0 %v6319_v23  ;;  %4960 = vmatpush3.bf16.msra.mxu1 %v5342_v28 }
 0xf65   :  { %3238 = vmatprep.subr.bf16.mxu0 %v6323_v35  ;;  %4961 = vmatprep.subr.bf16.mxu1 %v5616_v0 }
 0xf68   :  { %3239 = vmatpush1.bf16.msra.mxu0 %v6326_v49  ;;  %4962 = vmatpush3.bf16.msra.mxu1 %v5346_v61 }
 0xf69   :  { %3240 = vmatprep.subr.bf16.mxu0 %v6330_v3  ;;  %4963 = vmatprep.subr.bf16.mxu1 %v5616_v0 }
 0xf6c   :  { %3241 = vmatpush1.bf16.msra.mxu0 %v6333_v4  ;;  %4964 = vmatpush3.bf16.msra.mxu1 %v5350_v12 }
 0xf6d   :  { %3242 = vmatprep.subr.bf16.mxu0 %v6337_v15  ;;  %4965 = vmatprep.subr.bf16.mxu1 %v5616_v0 }
 0xf70   :  { %3243 = vmatpush1.bf16.msra.mxu0 %v6340_v16  ;;  %4966 = vmatpush3.bf16.msra.mxu1 %v5354_v53 }
 0xf71   :  { %3244 = vmatprep.subr.bf16.mxu0 %v6344_v55  ;;  %4967 = vmatprep.subr.bf16.mxu1 %v5616_v0 }
 0xf74   :  { %3245 = vmatpush1.bf16.msra.mxu0 %v6347_v57  ;;  %4968 = vmatpush3.bf16.msra.mxu1 %v5358_v58 }
 0xf75   :  { %3246 = vmatprep.subr.bf16.mxu0 %v6351_v63  ;;  %4969 = vmatprep.subr.bf16.mxu1 %v5616_v0 }
 0xf78   :  { %3247 = vmatpush1.bf16.msra.mxu0 %v6354_v5  ;;  %4970 = vmatpush3.bf16.msra.mxu1 %v5362_v10 }
 0xf79   :  { %4975 = vmatprep.subr.bf16.mxu0 %v5616_v0  ;;  %3657 = vmatprep.subr.bf16.mxu1 %v6240_v24  ;;  %v5365_v24 = vld [vmem:[#allocation10 + $0x10] sm:$0xff]  }
 0xf7b   :  { %3265 = vmatmul.mubr.bf16.vlgmr.msra.gmra.mrb[32].mxu0 %v6220_v43  ;;  %4972 = vmatmul.mubr.bf16.vlgmr.msra.gmra.mrb[36].mxu1 %v6220_v43  ;;  %v5363_v43 = vld [vmem:[#allocation10] sm:$0xff]  }
 0xf7c   :  { %4991 = vmatprep.mubr.msk.bf16.mxu0 %vm5618_vm0, %v5616_v0  ;;  %3658 = vmatpush1.bf16.msra.mxu1 %v6238_v22  ;;  %v5364_v22 = vld [vmem:[#allocation10 + $0x8] sm:$0xff]  }
 0xf7d   :  { %3659 = vmatprep.subr.bf16.mxu1 %v6242_v59  ;;  %3689 = vmatprep.mubr.bf16.mxu1 %v5617_v1  ;;  %v5366_v59 = vld [vmem:[#allocation10 + $0x18] sm:$0xff]  }
 0xf7e   :  { %4976 = vmatpush3.bf16.msra.mxu0 %v5363_v43 }
 0xf7f   :  { %4977 = vmatprep.subr.bf16.mxu0 %v5616_v0 }
 0xf80   :  { %3660 = vmatpush1.bf16.msra.mxu1 %v6246_v30  ;;  %v5367_v30 = vld [vmem:[#allocation10 + $0x20] sm:$0xff]  }
 0xf81   :  { %3661 = vmatprep.subr.bf16.mxu1 %v6250_v31  ;;  %v5368_v31 = vld [vmem:[#allocation10 + $0x28] sm:$0xff]  }
 0xf82   :  { %4978 = vmatpush3.bf16.msra.mxu0 %v5364_v22 }
 0xf83   :  { %4979 = vmatprep.subr.bf16.mxu0 %v5616_v0 }
 0xf84   :  { %3662 = vmatpush1.bf16.msra.mxu1 %v6253_v33  ;;  %v5369_v33 = vld [vmem:[#allocation10 + $0x30] sm:$0xff]  }
 0xf85   :  { %3663 = vmatprep.subr.bf16.mxu1 %v6257_v37  ;;  %v5370_v37 = vld [vmem:[#allocation10 + $0x38] sm:$0xff]  }
 0xf86   :  { %4980 = vmatpush3.bf16.msra.mxu0 %v5365_v24 }
 0xf87   :  { %4981 = vmatprep.subr.bf16.mxu0 %v5616_v0 }
 0xf88   :  { %3664 = vmatpush1.bf16.msra.mxu1 %v6260_v42 }
 0xf89   :  { %3665 = vmatprep.subr.bf16.mxu1 %v6264_v51 }
 0xf8a   :  { %4982 = vmatpush3.bf16.msra.mxu0 %v5366_v59 }
 0xf8b   :  { %4983 = vmatprep.subr.bf16.mxu0 %v5616_v0 }
 0xf8c   :  { %3666 = vmatpush1.bf16.msra.mxu1 %v6267_v47 }
 0xf8d   :  { %3667 = vmatprep.subr.bf16.mxu1 %v6271_v60 }
 0xf8e   :  { %4984 = vmatpush3.bf16.msra.mxu0 %v5367_v30 }
 0xf8f   :  { %4985 = vmatprep.subr.bf16.mxu0 %v5616_v0 }
 0xf90   :  { %3668 = vmatpush1.bf16.msra.mxu1 %v6274_v6  ;;  %v3087_v6 = vld [vmem:[%s6533_s5] sm:$0x7] }
 0xf91   :  { %3669 = vmatprep.subr.bf16.mxu1 %v6279_v44  ;;  %v3220_v44 = vrot.slane %v3087_v6, %v5863_v7  ;;  %v3228_v22 = vrot.slane %v3087_v6, %v5872_v27 }
 0xf92   :  { %4986 = vmatpush3.bf16.msra.mxu0 %v5368_v31 }
 0xf93   :  { %4987 = vmatprep.subr.bf16.mxu0 %v5616_v0 }
 0xf94   :  { %3670 = vmatpush1.bf16.msra.mxu1 %v6282_v46 }
 0xf95   :  { %3671 = vmatprep.subr.bf16.mxu1 %v6286_v41 }
 0xf96   :  { %4988 = vmatpush3.bf16.msra.mxu0 %v5369_v33 }
 0xf97   :  { %4989 = vmatprep.subr.bf16.mxu0 %v5616_v0 }
 0xf98   :  { %3672 = vmatpush1.bf16.msra.mxu1 %v6289_v56  ;;  %v3224_v56 = vrot.slane %v3087_v6, %v5868_v9 }
 0xf99   :  { %3915 = vmatprep.subr.bf16.mxu1 %v6293_v62 }
 0xf9a   :  { %4990 = vmatpush3.bf16.msra.mxu0 %v5370_v37 }
 0xf9b   :  { %4995 = vmatprep.subr.bf16.mxu0 %v5616_v0 }
0x102e   :  { %v3049_v42 = vpop.f32.mrb[32].mxu1 }
0x102f   :  { %v4953_v51 = vpop.f32.mrb[33].mxu1 }
0x1030   :  { %v3052_v47 = vpop.f32.mrb[34].mxu1 }
0x1031   :  { %v4954_v60 = vpop.f32.mrb[35].mxu1 }
0x104e   :  { %v3266_v46 = vpop.f32.mrb[32].mxu0  ;;  %v3307_v41 = vpop.f32.mrb[36].mxu1 }
0x104f   :  { %v3267_v62 = vadd.f32 %v3266_v46, %v3220_v44  ;;  %v3268_v14 = vpop.f32.mrb[33].mxu0  ;;  %v4973_v20 = vpop.f32.mrb[37].mxu1  ;;  %v3308_v59 = vadd.f32 %v3307_v41, %v3228_v22  ;;  %v6426_v22 = vsub.f32 %v5961_v38, %v5965_v48 }
0x1050   :  { %v3270_v29 = vpop.f32.mrb[34].mxu0  ;;  %v3310_v32 = vpop.f32.mrb[38].mxu1  ;;  %v3269_v12 = vadd.f32 %v3268_v14, %v3224_v56 }
0x1051   :  { %v4460_v11 = vmul.f32 -1.442695, %v3267_v62  ;;  %v3271_v28 = vpop.f32.mrb[35].mxu0  ;;  %v4974_v61 = vpop.f32.mrb[39].mxu1 }
0x1052   :  { %v4461_v53 = vmul.f32 -1.442695, %v3269_v12  ;;  %v5371_v12 = vld [vmem:[#allocation5 + $0x8] ss:$12 sps:$4 sm:$0xff]  }
0x1053   :  { %5435 = vpow2.f32 %v4460_v11 }
0x1054   :  { %5437 = vpow2.f32 %v4461_v53  ;;  %v5372_v53 = vld [vmem:[#allocation5 + $0x20] ss:$12 sps:$4 sm:$0xff]  }
0x105d   :  { %v5436_v58 = vpop.eup %5435 }
0x105e   :  { %v3317_v10 = vadd.f32 1.0, %v5436_v58  ;;  %v5438_v43 = vpop.eup %5437  ;;  %v5373_v58 = vld [vmem:[#allocation5 + $0x38] ss:$12 sps:$4 sm:$0xff]  }
0x105f   :  { %v3324_v24 = vadd.f32 1.0, %v5438_v43  ;;  %v5375_v43 = vld [vmem:[#allocation5 + $0x68] ss:$12 sps:$4 sm:$0xff]  }
0x1060   :  { %5439 = vrcp.f32 %v3317_v10  ;;  %v5374_v10 = vld [vmem:[#allocation5 + $0x50] ss:$12 sps:$4 sm:$0xff]  }
0x1061   :  { %5441 = vrcp.f32 %v3324_v24  ;;  %v1395_v24 = vmul.f32 1.442695, %v6426_v22 }
0x106a   :  { %v5440_v30 = vpop.eup %5439 }
0x106b   :  { %v3327_v31 = vmul.f32 %v5440_v30, %v3308_v59  ;;  %v5442_v37 = vpop.eup %5441  ;;  %v6431_v59 = vsub.f32 %v6228_v50, %v6232_v8  ;;  %v5376_v50 = vld [vmem:[#allocation5 + $0x80] ss:$12 sps:$4 sm:$0xff]   ;;  %v5377_v8 = vld [vmem:[#allocation5 + $0x98] ss:$12 sps:$4 sm:$0xff]  }
0x106c   :  { %v3330_v51 = vsub.f32 1.0, %v5442_v37  ;;  %v3332_v44 = vmul.f32 %v5442_v37, %v6216_v19 }
0x106d   :  { %v3328_v33 = vadd.f32 %v3327_v31, %v3049_v42  ;;  %v3351_v42 = vld [vmem:[%s6535_s7] sm:$0x1]  ;;  %v2761_v30 = vmul.f32 1.442695, %v6431_v59 }
0x106f   :  { %5443 = vtanh.f32 %v3328_v33 }
0x1070   :  { %5445 = vpow2.f32 %v1395_v24 }
0x1071   :  { %5447 = vpow2.f32 %v2761_v30 }
0x1079   :  { %v5444_v47 = vpop.eup %5443 }
0x107a   :  { %v3331_v60 = vmul.f32 %v5444_v47, %v3330_v51  ;;  %v5446_v47 = vpop.eup %5445 }
0x107b   :  { %v1397_v38 = vsel %vm710_vm3, %v5446_v47, 0.0  ;;  %v5448_v48 = vpop.eup %5447  ;;  %v1403_v47 = vsub.f32 1.0, %v763_v36 }
0x107c   :  { %v6397_v46 = vadd.f32 %v3332_v44, %v3331_v60  ;;  %v2763_v60 = vsel %vm710_vm3, %v5448_v48, 0.0  ;;  %v5378_v44 = vld [vmem:[#allocation5 + $0xb0] ss:$12 sps:$4 sm:$0xff]  }
0x107e   :  { %v6401_v56 = vpack.c.bf16 %v6397_v46, %v6397_v46 }
0x1080   :  { %4992 = vmatmul.mubr.bf16.vlgmr.msra.gmra.mrb[36].mxu0 %v6401_v56 }
0x1081   :  { %5011 = vmatprep.mubr.msk.bf16.mxu0 %vm5618_vm0, %v5616_v0  ;;  %4996 = vmatpush3.bf16.msra.mxu0 %v5371_v12 }
0x1082   :  { %4997 = vmatprep.subr.bf16.mxu0 %v5616_v0 }
0x1085   :  { %4998 = vmatpush3.bf16.msra.mxu0 %v5372_v53 }
0x1086   :  { %4999 = vmatprep.subr.bf16.mxu0 %v5616_v0 }
0x1089   :  { %5000 = vmatpush3.bf16.msra.mxu0 %v5373_v58 }
0x108a   :  { %5001 = vmatprep.subr.bf16.mxu0 %v5616_v0 }
0x108d   :  { %5002 = vmatpush3.bf16.msra.mxu0 %v5374_v10 }
0x108e   :  { %5003 = vmatprep.subr.bf16.mxu0 %v5616_v0 }
0x1091   :  { %5004 = vmatpush3.bf16.msra.mxu0 %v5375_v43 }
0x1092   :  { %5005 = vmatprep.subr.bf16.mxu0 %v5616_v0 }
0x1095   :  { %5006 = vmatpush3.bf16.msra.mxu0 %v5376_v50 }
0x1096   :  { %5007 = vmatprep.subr.bf16.mxu0 %v5616_v0 }
0x1099   :  { %5008 = vmatpush3.bf16.msra.mxu0 %v5377_v8  ;;  %v3770_v8 = vld [vmem:[%s6533_s5] sm:$0x7] }
0x109a   :  { %5009 = vmatprep.subr.bf16.mxu0 %v5616_v0 }
0x109d   :  { %5010 = vmatpush3.bf16.msra.mxu0 %v5378_v44  ;;  %v3903_v44 = vrot.slane %v3770_v8, %v5863_v7 }
0x109e   :  { %5015 = vmatprep.subr.bf16.mxu0 %v5616_v0 }
0x1153   :  { %v3434_v6 = vpop.f32.mrb[36].mxu0 }
0x1154   :  { %v6409_v41 = vadd.f32 %v3434_v6, %v3351_v42  ;;  %v4993_v62 = vpop.f32.mrb[37].mxu0  ;;  %v3477_v42 = vstv %s4471_s21 }
0x1155   :  { %v3437_v19 = vpop.f32.mrb[38].mxu0  ;;  %vm3478_vm12 = vcmp.eq.s32.totalorder %v5774_v21, %v3477_v42 }
0x1156   :  { %v4994_v14 = vpop.f32.mrb[39].mxu0  ;;  %v3440_v20 = vsel %vm710_vm3, %v6409_v41, -inf }
0x1157   :  { %3441 = vmax.xlane.f32.xlu0 %v3440_v20  ;;  %v4472_v20 = vsel %vm3478_vm12, 1.0, %v5616_v0 }
0x11e4   :  { %v6413_v29 = vpop.xlane.xlu0 %3441 }
0x11e5   :  { %vm3456_vm10 = vcmp.eq.f32.partialorder %v6409_v41, %v6413_v29 }
0x11e6   :  { %v3457_v32 = vsel %vm3456_vm10, %v5774_v21, 128 }
0x11e7   :  { %v3458_v11 = vsel %vm710_vm3, %v3457_v32, 2147483647  ;;  %v3485_v32 = vstv %s3484_s23 }
0x11e8   :  { %v3460_v28 = vshra.s32 %v3458_v11, 16  ;;  %v3459_v31 = vand.u32 65535, %v3458_v11  ;;  %v3486_v12 = vmul.f32 %v4472_v20, %v3485_v32 }
0x11ea   :  { %v3462_v61 = vcvt.s32.f32 %v3460_v28  ;;  %v3461_v37 = vcvt.s32.f32 %v3459_v31  ;;  %v3488_v28 = vstv %s3487_s24  ;;  %v5379_v31 = vld [vmem:[#allocation8 + $0x8] ss:$12 sps:$4 sm:$0xff]  }
0x11ec   :  { %3463 = vmin.xlane.f32.xlu1 %v3462_v61 }
0x1279   :  { %v3464_v33 = vpop.xlane.xlu1 %3463 }
0x127a   :  { %vm3465_vm11 = vcmp.eq.f32.partialorder %v3462_v61, %v3464_v33  ;;  %v3470_v6 = vcvt.f32.s32 %v3464_v33 }
0x127b   :  { %v3466_v51 = vsel %vm3465_vm11, %v3461_v37, inf }
0x127c   :  { %3467 = vmin.xlane.f32.xlu0 %v3466_v51  ;;  %v3471_v19 = vshll.u32 %v3470_v6, 16 }
0x1280   :  { %1398 = vadd.xlane.f32.xlu0 %v1397_v38  ;;  %v6456_v38 = vmax.f32 %v6038_v40, %v6168_v34  ;;  %v5382_v34 = vld [vmem:[#allocation8 + $0x50] ss:$12 sps:$4 sm:$0xff]  }
0x1282   :  { %v2769_v25 = vsub.f32 1.0, %v6456_v38 }
0x1284   :  { %2764 = vadd.xlane.f32.xlu0 %v2763_v60 }
0x1309   :  { %v3468_v62 = vpop.xlane.xlu0 %3467 }
0x130a   :  { %v3469_v14 = vcvt.f32.s32 %v3468_v62  ;;  %v3907_v62 = vrot.slane %v3770_v8, %v5868_v9 }
0x130c   :  { %v3472_v11 = vadd.s32 %v3471_v19, %v3469_v14 }
0x130d   :  { %v1399_v61 = vpop.xlane.xlu0 %1398 }
0x130e   :  { %vm3473_vm13 = vcmp.eq.s32.totalorder %v5774_v21, %v3472_v11  ;;  %vm3491_vm14 = vcmp.eq.s32.totalorder %v3472_v11, 1  ;;  %5449 = vlog2.f32 %v1399_v61  ;;  %v5380_v21 = vld [vmem:[#allocation8 + $0x20] ss:$12 sps:$4 sm:$0xff]  }
0x130f   :  { %v4470_v53 = vsel %vm3473_vm13, 1.0, %v5616_v0  ;;  %v4474_v58 = vsel %vm3491_vm14, 1.0, %v5616_v0 }
0x1310   :  { %v3489_v10 = vmul.f32 %v4470_v53, %v3488_v28  ;;  %v6444_v43 = vmul.f32 %v4474_v58, %v3488_v28 }
0x1311   :  { %v2765_v24 = vpop.xlane.xlu0 %2764 }
0x1312   :  { %5451 = vlog2.f32 %v2765_v24  ;;  %v3490_v30 = vadd.f32 %v3489_v10, %v3486_v12  ;;  %v3911_v24 = vrot.slane %v3770_v8, %v5872_v27  ;;  %v2812_v8 = vmax.f32 %v6456_v38, %v6302_v18 }
0x1314   :  { %v3496_v33 = vpack.c.bf16 %v3490_v30, %v3490_v30 }
0x1316   :  { %3690 = vmatmul.mubr.bf16.vlgmr.msra.gmra.mrb[40].mxu1 %v3496_v33  ;;  %5012 = vmatmul.mubr.bf16.vlgmr.msra.gmra.mrb[40].mxu0 %v3496_v33 }
0x1317   :  { %3916 = vmatpush1.bf16.msra.mxu1 %v6304_v26  ;;  %5016 = vmatpush3.bf16.msra.mxu0 %v5379_v31 }
0x1318   :  { %v5450_v37 = vpop.eup %5449  ;;  %3917 = vmatprep.subr.bf16.mxu1 %v6306_v39  ;;  %5017 = vmatprep.subr.bf16.mxu0 %v5616_v0  ;;  %v5381_v39 = vld [vmem:[#allocation8 + $0x38] ss:$12 sps:$4 sm:$0xff]  }
0x1319   :  { %v1401_v51 = vmul.f32 0.6931472, %v5450_v37  ;;  %3947 = vmatprep.mubr.bf16.mxu1 %v5617_v1  ;;  %5031 = vmatprep.mubr.msk.bf16.mxu0 %vm5618_vm0, %v5616_v0 }
0x131b   :  { %v1402_v26 = vsub.f32 %v6426_v22, %v1401_v51  ;;  %3918 = vmatpush1.bf16.msra.mxu1 %v6309_v52  ;;  %5018 = vmatpush3.bf16.msra.mxu0 %v5380_v21 }
0x131c   :  { %v5452_v48 = vpop.eup %5451  ;;  %3919 = vmatprep.subr.bf16.mxu1 %v6313_v17  ;;  %5019 = vmatprep.subr.bf16.mxu0 %v5616_v0  ;;  %v5383_v17 = vld [vmem:[#allocation8 + $0x68] ss:$12 sps:$4 sm:$0xff]  }
0x131d   :  { %v1404_v1 = vmul.f32 %v1403_v47, %v1402_v26  ;;  %v2767_v60 = vmul.f32 0.6931472, %v5452_v48 }
0x131f   :  { %1406 = vst [vmem:[#allocation11 + $0x1] sm:$0x1] %v1404_v1  ;;  %v2768_v36 = vsub.f32 %v6431_v59, %v2767_v60  ;;  %3920 = vmatpush1.bf16.msra.mxu1 %v6319_v23  ;;  %5020 = vmatpush3.bf16.msra.mxu0 %v5381_v39  ;;  %v5384_v23 = vld [vmem:[#allocation8 + $0x80] ss:$12 sps:$4 sm:$0xff]   ;;  %v2077_v60 = vsub.f32 %v6145_v2, %v6149_v13 }
0x1320   :  { %3921 = vmatprep.subr.bf16.mxu1 %v6323_v35  ;;  %5021 = vmatprep.subr.bf16.mxu0 %v5616_v0  ;;  %v5385_v35 = vld [vmem:[#allocation8 + $0x98] ss:$12 sps:$4 sm:$0xff]  }
0x1321   :  { %v2770_v52 = vmul.f32 %v2769_v25, %v2768_v36  ;;  %v2078_v27 = vmul.f32 1.442695, %v2077_v60  ;;  %v3443_v25 = vsub.f32 %v6409_v41, %v6413_v29  ;;  %v714_v36 = vsub.f32 %v5888_v45, %v5892_v54 }
0x1323   :  { %2772 = vst [vmem:[#allocation11 + $0x3] sm:$0x1] %v2770_v52  ;;  %3922 = vmatpush1.bf16.msra.mxu1 %v6326_v49  ;;  %5022 = vmatpush3.bf16.msra.mxu0 %v5382_v34  ;;  %v5386_v49 = vld [vmem:[#allocation8 + $0xb0] ss:$12 sps:$4 sm:$0xff]   ;;  %v3444_v34 = vmul.f32 1.442695, %v3443_v25 }
0x1324   :  { %3923 = vmatprep.subr.bf16.mxu1 %v6330_v3  ;;  %5023 = vmatprep.subr.bf16.mxu0 %v5616_v0  ;;  %v5387_v3 = vld [vmem:[#allocation10] sm:$0xff]   ;;  %v715_v52 = vmul.f32 1.442695, %v714_v36 }
0x1327   :  { %3924 = vmatpush1.bf16.msra.mxu1 %v6333_v4  ;;  %5024 = vmatpush3.bf16.msra.mxu0 %v5383_v17  ;;  %v5388_v4 = vld [vmem:[#allocation10 + $0x8] sm:$0xff]  }
0x1328   :  { %3925 = vmatprep.subr.bf16.mxu1 %v6337_v15  ;;  %5025 = vmatprep.subr.bf16.mxu0 %v5616_v0  ;;  %v5389_v15 = vld [vmem:[#allocation10 + $0x10] sm:$0xff]  }
0x132b   :  { %3926 = vmatpush1.bf16.msra.mxu1 %v6340_v16  ;;  %5026 = vmatpush3.bf16.msra.mxu0 %v5384_v23  ;;  %v5390_v16 = vld [vmem:[#allocation10 + $0x18] sm:$0xff]  }
0x132c   :  { %3927 = vmatprep.subr.bf16.mxu1 %v6344_v55  ;;  %5027 = vmatprep.subr.bf16.mxu0 %v5616_v0  ;;  %v5391_v55 = vld [vmem:[#allocation10 + $0x20] sm:$0xff]  }
0x132f   :  { %3928 = vmatpush1.bf16.msra.mxu1 %v6347_v57  ;;  %5028 = vmatpush3.bf16.msra.mxu0 %v5385_v35  ;;  %v5392_v57 = vld [vmem:[#allocation10 + $0x28] sm:$0xff]  }
0x1330   :  { %3929 = vmatprep.subr.bf16.mxu1 %v6351_v63  ;;  %5029 = vmatprep.subr.bf16.mxu0 %v5616_v0  ;;  %v5393_v63 = vld [vmem:[#allocation10 + $0x30] sm:$0xff]  }
0x1333   :  { %3930 = vmatpush1.bf16.msra.mxu1 %v6354_v5  ;;  %5030 = vmatpush3.bf16.msra.mxu0 %v5386_v49  ;;  %v5394_v5 = vld [vmem:[#allocation10 + $0x38] sm:$0xff]  }
0x1334   :  { %5035 = vmatprep.subr.bf16.mxu1 %v5616_v0 }
0x1336   :  { %3948 = vmatmul.mubr.bf16.vlgmr.msra.gmra.mrb[40].mxu1 %v6401_v56  ;;  %5032 = vmatmul.mubr.bf16.vlgmr.msra.gmra.mrb[44].mxu0 %v6401_v56 }
0x1337   :  { %5051 = vmatprep.mubr.msk.bf16.mxu1 %vm5618_vm0, %v5616_v0  ;;  %5036 = vmatpush3.bf16.msra.mxu1 %v5387_v3 }
0x1338   :  { %5037 = vmatprep.subr.bf16.mxu1 %v5616_v0 }
0x133b   :  { %5038 = vmatpush3.bf16.msra.mxu1 %v5388_v4 }
0x133c   :  { %5039 = vmatprep.subr.bf16.mxu1 %v5616_v0 }
0x133f   :  { %5040 = vmatpush3.bf16.msra.mxu1 %v5389_v15 }
0x1340   :  { %5041 = vmatprep.subr.bf16.mxu1 %v5616_v0 }
0x1343   :  { %5042 = vmatpush3.bf16.msra.mxu1 %v5390_v16 }
0x1344   :  { %5043 = vmatprep.subr.bf16.mxu1 %v5616_v0 }
0x1347   :  { %5044 = vmatpush3.bf16.msra.mxu1 %v5391_v55 }
0x1348   :  { %5045 = vmatprep.subr.bf16.mxu1 %v5616_v0 }
0x134b   :  { %5046 = vmatpush3.bf16.msra.mxu1 %v5392_v57 }
0x134c   :  { %5047 = vmatprep.subr.bf16.mxu1 %v5616_v0 }
0x134f   :  { %5048 = vmatpush3.bf16.msra.mxu1 %v5393_v63 }
0x1350   :  { %5049 = vmatprep.subr.bf16.mxu1 %v5616_v0 }
0x1353   :  { %5050 = vmatpush3.bf16.msra.mxu1 %v5394_v5 }
0x13e9   :  { %v3732_v56 = vpop.f32.mrb[40].mxu0 }
0x13ea   :  { %v5013_v22 = vpop.f32.mrb[41].mxu0 }
0x13eb   :  { %v3735_v59 = vpop.f32.mrb[42].mxu0 }
0x13ec   :  { %v5014_v50 = vpop.f32.mrb[43].mxu0 }
0x1409   :  { %v3949_v42 = vpop.f32.mrb[40].mxu1  ;;  %v3990_v6 = vpop.f32.mrb[44].mxu0 }
0x140a   :  { %v3950_v19 = vadd.f32 %v3949_v42, %v3903_v44  ;;  %v3951_v14 = vpop.f32.mrb[41].mxu1  ;;  %v5033_v20 = vpop.f32.mrb[45].mxu0  ;;  %v3991_v9 = vadd.f32 %v3990_v6, %v3911_v24  ;;  %v2086_v42 = vsub.f32 1.0, %v6038_v40 }
0x140b   :  { %v3953_v32 = vpop.f32.mrb[42].mxu1  ;;  %v3993_v0 = vpop.f32.mrb[46].mxu0  ;;  %v3952_v12 = vadd.f32 %v3951_v14, %v3907_v62  ;;  %v3452_v14 = vsub.f32 1.0, %v2812_v8 }
0x140c   :  { %v4523_v11 = vmul.f32 -1.442695, %v3950_v19  ;;  %v3954_v28 = vpop.f32.mrb[43].mxu1  ;;  %v5034_v61 = vpop.f32.mrb[47].mxu0 }
0x140d   :  { %v4524_v53 = vmul.f32 -1.442695, %v3952_v12  ;;  %v3495_v12 = vmax.f32 %v2812_v8, %v6444_v43 }
0x140e   :  { %5453 = vpow2.f32 %v4523_v11 }
0x140f   :  { %5455 = vpow2.f32 %v4524_v53  ;;  %v4135_v40 = vsub.f32 1.0, %v3495_v12 }
0x1418   :  { %v5454_v58 = vpop.eup %5453 }
0x1419   :  { %v4000_v10 = vadd.f32 1.0, %v5454_v58  ;;  %v5456_v7 = vpop.eup %5455 }
0x141a   :  { %v4007_v30 = vadd.f32 1.0, %v5456_v7 }
0x141b   :  { %5457 = vrcp.f32 %v4000_v10 }
0x141c   :  { %5459 = vrcp.f32 %v4007_v30 }
0x1425   :  { %v5458_v31 = vpop.eup %5457 }
0x1426   :  { %v4010_v33 = vmul.f32 %v5458_v31, %v3991_v9  ;;  %v5460_v37 = vpop.eup %5459 }
0x1427   :  { %v4013_v51 = vsub.f32 1.0, %v5460_v37  ;;  %v4015_v39 = vmul.f32 %v5460_v37, %v6397_v46  ;;  %v4034_v46 = vld [vmem:[%s6535_s7] sm:$0x1]  ;;  %s5620_s7 = smov [#allocation11]  }
0x1428   :  { %v4011_v21 = vadd.f32 %v4010_v33, %v3732_v56  ;;  %s4144_s28 = sshll.u32 %s5620_s7, 4  ;;  %s4145_s28 = int_to_ptr.vmem [resolvable:$true] %s4144_s28 }
0x1429   :  { %s5577_s29 = scalar_lea.vmem %s4145_s28, 96  ;;  %p5582_p10 = scmp.lt.s32.totalorder %s4145_s28, %s4145_s28 }
0x142a   :  { %5461 = vtanh.f32 %v4011_v21  ;;  %p5578_p9 = scmp.ne.s32.totalorder %s4145_s28, %s5577_s29  ;;  %p5583_p11 = scmp.lt.s32.totalorder %s5577_s29, %s5577_s29 }
0x142b   :  { %5463 = vpow2.f32 %v2078_v27 }
0x142c   :  { %5465 = vpow2.f32 %v3444_v34  ;;  %p5584_p12 = por %p5583_p11, %p5582_p10 }
0x142d   :  { %5467 = vpow2.f32 %v715_v52 }
0x142e   :  { %p5585_p13 = pnand %p5584_p12, %p5578_p9 }
0x1434   :  { %v5462_v47 = vpop.eup %5461 }
0x1435   :  { %v4014_v26 = vmul.f32 %v5462_v47, %v4013_v51  ;;  %v5464_v41 = vpop.eup %5463 }
0x1436   :  { %v2080_v45 = vsel %vm710_vm3, %v5464_v41, 0.0  ;;  %v5466_v54 = vpop.eup %5465 }
0x1437   :  { %v4016_v48 = vadd.f32 %v4015_v39, %v4014_v26  ;;  %v3446_v29 = vsel %vm710_vm3, %v5466_v54, 0.0  ;;  %v5468_v3 = vpop.eup %5467 }
0x1438   :  { %v717_v4 = vsel %vm710_vm3, %v5468_v3, 0.0 }
0x1439   :  { %v4017_v1 = vpack.c.bf16 %v4016_v48, %v4016_v48 }
0x143b   :  { %5052 = vmatmul.mubr.bf16.vlgmr.msra.gmra.mrb[44].mxu1 %v4017_v1 }
0x150e   :  { %v4117_v17 = vpop.f32.mrb[44].mxu1 }
0x150f   :  { %v4118_v23 = vadd.f32 %v4117_v17, %v4034_v46  ;;  %v5053_v35 = vpop.f32.mrb[45].mxu1 }
0x1510   :  { %v4120_v2 = vpop.f32.mrb[46].mxu1 }
0x1511   :  { %v5054_v13 = vpop.f32.mrb[47].mxu1  ;;  %v4123_v49 = vsel %vm710_vm3, %v4118_v23, -inf }
0x1512   :  { %4124 = vmax.xlane.f32.xlu1 %v4123_v49 }
0x1516   :  { %2081 = vadd.xlane.f32.xlu1 %v2080_v45 }
0x151a   :  { %3447 = vadd.xlane.f32.xlu1 %v3446_v29 }
0x151e   :  { %718 = vadd.xlane.f32.xlu1 %v717_v4 }
0x159f   :  { %v4125_v15 = vpop.xlane.xlu1 %4124 }
0x15a0   :  { %v4126_v16 = vsub.f32 %v4118_v23, %v4125_v15 }
0x15a2   :  { %v4127_v55 = vmul.f32 1.442695, %v4126_v16 }
0x15a3   :  { %v2082_v57 = vpop.xlane.xlu1 %2081 }
0x15a4   :  { %5469 = vpow2.f32 %v4127_v55 }
0x15a5   :  { %5471 = vlog2.f32 %v2082_v57 }
0x15a7   :  { %v3448_v63 = vpop.xlane.xlu1 %3447 }
0x15a8   :  { %5473 = vlog2.f32 %v3448_v63 }
0x15ab   :  { %v719_v5 = vpop.xlane.xlu1 %718 }
0x15ac   :  { %5475 = vlog2.f32 %v719_v5 }
0x15ae   :  { %v5470_v56 = vpop.eup %5469 }
0x15af   :  { %v5472_v22 = vpop.eup %5471  ;;  %v4129_v59 = vsel %vm710_vm3, %v5470_v56, 0.0 }
0x15b0   :  { %v2084_v50 = vmul.f32 0.6931472, %v5472_v22  ;;  %4130 = vadd.xlane.f32.xlu0 %v4129_v59 }
0x15b2   :  { %v5474_v44 = vpop.eup %5473  ;;  %v2085_v6 = vsub.f32 %v2077_v60, %v2084_v50 }
0x15b3   :  { %v3450_v62 = vmul.f32 0.6931472, %v5474_v44 }
0x15b4   :  { %v2087_v19 = vmul.f32 %v2086_v42, %v2085_v6 }
0x15b5   :  { %v3451_v20 = vsub.f32 %v3443_v25, %v3450_v62 }
0x15b6   :  { %v5476_v32 = vpop.eup %5475  ;;  %2089 = vst [vmem:[#allocation11 + $0x2] sm:$0x1] %v2087_v19 }
0x15b7   :  { %v3453_v0 = vmul.f32 %v3452_v14, %v3451_v20  ;;  %v721_v11 = vmul.f32 0.6931472, %v5476_v32 }
0x15b9   :  { %3455 = vst [vmem:[#allocation11 + $0x4] sm:$0x1] %v3453_v0  ;;  %v722_v28 = vsub.f32 %v714_v36, %v721_v11 }
0x15bb   :  { %723 = vst [vmem:[#allocation11] sm:$0x1] %v722_v28 }
0x163d   :  { %v4131_v61 = vpop.xlane.xlu0 %4130 }
0x163e   :  { %5477 = vlog2.f32 %v4131_v61 }
0x1648   :  { %v5478_v18 = vpop.eup %5477 }
0x1649   :  { %v4133_v38 = vmul.f32 0.6931472, %v5478_v18 }
0x164b   :  { %v4134_v53 = vsub.f32 %v4126_v16, %v4133_v38 }
0x164d   :  { %v4136_v58 = vmul.f32 %v4135_v40, %v4134_v53 }
0x164f   :  { %4138 = vst [vmem:[#allocation11 + $0x5] sm:$0x1] %v4136_v58 }
0x1650   :  { %5588 = shalt.err (!%p5585_p13)
}
0x1651   :  { %s5589_s30 = scalar_lea.hbm %s6536_s8, 96 }
0x1652   :  { %p5590_p0 = scmp.ne.s32.totalorder %s6536_s8, %s5589_s30  ;;  %p5593_p1 = scmp.lt.u32.totalorder %s5589_s30, %s6536_s8 }
0x1654   :  { %p5595_p2 = pnand %p5593_p1, %p5590_p0 }
0x1656   :  { %5598 = shalt.err (!%p5595_p2)
}
0x1657   :  { %s5621_s11 = smov 16   ;;  %s5622_s12 = smov 1  }
0x1658   :  { %4150 = dma.vmem_to_hbm [thread:$0]  %s4145_s28, 96, %s6536_s8, [#allocation7], %s5621_s11, %s5621_s11, %s5622_s12  }
0x1659   :  { %5605 = dma.done.wait [#allocation7], 96  }
0x165a   :  { %5606 = vsyncadd [#allocation7], 4294967200 }
0x165b   :  { %4154 = vsyncpa [#allocation6], 1 }
0x165c   :  { %4155 = vsyncpa [#allocation9], 1 }
0x165d   :  { %4156 = vsyncpa [#allocation7], 1 }

</bundles_post_ra>
